<compile_context>
chip_gen: v7x
topology: tpu7x:2x2x1
jax: 0.10.0
libtpu: 0.0.40
codegen_flags: <defaults>
</compile_context>

<pallas_src>
import functools

import jax
import jax.numpy as jnp
from jax.experimental import pallas as pl
from jax.experimental.pallas import tpu as pltpu

LANE = 128
EPS = 1e-5


def _round_up(x, m):
    return (x + m - 1) // m * m


# ----------------------------------------------------------------------------------
# Kernel 1: BatchNorm statistics of x (per-tile partial sums, reduced in XLA).
# ----------------------------------------------------------------------------------
def _bn_partial_kernel(x_ref, sum_ref, sq_ref):
    x = x_ref[...]
    sum_ref[...] = jnp.sum(x, axis=0, keepdims=True)
    sq_ref[...] = jnp.sum(x * x, axis=0, keepdims=True)


def _pick_tile(m):
    # Largest tile that either divides M exactly or whose padding overhead is < 25%.
    for t in (1024, 512, 256, 128, 64, 32, 16, 8):
        if m % t == 0 or m > 4 * t:
            return t
    return 8


def _finalize_stats(sums, sqs, m_actual):
    """Reduce per-step partial sums (any leading shape) -> (mean, 1/sqrt(var+eps))."""
    c = sums.shape[-1]
    s = jnp.sum(sums.reshape(-1, c), axis=0, keepdims=True)
    q = jnp.sum(sqs.reshape(-1, c), axis=0, keepdims=True)
    inv_m = 1.0 / m_actual
    mean = s * inv_m
    var = jnp.maximum(q * inv_m - mean * mean, 0.0)   # biased, training-mode variance
    return mean, jax.lax.rsqrt(var + EPS)


def bn_stats(x2d, m_actual):
    """x2d: (M, C_pad) f32 slab.  Returns (mean, inv_std), each (1, C_pad) f32."""
    m, cp = x2d.shape
    tile = _pick_tile(m)
    mt = _round_up(m, tile)
    if mt != m:          # zero rows are harmless: stats divide by m_actual
        x2d = jnp.pad(x2d, ((0, mt - m), (0, 0)))
    nt = mt // tile
    sums, sqs = pl.pallas_call(
        _bn_partial_kernel,
        out_shape=(jax.ShapeDtypeStruct((nt, 1, cp), jnp.float32),
                   jax.ShapeDtypeStruct((nt, 1, cp), jnp.float32)),
        grid=(nt,),
        in_specs=[pl.BlockSpec((tile, cp), lambda i: (i, 0))],
        out_specs=(pl.BlockSpec((None, 1, cp), lambda i: (i, 0, 0)),
                   pl.BlockSpec((None, 1, cp), lambda i: (i, 0, 0))),
        compiler_params=pltpu.CompilerParams(dimension_semantics=("parallel",)),
    )(x2d)
    return _finalize_stats(sums, sqs, m_actual)


# ----------------------------------------------------------------------------------
# Kernel 2: fused [BN normalize (+ReLU) once -> in-VMEM zero pad -> im2col (bf16)
#           -> K=9*Cin MXU matmul(s)] with optional fused shortcut conv, optional
#           fused residual add, optional BN2 partial-stat emission.
# ----------------------------------------------------------------------------------
def _conv_block_kernel(*refs, stride, ho, wo, c_in, c_out,
                       fuse_shortcut, prologue_relu, emit_stats, has_residual):
    it = iter(refs)
    x_ref = next(it)                              # (H, W, c_in) activation block
    w_ref = next(it)                              # (9*c_in, c_out_total) bf16 weights
    mean_ref = next(it)                           # (1, c_in) f32
    istd_ref = next(it)                           # (1, c_in) f32
    res_ref = next(it) if has_residual else None  # (ho, wo, c_out)
    o_ref = next(it)                              # (ho, wo, c_out_total)
    sum_ref = next(it) if emit_stats else None    # (1, c_out)
    sq_ref = next(it) if emit_stats else None     # (1, c_out)
    ns_ref = next(it)                             # (H+2, W+2, c_in) f32 scratch
    col_ref = next(it)                            # (ho*wo, 9*c_in) bf16 im2col scratch

    h_in, w_in = x_ref.shape[0], x_ref.shape[1]

    # --- prologue: normalize (+ReLU) ONCE; zero spatial border directly in VMEM.
    # The zero border matches PyTorch zero-padding of the conv input (and relu(0)==0).
    mean = mean_ref[...].reshape(1, 1, c_in)
    istd = istd_ref[...].reshape(1, 1, c_in)
    t = (x_ref[...].astype(jnp.float32) - mean) * istd
    if prologue_relu:
        t = jnp.maximum(t, 0.0)
    ns_ref[...] = jnp.zeros(ns_ref.shape, ns_ref.dtype)
    ns_ref[1:h_in + 1, 1:w_in + 1, :] = t

    # --- im2col: slice the nine taps ONCE from the normalized scratch, pack to bf16.
    # TODO(synk): ns is kept f32 (taps cast to bf16 here) to avoid shifted loads/stores
    #             on packed bf16 tiles; a bf16 ns would halve per-tap VMEM read bytes.
    for i in range(3):
        for j in range(3):
            if stride == 1:
                tap = ns_ref[i:i + ho, j:j + wo, :]
            else:
                tap = ns_ref[pl.ds(i, ho, stride), pl.ds(j, wo, stride), :]
            k0 = (3 * i + j) * c_in
            col_ref[:, k0:k0 + c_in] = tap.reshape(ho * wo, c_in).astype(jnp.bfloat16)

    col = col_ref[...]

    # --- MXU: one wide (K = 9*c_in) matmul per output path, f32 accumulation.
    if fuse_shortcut:
        # shortcut path conv_sc(BN(x)) -- its input has NO ReLU
        acc_sc = jnp.dot(col, w_ref[:, c_out:2 * c_out],
                         preferred_element_type=jnp.float32)
        # main path conv1(relu(BN(x)))
        acc = jnp.dot(jnp.maximum(col, 0.0), w_ref[:, 0:c_out],
                      preferred_element_type=jnp.float32)
    else:
        acc = jnp.dot(col, w_ref[:, 0:c_out], preferred_element_type=jnp.float32)

    # --- epilogue: BN2 partial statistics from the resident f32 accumulator (reduced
    #     in XLA afterwards), fused residual add, store (bf16 intermediates / f32 out).
    if emit_stats:
        sum_ref[...] = jnp.sum(acc, axis=0, keepdims=True)
        sq_ref[...] = jnp.sum(acc * acc, axis=0, keepdims=True)

    out = acc.reshape(ho, wo, c_out)
    if has_residual:
        out = out + res_ref[...].astype(jnp.float32)
    if fuse_shortcut:
        o_ref[:, :, 0:c_out] = out.astype(o_ref.dtype)
        o_ref[:, :, c_out:2 * c_out] = acc_sc.reshape(ho, wo, c_out).astype(o_ref.dtype)
    else:
        o_ref[...] = out.astype(o_ref.dtype)


def conv_block(x, w_packed, mean, istd, *, stride, ho, wo, c_in, c_out,
               fuse_shortcut=False, prologue_relu=True, emit_stats=False,
               residual=None, residual_cblk=0, out_dtype=jnp.float32):
    """One pallas_call over the batch: BN(+ReLU) -> 3x3 conv (pad 1) -> epilogue.

    x:        (N, H, W, >=c_in); only the first c_in channels are read (via BlockSpec).
    w_packed: (9*c_in, c_out_total) bf16; c_out_total = 2*c_out when fuse_shortcut.
    residual: optional (N, ho, wo, >=c_out); channel block `residual_cblk` (units of
              c_out) is added to the main-path output -- lets conv2 pull its residual
              straight out of conv1's fused (h1 | sc) output with no XLA slice copy.
    """
    n, h_sp, w_sp = x.shape[0], x.shape[1], x.shape[2]
    c_out_total = 2 * c_out if fuse_shortcut else c_out
    assert w_packed.shape == (9 * c_in, c_out_total)

    kern = functools.partial(
        _conv_block_kernel, stride=stride, ho=ho, wo=wo, c_in=c_in, c_out=c_out,
        fuse_shortcut=fuse_shortcut, prologue_relu=prologue_relu,
        emit_stats=emit_stats, has_residual=residual is not None)

    in_specs = [
        pl.BlockSpec((None, h_sp, w_sp, c_in), lambda b: (b, 0, 0, 0)),
        pl.BlockSpec((9 * c_in, c_out_total), lambda b: (0, 0)),
        pl.BlockSpec((1, c_in), lambda b: (0, 0)),
        pl.BlockSpec((1, c_in), lambda b: (0, 0)),
    ]
    args = [x, w_packed, mean, istd]
    if residual is not None:
        in_specs.append(
            pl.BlockSpec((None, ho, wo, c_out),
                         lambda b, _c=residual_cblk: (b, 0, 0, _c)))
        args.append(residual)

    if emit_stats:
        out_shape = (jax.ShapeDtypeStruct((n, ho, wo, c_out_total), out_dtype),
                     jax.ShapeDtypeStruct((n, 1, c_out), jnp.float32),
                     jax.ShapeDtypeStruct((n, 1, c_out), jnp.float32))
        out_specs = (pl.BlockSpec((None, ho, wo, c_out_total), lambda b: (b, 0, 0, 0)),
                     pl.BlockSpec((None, 1, c_out), lambda b: (b, 0, 0)),
                     pl.BlockSpec((None, 1, c_out), lambda b: (b, 0, 0)))
    else:
        out_shape = jax.ShapeDtypeStruct((n, ho, wo, c_out_total), out_dtype)
        out_specs = pl.BlockSpec((None, ho, wo, c_out_total), lambda b: (b, 0, 0, 0))

    scratch_shapes = [pltpu.VMEM((h_sp + 2, w_sp + 2, c_in), jnp.float32),  # normalized
                      pltpu.VMEM((ho * wo, 9 * c_in), jnp.bfloat16)]        # im2col

    return pl.pallas_call(
        kern,
        out_shape=out_shape,
        grid=(n,),
        in_specs=in_specs,
        out_specs=out_specs,
        scratch_shapes=scratch_shapes,
        compiler_params=pltpu.CompilerParams(
            dimension_semantics=("parallel",),
            vmem_limit_bytes=32 * 1024 * 1024),
    )(*args)


# ----------------------------------------------------------------------------------
# Glue: weight packing and block forward.
# ----------------------------------------------------------------------------------
def pack_conv_weight(w_oihw, cin_p, cout_p):
    """OIHW f32 -> (9*Cin_p, Cout_p) bf16, tap-major (kh, kw, cin) rows (done once)."""
    cout, cin, kh, kw = w_oihw.shape
    w = jnp.transpose(w_oihw, (2, 3, 1, 0))            # (kh, kw, cin, cout)
    w = jnp.pad(w, ((0, 0), (0, 0), (0, cin_p - cin), (0, cout_p - cout)))
    return w.reshape(kh * kw * cin_p, cout_p).astype(jnp.bfloat16)


def pack_params(raw, in_planes, planes, stride):
    cin_p = _round_up(in_planes, LANE)
    cout_p = _round_up(planes, LANE)
    w1 = pack_conv_weight(raw['w1'], cin_p, cout_p)
    w2 = pack_conv_weight(raw['w2'], cout_p, cout_p)
    if stride != 1:
        wsc = pack_conv_weight(raw['w_sc'], cin_p, cout_p)
        # conv1 and conv_sc fused: main-path columns first, shortcut columns second.
        return {'w1sc': jnp.concatenate([w1, wsc], axis=1), 'w2': w2}
    return {'w1': w1, 'w2': w2}


def make_preact_block_forward(in_planes, planes, stride):
    if stride == 1:
        # The PyTorch module uses an identity shortcut for stride 1 (expansion == 1),
        # which only type-checks when in_planes == planes.
        assert in_planes == planes, "identity shortcut requires in_planes == planes"
    cin_p = _round_up(in_planes, LANE)
    cout_p = _round_up(planes, LANE)

    def forward(params, x_nchw):
        n, _, h, w = x_nchw.shape
        ho = (h - 1) // stride + 1
        wo = (w - 1) // stride + 1
        x = jnp.transpose(x_nchw, (0, 2, 3, 1)).astype(jnp.float32)       # NCHW -> NHWC
        x = jnp.pad(x, ((0, 0), (0, 0), (0, 0), (0, cin_p - in_planes)))  # pad C once

        # BN1 statistics (the shortcut's BN shares the batch statistics of x).
        mean1, istd1 = bn_stats(x.reshape(n * h * w, cin_p), n * h * w)

        if stride != 1:
            # conv1 + conv_sc fused (shared DMA / normalize / taps); BN2 partial stats
            # emitted from conv1's f32 accumulator; h1|sc stored once as bf16.
            h1sc, psum, psq = conv_block(
                x, params['w1sc'], mean1, istd1, stride=stride, ho=ho, wo=wo,
                c_in=cin_p, c_out=cout_p, fuse_shortcut=True, prologue_relu=False,
                emit_stats=True, out_dtype=jnp.bfloat16)
            mean2, istd2 = _finalize_stats(psum, psq, n * ho * wo)
            # conv2( relu( BN2(h1) ) ) + sc : both h1 and sc read straight out of the
            # fused conv1 output via channel-block BlockSpecs (no XLA slice copies).
            out = conv_block(
                h1sc, params['w2'], mean2, istd2, stride=1, ho=ho, wo=wo,
                c_in=cout_p, c_out=cout_p, prologue_relu=True,
                residual=h1sc, residual_cblk=1, out_dtype=jnp.float32)
        else:
            h1, psum, psq = conv_block(
                x, params['w1'], mean1, istd1, stride=1, ho=ho, wo=wo,
                c_in=cin_p, c_out=cout_p, prologue_relu=True, emit_stats=True,
                out_dtype=jnp.bfloat16)
            mean2, istd2 = _finalize_stats(psum, psq, n * ho * wo)
            out = conv_block(
                h1, params['w2'], mean2, istd2, stride=1, ho=ho, wo=wo,
                c_in=cout_p, c_out=cout_p, prologue_relu=True,
                residual=x, residual_cblk=0, out_dtype=jnp.float32)

        out = out[..., :planes]                     # un-pad channels once
        return jnp.transpose(out, (0, 3, 1, 2))     # back to NCHW

    return forward


# ----------------------------------------------------------------------------------
# Parameters + pure-JAX reference (numerical self-check).
# ----------------------------------------------------------------------------------
def init_raw_params(key, in_planes, planes, stride):
    ks = jax.random.split(key, 3)

    def conv_w(k, cout, cin):
        fan_in = cin * 9   # kaiming_normal_(mode='fan_in', nonlinearity='relu')
        return jax.random.normal(k, (cout, cin, 3, 3), jnp.float32) * jnp.sqrt(2.0 / fan_in)

    p = {'w1': conv_w(ks[0], planes, in_planes),
         'w2': conv_w(ks[1], planes, planes)}
    if stride != 1:
        p['w_sc'] = conv_w(ks[2], planes, in_planes)
    return p


def _reference_forward(raw, x_nchw, stride):
    def bn(t):
        mean = jnp.mean(t, axis=(0, 2, 3), keepdims=True)
        var = jnp.var(t, axis=(0, 2, 3), keepdims=True)    # biased, training-mode
        return (t - mean) * jax.lax.rsqrt(var + EPS)

    def conv(t, w, s):
        return jax.lax.conv_general_dilated(
            t, w, (s, s), ((1, 1), (1, 1)),
            dimension_numbers=('NCHW', 'OIHW', 'NCHW'))

    h = conv(jnp.maximum(bn(x_nchw), 0.0), raw['w1'], stride)
    h = conv(jnp.maximum(bn(h), 0.0), raw['w2'], 1)
    sc = conv(bn(x_nchw), raw['w_sc'], stride) if stride != 1 else x_nchw
    return h + sc


if __name__ == "__main__":
    key = jax.random.PRNGKey(0)
    k1, k2, k3, k4 = jax.random.split(key, 4)

    def run_case(kp, kx, in_planes, planes, stride, hw):
        raw = init_raw_params(kp, in_planes, planes, stride)
        packed = pack_params(raw, in_planes, planes, stride)
        x = jax.random.normal(kx, (2, in_planes, hw, hw), jnp.float32)
        fwd = jax.jit(make_preact_block_forward(in_planes, planes, stride))
        out = fwd(packed, x)
        jax.block_until_ready(out)
        ho = (hw - 1) // stride + 1
        assert out.shape == (2, planes, ho, ho), out.shape
        assert bool(jnp.all(jnp.isfinite(out)))
        ref = _reference_forward(raw, x, stride)
        rel = float(jnp.max(jnp.abs(out - ref) / (1.0 + jnp.abs(ref))))
        assert rel < 0.05, f"max relative err {rel}"   # bf16 MXU path vs f32 reference

    run_case(k1, k2, 32, 64, 2, 16)   # projection shortcut (stride 2, 32 -> 64 channels)
    run_case(k3, k4, 32, 32, 1, 16)   # identity shortcut   (stride 1, 32 -> 32 channels)
    print("KERNEL_OK")
</pallas_src>

<mosaic_0001>
module attributes {stable_mosaic.version = 11 : i64} {
  func.func @_bn_partial_kernel(%arg0: i32, %arg1: memref<512x128xf32, #tpu.memory_space<vmem>>, %arg2: memref<1x1x128xf32, #tpu.memory_space<vmem>>, %arg3: memref<1x1x128xf32, #tpu.memory_space<vmem>>) attributes {dimension_semantics = [#tpu.dimension_semantics<parallel>], iteration_bounds = array<i64: 1>, scalar_prefetch = 0 : i64, scratch_operands = 0 : i64, tpu.core_type = #tpu.core_type<tc>, window_params = [{transform_indices = @transform_0, window_bounds = array<i64: 512, 128>}, {transform_indices = @transform_1, window_bounds = array<i64: 1, 1, 128>}, {transform_indices = @transform_2, window_bounds = array<i64: 1, 1, 128>}]} {
    %c0 = arith.constant 0 : index
    %c0_0 = arith.constant 0 : index
    %0 = vector.load %arg1[%c0, %c0_0] : memref<512x128xf32, #tpu.memory_space<vmem>>, vector<512x128xf32>
    %cst = arith.constant dense<0.000000e+00> : vector<128xf32>
    %1 = vector.multi_reduction <add>, %0, %cst [0] : vector<512x128xf32> to vector<128xf32>
    %2 = vector.shape_cast %1 : vector<128xf32> to vector<1x128xf32>
    %c0_1 = arith.constant 0 : index
    %c0_2 = arith.constant 0 : index
    %c0_3 = arith.constant 0 : index
    %3 = vector.load %arg2[%c0_1, %c0_2, %c0_3] : memref<1x1x128xf32, #tpu.memory_space<vmem>>, vector<1x1x128xf32>
    %4 = vector.shape_cast %3 : vector<1x1x128xf32> to vector<1x128xf32>
    %5 = vector.shape_cast %2 : vector<1x128xf32> to vector<1x1x128xf32>
    tpu.vector_store %arg2[%c0_1, %c0_2, %c0_3], %5 {strides = array<i32>} : memref<1x1x128xf32, #tpu.memory_space<vmem>>, vector<1x1x128xf32>,
    %6 = arith.mulf %0, %0 : vector<512x128xf32>
    %cst_4 = arith.constant dense<0.000000e+00> : vector<128xf32>
    %7 = vector.multi_reduction <add>, %6, %cst_4 [0] : vector<512x128xf32> to vector<128xf32>
    %8 = vector.shape_cast %7 : vector<128xf32> to vector<1x128xf32>
    %c0_5 = arith.constant 0 : index
    %c0_6 = arith.constant 0 : index
    %c0_7 = arith.constant 0 : index
    %9 = vector.load %arg3[%c0_5, %c0_6, %c0_7] : memref<1x1x128xf32, #tpu.memory_space<vmem>>, vector<1x1x128xf32>
    %10 = vector.shape_cast %9 : vector<1x1x128xf32> to vector<1x128xf32>
    %11 = vector.shape_cast %8 : vector<1x128xf32> to vector<1x1x128xf32>
    tpu.vector_store %arg3[%c0_5, %c0_6, %c0_7], %11 {strides = array<i32>} : memref<1x1x128xf32, #tpu.memory_space<vmem>>, vector<1x1x128xf32>,
    return
  }
  func.func @transform_0(%arg0: i32) -> (i32, i32) {
    %c0_i32 = arith.constant 0 : i32
    %c0_i32_0 = arith.constant 0 : i32
    return %arg0, %c0_i32 : i32, i32
  }
  func.func @transform_1(%arg0: i32) -> (i32, i32, i32) {
    %c0_i32 = arith.constant 0 : i32
    %c0_i32_0 = arith.constant 0 : i32
    %c0_i32_1 = arith.constant 0 : i32
    return %arg0, %c0_i32, %c0_i32_0 : i32, i32, i32
  }
  func.func @transform_2(%arg0: i32) -> (i32, i32, i32) {
    %c0_i32 = arith.constant 0 : i32
    %c0_i32_0 = arith.constant 0 : i32
    %c0_i32_1 = arith.constant 0 : i32
    return %arg0, %c0_i32, %c0_i32_0 : i32, i32, i32
  }
}

module attributes {stable_mosaic.version = 11 : i64} {
  func.func @_conv_block_kernel(%arg0: i32, %arg1: memref<1x16x16x128xf32, #tpu.memory_space<vmem>>, %arg2: memref<1152x256xbf16, #tpu.memory_space<vmem>>, %arg3: memref<1x128xf32, #tpu.memory_space<vmem>>, %arg4: memref<1x128xf32, #tpu.memory_space<vmem>>, %arg5: memref<1x8x8x256xbf16, #tpu.memory_space<vmem>>, %arg6: memref<1x1x128xf32, #tpu.memory_space<vmem>>, %arg7: memref<1x1x128xf32, #tpu.memory_space<vmem>>, %arg8: memref<18x18x128xf32, #tpu.memory_space<vmem>>, %arg9: memref<64x1152xbf16, #tpu.memory_space<vmem>>) attributes {dimension_semantics = [#tpu.dimension_semantics<parallel>], iteration_bounds = array<i64: 2>, scalar_prefetch = 0 : i64, scratch_operands = 2 : i64, tpu.core_type = #tpu.core_type<tc>, window_params = [{transform_indices = @transform_0, window_bounds = array<i64: 1, 16, 16, 128>}, {pipeline_mode = #tpu.pipeline_mode<synchronous>, transform_indices = @transform_1, window_bounds = array<i64: 1152, 256>}, {pipeline_mode = #tpu.pipeline_mode<synchronous>, transform_indices = @transform_2, window_bounds = array<i64: 1, 128>}, {pipeline_mode = #tpu.pipeline_mode<synchronous>, transform_indices = @transform_3, window_bounds = array<i64: 1, 128>}, {transform_indices = @transform_4, window_bounds = array<i64: 1, 8, 8, 256>}, {transform_indices = @transform_5, window_bounds = array<i64: 1, 1, 128>}, {transform_indices = @transform_6, window_bounds = array<i64: 1, 1, 128>}]} {
    %c0 = arith.constant 0 : index
    %c0_0 = arith.constant 0 : index
    %0 = vector.load %arg3[%c0, %c0_0] : memref<1x128xf32, #tpu.memory_space<vmem>>, vector<1x128xf32>
    %1 = vector.shape_cast %0 : vector<1x128xf32> to vector<1x1x128xf32>
    %c0_1 = arith.constant 0 : index
    %c0_2 = arith.constant 0 : index
    %2 = vector.load %arg4[%c0_1, %c0_2] : memref<1x128xf32, #tpu.memory_space<vmem>>, vector<1x128xf32>
    %3 = vector.shape_cast %2 : vector<1x128xf32> to vector<1x1x128xf32>
    %c0_3 = arith.constant 0 : index
    %c0_4 = arith.constant 0 : index
    %c0_5 = arith.constant 0 : index
    %c0_6 = arith.constant 0 : index
    %4 = vector.load %arg1[%c0_3, %c0_4, %c0_5, %c0_6] : memref<1x16x16x128xf32, #tpu.memory_space<vmem>>, vector<1x16x16x128xf32>
    %5 = vector.shape_cast %4 : vector<1x16x16x128xf32> to vector<16x16x128xf32>
    %6 = vector.broadcast %1 : vector<1x1x128xf32> to vector<16x16x128xf32>
    %7 = arith.subf %5, %6 : vector<16x16x128xf32>
    %8 = vector.broadcast %3 : vector<1x1x128xf32> to vector<16x16x128xf32>
    %9 = arith.mulf %7, %8 : vector<16x16x128xf32>
    %cst = arith.constant 0.000000e+00 : f32
    %10 = vector.broadcast %cst : f32 to vector<18x18x128xf32>
    %c0_7 = arith.constant 0 : index
    %c0_8 = arith.constant 0 : index
    %c0_9 = arith.constant 0 : index
    %11 = vector.load %arg8[%c0_7, %c0_8, %c0_9] : memref<18x18x128xf32, #tpu.memory_space<vmem>>, vector<18x18x128xf32>
    tpu.vector_store %arg8[%c0_7, %c0_8, %c0_9], %10 {strides = array<i32>} : memref<18x18x128xf32, #tpu.memory_space<vmem>>, vector<18x18x128xf32>,
    %c1 = arith.constant 1 : index
    %c1_10 = arith.constant 1 : index
    %c0_11 = arith.constant 0 : index
    %12 = vector.load %arg8[%c1, %c1_10, %c0_11] : memref<18x18x128xf32, #tpu.memory_space<vmem>>, vector<16x16x128xf32>
    tpu.vector_store %arg8[%c1, %c1_10, %c0_11], %9 {strides = array<i32>} : memref<18x18x128xf32, #tpu.memory_space<vmem>>, vector<16x16x128xf32>,
    %c0_12 = arith.constant 0 : index
    %c0_13 = arith.constant 0 : index
    %c0_14 = arith.constant 0 : index
    %13 = tpu.strided_load %arg8[%c0_12, %c0_13, %c0_14] {strides = array<i32: 2, 2, 1>} : memref<18x18x128xf32, #tpu.memory_space<vmem>>, vector<8x8x128xf32>
    %14 = vector.shape_cast %13 : vector<8x8x128xf32> to vector<64x128xf32>
    %15 = arith.truncf %14 : vector<64x128xf32> to vector<64x128xbf16>
    %c0_15 = arith.constant 0 : index
    %c0_16 = arith.constant 0 : index
    %16 = vector.load %arg9[%c0_15, %c0_16] : memref<64x1152xbf16, #tpu.memory_space<vmem>>, vector<64x128xbf16>
    tpu.vector_store %arg9[%c0_15, %c0_16], %15 {strides = array<i32>} : memref<64x1152xbf16, #tpu.memory_space<vmem>>, vector<64x128xbf16>,
    %c0_17 = arith.constant 0 : index
    %c1_18 = arith.constant 1 : index
    %c0_19 = arith.constant 0 : index
    %17 = tpu.strided_load %arg8[%c0_17, %c1_18, %c0_19] {strides = array<i32: 2, 2, 1>} : memref<18x18x128xf32, #tpu.memory_space<vmem>>, vector<8x8x128xf32>
    %18 = vector.shape_cast %17 : vector<8x8x128xf32> to vector<64x128xf32>
    %19 = arith.truncf %18 : vector<64x128xf32> to vector<64x128xbf16>
    %c0_20 = arith.constant 0 : index
    %c128 = arith.constant 128 : index
    %20 = vector.load %arg9[%c0_20, %c128] : memref<64x1152xbf16, #tpu.memory_space<vmem>>, vector<64x128xbf16>
    tpu.vector_store %arg9[%c0_20, %c128], %19 {strides = array<i32>} : memref<64x1152xbf16, #tpu.memory_space<vmem>>, vector<64x128xbf16>,
    %c0_21 = arith.constant 0 : index
    %c2 = arith.constant 2 : index
    %c0_22 = arith.constant 0 : index
    %21 = tpu.strided_load %arg8[%c0_21, %c2, %c0_22] {strides = array<i32: 2, 2, 1>} : memref<18x18x128xf32, #tpu.memory_space<vmem>>, vector<8x8x128xf32>
    %22 = vector.shape_cast %21 : vector<8x8x128xf32> to vector<64x128xf32>
    %23 = arith.truncf %22 : vector<64x128xf32> to vector<64x128xbf16>
    %c0_23 = arith.constant 0 : index
    %c256 = arith.constant 256 : index
    %24 = vector.load %arg9[%c0_23, %c256] : memref<64x1152xbf16, #tpu.memory_space<vmem>>, vector<64x128xbf16>
    tpu.vector_store %arg9[%c0_23, %c256], %23 {strides = array<i32>} : memref<64x1152xbf16, #tpu.memory_space<vmem>>, vector<64x128xbf16>,
    %c1_24 = arith.constant 1 : index
    %c0_25 = arith.constant 0 : index
    %c0_26 = arith.constant 0 : index
    %25 = tpu.strided_load %arg8[%c1_24, %c0_25, %c0_26] {strides = array<i32: 2, 2, 1>} : memref<18x18x128xf32, #tpu.memory_space<vmem>>, vector<8x8x128xf32>
    %26 = vector.shape_cast %25 : vector<8x8x128xf32> to vector<64x128xf32>
    %27 = arith.truncf %26 : vector<64x128xf32> to vector<64x128xbf16>
    %c0_27 = arith.constant 0 : index
    %c384 = arith.constant 384 : index
    %28 = vector.load %arg9[%c0_27, %c384] : memref<64x1152xbf16, #tpu.memory_space<vmem>>, vector<64x128xbf16>
    tpu.vector_store %arg9[%c0_27, %c384], %27 {strides = array<i32>} : memref<64x1152xbf16, #tpu.memory_space<vmem>>, vector<64x128xbf16>,
    %c1_28 = arith.constant 1 : index
    %c1_29 = arith.constant 1 : index
    %c0_30 = arith.constant 0 : index
    %29 = tpu.strided_load %arg8[%c1_28, %c1_29, %c0_30] {strides = array<i32: 2, 2, 1>} : memref<18x18x128xf32, #tpu.memory_space<vmem>>, vector<8x8x128xf32>
    %30 = vector.shape_cast %29 : vector<8x8x128xf32> to vector<64x128xf32>
    %31 = arith.truncf %30 : vector<64x128xf32> to vector<64x128xbf16>
    %c0_31 = arith.constant 0 : index
    %c512 = arith.constant 512 : index
    %32 = vector.load %arg9[%c0_31, %c512] : memref<64x1152xbf16, #tpu.memory_space<vmem>>, vector<64x128xbf16>
    tpu.vector_store %arg9[%c0_31, %c512], %31 {strides = array<i32>} : memref<64x1152xbf16, #tpu.memory_space<vmem>>, vector<64x128xbf16>,
    %c1_32 = arith.constant 1 : index
    %c2_33 = arith.constant 2 : index
    %c0_34 = arith.constant 0 : index
    %33 = tpu.strided_load %arg8[%c1_32, %c2_33, %c0_34] {strides = array<i32: 2, 2, 1>} : memref<18x18x128xf32, #tpu.memory_space<vmem>>, vector<8x8x128xf32>
    %34 = vector.shape_cast %33 : vector<8x8x128xf32> to vector<64x128xf32>
    %35 = arith.truncf %34 : vector<64x128xf32> to vector<64x128xbf16>
    %c0_35 = arith.constant 0 : index
    %c640 = arith.constant 640 : index
    %36 = vector.load %arg9[%c0_35, %c640] : memref<64x1152xbf16, #tpu.memory_space<vmem>>, vector<64x128xbf16>
    tpu.vector_store %arg9[%c0_35, %c640], %35 {strides = array<i32>} : memref<64x1152xbf16, #tpu.memory_space<vmem>>, vector<64x128xbf16>,
    %c2_36 = arith.constant 2 : index
    %c0_37 = arith.constant 0 : index
    %c0_38 = arith.constant 0 : index
    %37 = tpu.strided_load %arg8[%c2_36, %c0_37, %c0_38] {strides = array<i32: 2, 2, 1>} : memref<18x18x128xf32, #tpu.memory_space<vmem>>, vector<8x8x128xf32>
    %38 = vector.shape_cast %37 : vector<8x8x128xf32> to vector<64x128xf32>
    %39 = arith.truncf %38 : vector<64x128xf32> to vector<64x128xbf16>
    %c0_39 = arith.constant 0 : index
    %c768 = arith.constant 768 : index
    %40 = vector.load %arg9[%c0_39, %c768] : memref<64x1152xbf16, #tpu.memory_space<vmem>>, vector<64x128xbf16>
    tpu.vector_store %arg9[%c0_39, %c768], %39 {strides = array<i32>} : memref<64x1152xbf16, #tpu.memory_space<vmem>>, vector<64x128xbf16>,
    %c2_40 = arith.constant 2 : index
    %c1_41 = arith.constant 1 : index
    %c0_42 = arith.constant 0 : index
    %41 = tpu.strided_load %arg8[%c2_40, %c1_41, %c0_42] {strides = array<i32: 2, 2, 1>} : memref<18x18x128xf32, #tpu.memory_space<vmem>>, vector<8x8x128xf32>
    %42 = vector.shape_cast %41 : vector<8x8x128xf32> to vector<64x128xf32>
    %43 = arith.truncf %42 : vector<64x128xf32> to vector<64x128xbf16>
    %c0_43 = arith.constant 0 : index
    %c896 = arith.constant 896 : index
    %44 = vector.load %arg9[%c0_43, %c896] : memref<64x1152xbf16, #tpu.memory_space<vmem>>, vector<64x128xbf16>
    tpu.vector_store %arg9[%c0_43, %c896], %43 {strides = array<i32>} : memref<64x1152xbf16, #tpu.memory_space<vmem>>, vector<64x128xbf16>,
    %c2_44 = arith.constant 2 : index
    %c2_45 = arith.constant 2 : index
    %c0_46 = arith.constant 0 : index
    %45 = tpu.strided_load %arg8[%c2_44, %c2_45, %c0_46] {strides = array<i32: 2, 2, 1>} : memref<18x18x128xf32, #tpu.memory_space<vmem>>, vector<8x8x128xf32>
    %46 = vector.shape_cast %45 : vector<8x8x128xf32> to vector<64x128xf32>
    %47 = arith.truncf %46 : vector<64x128xf32> to vector<64x128xbf16>
    %c0_47 = arith.constant 0 : index
    %c1024 = arith.constant 1024 : index
    %48 = vector.load %arg9[%c0_47, %c1024] : memref<64x1152xbf16, #tpu.memory_space<vmem>>, vector<64x128xbf16>
    tpu.vector_store %arg9[%c0_47, %c1024], %47 {strides = array<i32>} : memref<64x1152xbf16, #tpu.memory_space<vmem>>, vector<64x128xbf16>,
    %c0_48 = arith.constant 0 : index
    %c0_49 = arith.constant 0 : index
    %49 = vector.load %arg9[%c0_48, %c0_49] : memref<64x1152xbf16, #tpu.memory_space<vmem>>, vector<64x1152xbf16>
    %c0_50 = arith.constant 0 : index
    %c128_51 = arith.constant 128 : index
    %50 = vector.load %arg2[%c0_50, %c128_51] : memref<1152x256xbf16, #tpu.memory_space<vmem>>, vector<1152x128xbf16>
    %cst_52 = arith.constant dense<0.000000e+00> : vector<64x128xf32>
    %51 = tpu.matmul %49, %50, %cst_52 {dimension_numbers = #tpu.dot_dimension_numbers<[1], [0], [0], [1], [0, 0, 1, 1], [], []>} : vector<64x1152xbf16>, vector<1152x128xbf16>, vector<64x128xf32> -> vector<64x128xf32>
    %cst_53 = arith.constant 0.000000e+00 : bf16
    %52 = vector.broadcast %cst_53 : bf16 to vector<64x1152xbf16>
    %53 = arith.maximumf %49, %52 : vector<64x1152xbf16>
    %c0_54 = arith.constant 0 : index
    %c0_55 = arith.constant 0 : index
    %54 = vector.load %arg2[%c0_54, %c0_55] : memref<1152x256xbf16, #tpu.memory_space<vmem>>, vector<1152x128xbf16>
    %cst_56 = arith.constant dense<0.000000e+00> : vector<64x128xf32>
    %55 = tpu.matmul %53, %54, %cst_56 {dimension_numbers = #tpu.dot_dimension_numbers<[1], [0], [0], [1], [0, 0, 1, 1], [], []>} : vector<64x1152xbf16>, vector<1152x128xbf16>, vector<64x128xf32> -> vector<64x128xf32>
    %cst_57 = arith.constant dense<0.000000e+00> : vector<128xf32>
    %56 = vector.multi_reduction <add>, %55, %cst_57 [0] : vector<64x128xf32> to vector<128xf32>
    %57 = vector.shape_cast %56 : vector<128xf32> to vector<1x128xf32>
    %c0_58 = arith.constant 0 : index
    %c0_59 = arith.constant 0 : index
    %c0_60 = arith.constant 0 : index
    %58 = vector.load %arg6[%c0_58, %c0_59, %c0_60] : memref<1x1x128xf32, #tpu.memory_space<vmem>>, vector<1x1x128xf32>
    %59 = vector.shape_cast %58 : vector<1x1x128xf32> to vector<1x128xf32>
    %60 = vector.shape_cast %57 : vector<1x128xf32> to vector<1x1x128xf32>
    tpu.vector_store %arg6[%c0_58, %c0_59, %c0_60], %60 {strides = array<i32>} : memref<1x1x128xf32, #tpu.memory_space<vmem>>, vector<1x1x128xf32>,
    %61 = arith.mulf %55, %55 : vector<64x128xf32>
    %cst_61 = arith.constant dense<0.000000e+00> : vector<128xf32>
    %62 = vector.multi_reduction <add>, %61, %cst_61 [0] : vector<64x128xf32> to vector<128xf32>
    %63 = vector.shape_cast %62 : vector<128xf32> to vector<1x128xf32>
    %c0_62 = arith.constant 0 : index
    %c0_63 = arith.constant 0 : index
    %c0_64 = arith.constant 0 : index
    %64 = vector.load %arg7[%c0_62, %c0_63, %c0_64] : memref<1x1x128xf32, #tpu.memory_space<vmem>>, vector<1x1x128xf32>
    %65 = vector.shape_cast %64 : vector<1x1x128xf32> to vector<1x128xf32>
    %66 = vector.shape_cast %63 : vector<1x128xf32> to vector<1x1x128xf32>
    tpu.vector_store %arg7[%c0_62, %c0_63, %c0_64], %66 {strides = array<i32>} : memref<1x1x128xf32, #tpu.memory_space<vmem>>, vector<1x1x128xf32>,
    %67 = vector.shape_cast %55 : vector<64x128xf32> to vector<8x8x128xf32>
    %68 = arith.truncf %67 : vector<8x8x128xf32> to vector<8x8x128xbf16>
    %c0_65 = arith.constant 0 : index
    %c0_66 = arith.constant 0 : index
    %c0_67 = arith.constant 0 : index
    %c0_68 = arith.constant 0 : index
    %69 = vector.load %arg5[%c0_65, %c0_66, %c0_67, %c0_68] : memref<1x8x8x256xbf16, #tpu.memory_space<vmem>>, vector<1x8x8x128xbf16>
    %70 = vector.shape_cast %69 : vector<1x8x8x128xbf16> to vector<8x8x128xbf16>
    %71 = vector.shape_cast %68 : vector<8x8x128xbf16> to vector<1x8x8x128xbf16>
    tpu.vector_store %arg5[%c0_65, %c0_66, %c0_67, %c0_68], %71 {strides = array<i32>} : memref<1x8x8x256xbf16, #tpu.memory_space<vmem>>, vector<1x8x8x128xbf16>,
    %72 = vector.shape_cast %51 : vector<64x128xf32> to vector<8x8x128xf32>
    %73 = arith.truncf %72 : vector<8x8x128xf32> to vector<8x8x128xbf16>
    %c0_69 = arith.constant 0 : index
    %c0_70 = arith.constant 0 : index
    %c0_71 = arith.constant 0 : index
    %c128_72 = arith.constant 128 : index
    %74 = vector.load %arg5[%c0_69, %c0_70, %c0_71, %c128_72] : memref<1x8x8x256xbf16, #tpu.memory_space<vmem>>, vector<1x8x8x128xbf16>
    %75 = vector.shape_cast %74 : vector<1x8x8x128xbf16> to vector<8x8x128xbf16>
    %76 = vector.shape_cast %73 : vector<8x8x128xbf16> to vector<1x8x8x128xbf16>
    tpu.vector_store %arg5[%c0_69, %c0_70, %c0_71, %c128_72], %76 {strides = array<i32>} : memref<1x8x8x256xbf16, #tpu.memory_space<vmem>>, vector<1x8x8x128xbf16>,
    return
  }
  func.func @transform_0(%arg0: i32) -> (i32, i32, i32, i32) {
    %c0_i32 = arith.constant 0 : i32
    %c0_i32_0 = arith.constant 0 : i32
    %c0_i32_1 = arith.constant 0 : i32
    %c0_i32_2 = arith.constant 0 : i32
    return %arg0, %c0_i32, %c0_i32_0, %c0_i32_1 : i32, i32, i32, i32
  }
  func.func @transform_1(%arg0: i32) -> (i32, i32) {
    %c0_i32 = arith.constant 0 : i32
    %c0_i32_0 = arith.constant 0 : i32
    %c0_i32_1 = arith.constant 0 : i32
    return %c0_i32, %c0_i32_0 : i32, i32
  }
  func.func @transform_2(%arg0: i32) -> (i32, i32) {
    %c0_i32 = arith.constant 0 : i32
    %c0_i32_0 = arith.constant 0 : i32
    %c0_i32_1 = arith.constant 0 : i32
    return %c0_i32, %c0_i32_0 : i32, i32
  }
  func.func @transform_3(%arg0: i32) -> (i32, i32) {
    %c0_i32 = arith.constant 0 : i32
    %c0_i32_0 = arith.constant 0 : i32
    %c0_i32_1 = arith.constant 0 : i32
    return %c0_i32, %c0_i32_0 : i32, i32
  }
  func.func @transform_4(%arg0: i32) -> (i32, i32, i32, i32) {
    %c0_i32 = arith.constant 0 : i32
    %c0_i32_0 = arith.constant 0 : i32
    %c0_i32_1 = arith.constant 0 : i32
    %c0_i32_2 = arith.constant 0 : i32
    return %arg0, %c0_i32, %c0_i32_0, %c0_i32_1 : i32, i32, i32, i32
  }
  func.func @transform_5(%arg0: i32) -> (i32, i32, i32) {
    %c0_i32 = arith.constant 0 : i32
    %c0_i32_0 = arith.constant 0 : i32
    %c0_i32_1 = arith.constant 0 : i32
    return %arg0, %c0_i32, %c0_i32_0 : i32, i32, i32
  }
  func.func @transform_6(%arg0: i32) -> (i32, i32, i32) {
    %c0_i32 = arith.constant 0 : i32
    %c0_i32_0 = arith.constant 0 : i32
    %c0_i32_1 = arith.constant 0 : i32
    return %arg0, %c0_i32, %c0_i32_0 : i32, i32, i32
  }
}

module attributes {stable_mosaic.version = 11 : i64} {
  func.func @_conv_block_kernel(%arg0: i32, %arg1: memref<1x8x8x128xbf16, #tpu.memory_space<vmem>>, %arg2: memref<1152x128xbf16, #tpu.memory_space<vmem>>, %arg3: memref<1x128xf32, #tpu.memory_space<vmem>>, %arg4: memref<1x128xf32, #tpu.memory_space<vmem>>, %arg5: memref<1x8x8x128xbf16, #tpu.memory_space<vmem>>, %arg6: memref<1x8x8x128xf32, #tpu.memory_space<vmem>>, %arg7: memref<10x10x128xf32, #tpu.memory_space<vmem>>, %arg8: memref<64x1152xbf16, #tpu.memory_space<vmem>>) attributes {dimension_semantics = [#tpu.dimension_semantics<parallel>], iteration_bounds = array<i64: 2>, scalar_prefetch = 0 : i64, scratch_operands = 2 : i64, tpu.core_type = #tpu.core_type<tc>, window_params = [{transform_indices = @transform_0, window_bounds = array<i64: 1, 8, 8, 128>}, {pipeline_mode = #tpu.pipeline_mode<synchronous>, transform_indices = @transform_1, window_bounds = array<i64: 1152, 128>}, {pipeline_mode = #tpu.pipeline_mode<synchronous>, transform_indices = @transform_2, window_bounds = array<i64: 1, 128>}, {pipeline_mode = #tpu.pipeline_mode<synchronous>, transform_indices = @transform_3, window_bounds = array<i64: 1, 128>}, {transform_indices = @transform_4, window_bounds = array<i64: 1, 8, 8, 128>}, {transform_indices = @transform_5, window_bounds = array<i64: 1, 8, 8, 128>}]} {
    %c0 = arith.constant 0 : index
    %c0_0 = arith.constant 0 : index
    %0 = vector.load %arg3[%c0, %c0_0] : memref<1x128xf32, #tpu.memory_space<vmem>>, vector<1x128xf32>
    %1 = vector.shape_cast %0 : vector<1x128xf32> to vector<1x1x128xf32>
    %c0_1 = arith.constant 0 : index
    %c0_2 = arith.constant 0 : index
    %2 = vector.load %arg4[%c0_1, %c0_2] : memref<1x128xf32, #tpu.memory_space<vmem>>, vector<1x128xf32>
    %3 = vector.shape_cast %2 : vector<1x128xf32> to vector<1x1x128xf32>
    %c0_3 = arith.constant 0 : index
    %c0_4 = arith.constant 0 : index
    %c0_5 = arith.constant 0 : index
    %c0_6 = arith.constant 0 : index
    %4 = vector.load %arg1[%c0_3, %c0_4, %c0_5, %c0_6] : memref<1x8x8x128xbf16, #tpu.memory_space<vmem>>, vector<1x8x8x128xbf16>
    %5 = vector.shape_cast %4 : vector<1x8x8x128xbf16> to vector<8x8x128xbf16>
    %6 = arith.extf %5 : vector<8x8x128xbf16> to vector<8x8x128xf32>
    %7 = vector.broadcast %1 : vector<1x1x128xf32> to vector<8x8x128xf32>
    %8 = arith.subf %6, %7 : vector<8x8x128xf32>
    %9 = vector.broadcast %3 : vector<1x1x128xf32> to vector<8x8x128xf32>
    %10 = arith.mulf %8, %9 : vector<8x8x128xf32>
    %cst = arith.constant 0.000000e+00 : f32
    %11 = vector.broadcast %cst : f32 to vector<8x8x128xf32>
    %12 = arith.maximumf %10, %11 : vector<8x8x128xf32>
    %cst_7 = arith.constant 0.000000e+00 : f32
    %13 = vector.broadcast %cst_7 : f32 to vector<10x10x128xf32>
    %c0_8 = arith.constant 0 : index
    %c0_9 = arith.constant 0 : index
    %c0_10 = arith.constant 0 : index
    %14 = vector.load %arg7[%c0_8, %c0_9, %c0_10] : memref<10x10x128xf32, #tpu.memory_space<vmem>>, vector<10x10x128xf32>
    tpu.vector_store %arg7[%c0_8, %c0_9, %c0_10], %13 {strides = array<i32>} : memref<10x10x128xf32, #tpu.memory_space<vmem>>, vector<10x10x128xf32>,
    %c1 = arith.constant 1 : index
    %c1_11 = arith.constant 1 : index
    %c0_12 = arith.constant 0 : index
    %15 = vector.load %arg7[%c1, %c1_11, %c0_12] : memref<10x10x128xf32, #tpu.memory_space<vmem>>, vector<8x8x128xf32>
    tpu.vector_store %arg7[%c1, %c1_11, %c0_12], %12 {strides = array<i32>} : memref<10x10x128xf32, #tpu.memory_space<vmem>>, vector<8x8x128xf32>,
    %c0_13 = arith.constant 0 : index
    %c0_14 = arith.constant 0 : index
    %c0_15 = arith.constant 0 : index
    %16 = vector.load %arg7[%c0_13, %c0_14, %c0_15] : memref<10x10x128xf32, #tpu.memory_space<vmem>>, vector<8x8x128xf32>
    %17 = vector.shape_cast %16 : vector<8x8x128xf32> to vector<64x128xf32>
    %18 = arith.truncf %17 : vector<64x128xf32> to vector<64x128xbf16>
    %c0_16 = arith.constant 0 : index
    %c0_17 = arith.constant 0 : index
    %19 = vector.load %arg8[%c0_16, %c0_17] : memref<64x1152xbf16, #tpu.memory_space<vmem>>, vector<64x128xbf16>
    tpu.vector_store %arg8[%c0_16, %c0_17], %18 {strides = array<i32>} : memref<64x1152xbf16, #tpu.memory_space<vmem>>, vector<64x128xbf16>,
    %c0_18 = arith.constant 0 : index
    %c1_19 = arith.constant 1 : index
    %c0_20 = arith.constant 0 : index
    %20 = vector.load %arg7[%c0_18, %c1_19, %c0_20] : memref<10x10x128xf32, #tpu.memory_space<vmem>>, vector<8x8x128xf32>
    %21 = vector.shape_cast %20 : vector<8x8x128xf32> to vector<64x128xf32>
    %22 = arith.truncf %21 : vector<64x128xf32> to vector<64x128xbf16>
    %c0_21 = arith.constant 0 : index
    %c128 = arith.constant 128 : index
    %23 = vector.load %arg8[%c0_21, %c128] : memref<64x1152xbf16, #tpu.memory_space<vmem>>, vector<64x128xbf16>
    tpu.vector_store %arg8[%c0_21, %c128], %22 {strides = array<i32>} : memref<64x1152xbf16, #tpu.memory_space<vmem>>, vector<64x128xbf16>,
    %c0_22 = arith.constant 0 : index
    %c2 = arith.constant 2 : index
    %c0_23 = arith.constant 0 : index
    %24 = vector.load %arg7[%c0_22, %c2, %c0_23] : memref<10x10x128xf32, #tpu.memory_space<vmem>>, vector<8x8x128xf32>
    %25 = vector.shape_cast %24 : vector<8x8x128xf32> to vector<64x128xf32>
    %26 = arith.truncf %25 : vector<64x128xf32> to vector<64x128xbf16>
    %c0_24 = arith.constant 0 : index
    %c256 = arith.constant 256 : index
    %27 = vector.load %arg8[%c0_24, %c256] : memref<64x1152xbf16, #tpu.memory_space<vmem>>, vector<64x128xbf16>
    tpu.vector_store %arg8[%c0_24, %c256], %26 {strides = array<i32>} : memref<64x1152xbf16, #tpu.memory_space<vmem>>, vector<64x128xbf16>,
    %c1_25 = arith.constant 1 : index
    %c0_26 = arith.constant 0 : index
    %c0_27 = arith.constant 0 : index
    %28 = vector.load %arg7[%c1_25, %c0_26, %c0_27] : memref<10x10x128xf32, #tpu.memory_space<vmem>>, vector<8x8x128xf32>
    %29 = vector.shape_cast %28 : vector<8x8x128xf32> to vector<64x128xf32>
    %30 = arith.truncf %29 : vector<64x128xf32> to vector<64x128xbf16>
    %c0_28 = arith.constant 0 : index
    %c384 = arith.constant 384 : index
    %31 = vector.load %arg8[%c0_28, %c384] : memref<64x1152xbf16, #tpu.memory_space<vmem>>, vector<64x128xbf16>
    tpu.vector_store %arg8[%c0_28, %c384], %30 {strides = array<i32>} : memref<64x1152xbf16, #tpu.memory_space<vmem>>, vector<64x128xbf16>,
    %c1_29 = arith.constant 1 : index
    %c1_30 = arith.constant 1 : index
    %c0_31 = arith.constant 0 : index
    %32 = vector.load %arg7[%c1_29, %c1_30, %c0_31] : memref<10x10x128xf32, #tpu.memory_space<vmem>>, vector<8x8x128xf32>
    %33 = vector.shape_cast %32 : vector<8x8x128xf32> to vector<64x128xf32>
    %34 = arith.truncf %33 : vector<64x128xf32> to vector<64x128xbf16>
    %c0_32 = arith.constant 0 : index
    %c512 = arith.constant 512 : index
    %35 = vector.load %arg8[%c0_32, %c512] : memref<64x1152xbf16, #tpu.memory_space<vmem>>, vector<64x128xbf16>
    tpu.vector_store %arg8[%c0_32, %c512], %34 {strides = array<i32>} : memref<64x1152xbf16, #tpu.memory_space<vmem>>, vector<64x128xbf16>,
    %c1_33 = arith.constant 1 : index
    %c2_34 = arith.constant 2 : index
    %c0_35 = arith.constant 0 : index
    %36 = vector.load %arg7[%c1_33, %c2_34, %c0_35] : memref<10x10x128xf32, #tpu.memory_space<vmem>>, vector<8x8x128xf32>
    %37 = vector.shape_cast %36 : vector<8x8x128xf32> to vector<64x128xf32>
    %38 = arith.truncf %37 : vector<64x128xf32> to vector<64x128xbf16>
    %c0_36 = arith.constant 0 : index
    %c640 = arith.constant 640 : index
    %39 = vector.load %arg8[%c0_36, %c640] : memref<64x1152xbf16, #tpu.memory_space<vmem>>, vector<64x128xbf16>
    tpu.vector_store %arg8[%c0_36, %c640], %38 {strides = array<i32>} : memref<64x1152xbf16, #tpu.memory_space<vmem>>, vector<64x128xbf16>,
    %c2_37 = arith.constant 2 : index
    %c0_38 = arith.constant 0 : index
    %c0_39 = arith.constant 0 : index
    %40 = vector.load %arg7[%c2_37, %c0_38, %c0_39] : memref<10x10x128xf32, #tpu.memory_space<vmem>>, vector<8x8x128xf32>
    %41 = vector.shape_cast %40 : vector<8x8x128xf32> to vector<64x128xf32>
    %42 = arith.truncf %41 : vector<64x128xf32> to vector<64x128xbf16>
    %c0_40 = arith.constant 0 : index
    %c768 = arith.constant 768 : index
    %43 = vector.load %arg8[%c0_40, %c768] : memref<64x1152xbf16, #tpu.memory_space<vmem>>, vector<64x128xbf16>
    tpu.vector_store %arg8[%c0_40, %c768], %42 {strides = array<i32>} : memref<64x1152xbf16, #tpu.memory_space<vmem>>, vector<64x128xbf16>,
    %c2_41 = arith.constant 2 : index
    %c1_42 = arith.constant 1 : index
    %c0_43 = arith.constant 0 : index
    %44 = vector.load %arg7[%c2_41, %c1_42, %c0_43] : memref<10x10x128xf32, #tpu.memory_space<vmem>>, vector<8x8x128xf32>
    %45 = vector.shape_cast %44 : vector<8x8x128xf32> to vector<64x128xf32>
    %46 = arith.truncf %45 : vector<64x128xf32> to vector<64x128xbf16>
    %c0_44 = arith.constant 0 : index
    %c896 = arith.constant 896 : index
    %47 = vector.load %arg8[%c0_44, %c896] : memref<64x1152xbf16, #tpu.memory_space<vmem>>, vector<64x128xbf16>
    tpu.vector_store %arg8[%c0_44, %c896], %46 {strides = array<i32>} : memref<64x1152xbf16, #tpu.memory_space<vmem>>, vector<64x128xbf16>,
    %c2_45 = arith.constant 2 : index
    %c2_46 = arith.constant 2 : index
    %c0_47 = arith.constant 0 : index
    %48 = vector.load %arg7[%c2_45, %c2_46, %c0_47] : memref<10x10x128xf32, #tpu.memory_space<vmem>>, vector<8x8x128xf32>
    %49 = vector.shape_cast %48 : vector<8x8x128xf32> to vector<64x128xf32>
    %50 = arith.truncf %49 : vector<64x128xf32> to vector<64x128xbf16>
    %c0_48 = arith.constant 0 : index
    %c1024 = arith.constant 1024 : index
    %51 = vector.load %arg8[%c0_48, %c1024] : memref<64x1152xbf16, #tpu.memory_space<vmem>>, vector<64x128xbf16>
    tpu.vector_store %arg8[%c0_48, %c1024], %50 {strides = array<i32>} : memref<64x1152xbf16, #tpu.memory_space<vmem>>, vector<64x128xbf16>,
    %c0_49 = arith.constant 0 : index
    %c0_50 = arith.constant 0 : index
    %52 = vector.load %arg8[%c0_49, %c0_50] : memref<64x1152xbf16, #tpu.memory_space<vmem>>, vector<64x1152xbf16>
    %c0_51 = arith.constant 0 : index
    %c0_52 = arith.constant 0 : index
    %53 = vector.load %arg2[%c0_51, %c0_52] : memref<1152x128xbf16, #tpu.memory_space<vmem>>, vector<1152x128xbf16>
    %cst_53 = arith.constant dense<0.000000e+00> : vector<64x128xf32>
    %54 = tpu.matmul %52, %53, %cst_53 {dimension_numbers = #tpu.dot_dimension_numbers<[1], [0], [0], [1], [0, 0, 1, 1], [], []>} : vector<64x1152xbf16>, vector<1152x128xbf16>, vector<64x128xf32> -> vector<64x128xf32>
    %55 = vector.shape_cast %54 : vector<64x128xf32> to vector<8x8x128xf32>
    %c0_54 = arith.constant 0 : index
    %c0_55 = arith.constant 0 : index
    %c0_56 = arith.constant 0 : index
    %c0_57 = arith.constant 0 : index
    %56 = vector.load %arg5[%c0_54, %c0_55, %c0_56, %c0_57] : memref<1x8x8x128xbf16, #tpu.memory_space<vmem>>, vector<1x8x8x128xbf16>
    %57 = vector.shape_cast %56 : vector<1x8x8x128xbf16> to vector<8x8x128xbf16>
    %58 = arith.extf %57 : vector<8x8x128xbf16> to vector<8x8x128xf32>
    %59 = arith.addf %55, %58 : vector<8x8x128xf32>
    %c0_58 = arith.constant 0 : index
    %c0_59 = arith.constant 0 : index
    %c0_60 = arith.constant 0 : index
    %c0_61 = arith.constant 0 : index
    %60 = vector.load %arg6[%c0_58, %c0_59, %c0_60, %c0_61] : memref<1x8x8x128xf32, #tpu.memory_space<vmem>>, vector<1x8x8x128xf32>
    %61 = vector.shape_cast %60 : vector<1x8x8x128xf32> to vector<8x8x128xf32>
    %62 = vector.shape_cast %59 : vector<8x8x128xf32> to vector<1x8x8x128xf32>
    tpu.vector_store %arg6[%c0_58, %c0_59, %c0_60, %c0_61], %62 {strides = array<i32>} : memref<1x8x8x128xf32, #tpu.memory_space<vmem>>, vector<1x8x8x128xf32>,
    return
  }
  func.func @transform_0(%arg0: i32) -> (i32, i32, i32, i32) {
    %c0_i32 = arith.constant 0 : i32
    %c0_i32_0 = arith.constant 0 : i32
    %c0_i32_1 = arith.constant 0 : i32
    %c0_i32_2 = arith.constant 0 : i32
    return %arg0, %c0_i32, %c0_i32_0, %c0_i32_1 : i32, i32, i32, i32
  }
  func.func @transform_1(%arg0: i32) -> (i32, i32) {
    %c0_i32 = arith.constant 0 : i32
    %c0_i32_0 = arith.constant 0 : i32
    %c0_i32_1 = arith.constant 0 : i32
    return %c0_i32, %c0_i32_0 : i32, i32
  }
  func.func @transform_2(%arg0: i32) -> (i32, i32) {
    %c0_i32 = arith.constant 0 : i32
    %c0_i32_0 = arith.constant 0 : i32
    %c0_i32_1 = arith.constant 0 : i32
    return %c0_i32, %c0_i32_0 : i32, i32
  }
  func.func @transform_3(%arg0: i32) -> (i32, i32) {
    %c0_i32 = arith.constant 0 : i32
    %c0_i32_0 = arith.constant 0 : i32
    %c0_i32_1 = arith.constant 0 : i32
    return %c0_i32, %c0_i32_0 : i32, i32
  }
  func.func @transform_4(%arg0: i32) -> (i32, i32, i32, i32) {
    %c0_i32 = arith.constant 0 : i32
    %c0_i32_0 = arith.constant 0 : i32
    %c1_i32 = arith.constant 1 : i32
    %c0_i32_1 = arith.constant 0 : i32
    return %arg0, %c0_i32, %c0_i32_0, %c1_i32 : i32, i32, i32, i32
  }
  func.func @transform_5(%arg0: i32) -> (i32, i32, i32, i32) {
    %c0_i32 = arith.constant 0 : i32
    %c0_i32_0 = arith.constant 0 : i32
    %c0_i32_1 = arith.constant 0 : i32
    %c0_i32_2 = arith.constant 0 : i32
    return %arg0, %c0_i32, %c0_i32_0, %c0_i32_1 : i32, i32, i32, i32
  }
}

</mosaic_0001>

<bundles_post_ra>
// kernel: forward.3
= control target key start
LH: loop header
LB: loop body
LE: loop exit
PB: predicated region body
PF: predicated region fallthrough
CT: control target
= control target key end

     0   :  { %s499_s0 = inlined_call_operand.vmem [shape: f32[512,128], index: 0, kind: input, shape index: {}]   ;;  %s500_s1 = inlined_call_operand.vmem [shape: f32[1,1,128], index: 1, kind: output, shape index: {0}]   ;;  %s501_s2 = inlined_call_operand.vmem [shape: f32[1,1,128], index: 2, kind: output, shape index: {1}]  }
   0x1   :  { %v10_v0 = vld [vmem:[%s499_s0] sm:$0xff]  ;;  %v11_v1 = vld [vmem:[%s499_s0 + $0x8] sm:$0xff]  ;;  %v12_v2 = vld [vmem:[%s499_s0 + $0x10] sm:$0xff] }
   0x2   :  { %v13_v3 = vld [vmem:[%s499_s0 + $0x18] sm:$0xff]  ;;  %v74_v4 = vadd.f32 %v11_v1, %v10_v0  ;;  %v144_v5 = vmul.f32 %v10_v0, %v10_v0  ;;  %v145_v6 = vmul.f32 %v11_v1, %v11_v1  ;;  %v146_v7 = vmul.f32 %v12_v2, %v12_v2  ;;  %v14_v8 = vld [vmem:[%s499_s0 + $0x20] sm:$0xff]  ;;  %v15_v12 = vld [vmem:[%s499_s0 + $0x28] sm:$0xff] }
   0x3   :  { %v147_v10 = vmul.f32 %v13_v3, %v13_v3  ;;  %v148_v14 = vmul.f32 %v14_v8, %v14_v8  ;;  %v16_v16 = vld [vmem:[%s499_s0 + $0x30] sm:$0xff]  ;;  %v149_v18 = vmul.f32 %v15_v12, %v15_v12  ;;  %v17_v20 = vld [vmem:[%s499_s0 + $0x38] sm:$0xff]  ;;  %v18_v24 = vld [vmem:[%s499_s0 + $0x40] sm:$0xff] }
   0x4   :  { %v75_v9 = vadd.f32 %v74_v4, %v12_v2  ;;  %v208_v11 = vadd.f32 %v145_v6, %v144_v5  ;;  %v150_v22 = vmul.f32 %v16_v16, %v16_v16  ;;  %v151_v26 = vmul.f32 %v17_v20, %v17_v20  ;;  %v19_v28 = vld [vmem:[%s499_s0 + $0x48] sm:$0xff]  ;;  %v20_v32 = vld [vmem:[%s499_s0 + $0x50] sm:$0xff]  ;;  %v21_v36 = vld [vmem:[%s499_s0 + $0x58] sm:$0xff] }
   0x5   :  { %v152_v30 = vmul.f32 %v18_v24, %v18_v24  ;;  %v153_v34 = vmul.f32 %v19_v28, %v19_v28  ;;  %v154_v38 = vmul.f32 %v20_v32, %v20_v32  ;;  %v22_v40 = vld [vmem:[%s499_s0 + $0x60] sm:$0xff]  ;;  %v155_v42 = vmul.f32 %v21_v36, %v21_v36  ;;  %v23_v44 = vld [vmem:[%s499_s0 + $0x68] sm:$0xff]  ;;  %v24_v48 = vld [vmem:[%s499_s0 + $0x70] sm:$0xff] }
   0x6   :  { %v76_v13 = vadd.f32 %v75_v9, %v13_v3  ;;  %v209_v15 = vadd.f32 %v208_v11, %v146_v7  ;;  %v156_v46 = vmul.f32 %v22_v40, %v22_v40  ;;  %v157_v50 = vmul.f32 %v23_v44, %v23_v44  ;;  %v25_v52 = vld [vmem:[%s499_s0 + $0x78] sm:$0xff]  ;;  %v26_v56 = vld [vmem:[%s499_s0 + $0x80] sm:$0xff]  ;;  %v27_v60 = vld [vmem:[%s499_s0 + $0x88] sm:$0xff] }
   0x7   :  { %v158_v54 = vmul.f32 %v24_v48, %v24_v48  ;;  %v159_v58 = vmul.f32 %v25_v52, %v25_v52  ;;  %v160_v62 = vmul.f32 %v26_v56, %v26_v56  ;;  %v28_v0 = vld [vmem:[%s499_s0 + $0x90] sm:$0xff]  ;;  %v161_v2 = vmul.f32 %v27_v60, %v27_v60  ;;  %v29_v4 = vld [vmem:[%s499_s0 + $0x98] sm:$0xff] }
   0x8   :  { %v77_v17 = vadd.f32 %v76_v13, %v14_v8  ;;  %v210_v19 = vadd.f32 %v209_v15, %v147_v10  ;;  %v162_v6 = vmul.f32 %v28_v0, %v28_v0  ;;  %v30_v8 = vld [vmem:[%s499_s0 + $0xa0] sm:$0xff]  ;;  %v163_v10 = vmul.f32 %v29_v4, %v29_v4 }
   0xa   :  { %v78_v21 = vadd.f32 %v77_v17, %v15_v12  ;;  %v211_v23 = vadd.f32 %v210_v19, %v148_v14  ;;  %v31_v12 = vld [vmem:[%s499_s0 + $0xa8] sm:$0xff]  ;;  %v164_v14 = vmul.f32 %v30_v8, %v30_v8 }
   0xc   :  { %v79_v25 = vadd.f32 %v78_v21, %v16_v16  ;;  %v212_v27 = vadd.f32 %v211_v23, %v149_v18  ;;  %v32_v16 = vld [vmem:[%s499_s0 + $0xb0] sm:$0xff]  ;;  %v165_v18 = vmul.f32 %v31_v12, %v31_v12 }
   0xe   :  { %v80_v29 = vadd.f32 %v79_v25, %v17_v20  ;;  %v213_v31 = vadd.f32 %v212_v27, %v150_v22  ;;  %v33_v20 = vld [vmem:[%s499_s0 + $0xb8] sm:$0xff]  ;;  %v166_v22 = vmul.f32 %v32_v16, %v32_v16 }
  0x10   :  { %v81_v33 = vadd.f32 %v80_v29, %v18_v24  ;;  %v214_v35 = vadd.f32 %v213_v31, %v151_v26  ;;  %v34_v24 = vld [vmem:[%s499_s0 + $0xc0] sm:$0xff]  ;;  %v167_v26 = vmul.f32 %v33_v20, %v33_v20 }
  0x12   :  { %v82_v37 = vadd.f32 %v81_v33, %v19_v28  ;;  %v215_v39 = vadd.f32 %v214_v35, %v152_v30  ;;  %v35_v28 = vld [vmem:[%s499_s0 + $0xc8] sm:$0xff]  ;;  %v168_v30 = vmul.f32 %v34_v24, %v34_v24 }
  0x14   :  { %v83_v41 = vadd.f32 %v82_v37, %v20_v32  ;;  %v216_v43 = vadd.f32 %v215_v39, %v153_v34  ;;  %v36_v32 = vld [vmem:[%s499_s0 + $0xd0] sm:$0xff]  ;;  %v169_v34 = vmul.f32 %v35_v28, %v35_v28 }
  0x16   :  { %v84_v45 = vadd.f32 %v83_v41, %v21_v36  ;;  %v217_v47 = vadd.f32 %v216_v43, %v154_v38  ;;  %v37_v36 = vld [vmem:[%s499_s0 + $0xd8] sm:$0xff]  ;;  %v170_v38 = vmul.f32 %v36_v32, %v36_v32 }
  0x18   :  { %v85_v49 = vadd.f32 %v84_v45, %v22_v40  ;;  %v218_v51 = vadd.f32 %v217_v47, %v155_v42  ;;  %v38_v40 = vld [vmem:[%s499_s0 + $0xe0] sm:$0xff]  ;;  %v171_v42 = vmul.f32 %v37_v36, %v37_v36 }
  0x1a   :  { %v86_v53 = vadd.f32 %v85_v49, %v23_v44  ;;  %v219_v55 = vadd.f32 %v218_v51, %v156_v46  ;;  %v39_v44 = vld [vmem:[%s499_s0 + $0xe8] sm:$0xff]  ;;  %v172_v46 = vmul.f32 %v38_v40, %v38_v40 }
  0x1c   :  { %v87_v57 = vadd.f32 %v86_v53, %v24_v48  ;;  %v220_v59 = vadd.f32 %v219_v55, %v157_v50  ;;  %v40_v48 = vld [vmem:[%s499_s0 + $0xf0] sm:$0xff]  ;;  %v173_v50 = vmul.f32 %v39_v44, %v39_v44 }
  0x1e   :  { %v88_v61 = vadd.f32 %v87_v57, %v25_v52  ;;  %v221_v63 = vadd.f32 %v220_v59, %v158_v54  ;;  %v41_v52 = vld [vmem:[%s499_s0 + $0xf8] sm:$0xff]  ;;  %v174_v54 = vmul.f32 %v40_v48, %v40_v48 }
  0x20   :  { %v89_v1 = vadd.f32 %v88_v61, %v26_v56  ;;  %v222_v3 = vadd.f32 %v221_v63, %v159_v58  ;;  %v42_v56 = vld [vmem:[%s499_s0 + $0x100] sm:$0xff]  ;;  %v175_v58 = vmul.f32 %v41_v52, %v41_v52 }
  0x22   :  { %v90_v5 = vadd.f32 %v89_v1, %v27_v60  ;;  %v223_v7 = vadd.f32 %v222_v3, %v160_v62  ;;  %v43_v60 = vld [vmem:[%s499_s0 + $0x108] sm:$0xff]  ;;  %v176_v62 = vmul.f32 %v42_v56, %v42_v56 }
  0x24   :  { %v91_v9 = vadd.f32 %v90_v5, %v28_v0  ;;  %v224_v11 = vadd.f32 %v223_v7, %v161_v2  ;;  %v44_v0 = vld [vmem:[%s499_s0 + $0x110] sm:$0xff]  ;;  %v177_v2 = vmul.f32 %v43_v60, %v43_v60 }
  0x26   :  { %v92_v13 = vadd.f32 %v91_v9, %v29_v4  ;;  %v225_v15 = vadd.f32 %v224_v11, %v162_v6  ;;  %v45_v4 = vld [vmem:[%s499_s0 + $0x118] sm:$0xff]  ;;  %v178_v6 = vmul.f32 %v44_v0, %v44_v0 }
  0x28   :  { %v93_v17 = vadd.f32 %v92_v13, %v30_v8  ;;  %v226_v19 = vadd.f32 %v225_v15, %v163_v10  ;;  %v46_v8 = vld [vmem:[%s499_s0 + $0x120] sm:$0xff]  ;;  %v179_v10 = vmul.f32 %v45_v4, %v45_v4 }
  0x2a   :  { %v94_v21 = vadd.f32 %v93_v17, %v31_v12  ;;  %v227_v23 = vadd.f32 %v226_v19, %v164_v14  ;;  %v47_v12 = vld [vmem:[%s499_s0 + $0x128] sm:$0xff]  ;;  %v180_v14 = vmul.f32 %v46_v8, %v46_v8 }
  0x2c   :  { %v95_v25 = vadd.f32 %v94_v21, %v32_v16  ;;  %v228_v27 = vadd.f32 %v227_v23, %v165_v18  ;;  %v48_v16 = vld [vmem:[%s499_s0 + $0x130] sm:$0xff]  ;;  %v181_v18 = vmul.f32 %v47_v12, %v47_v12 }
  0x2e   :  { %v96_v29 = vadd.f32 %v95_v25, %v33_v20  ;;  %v229_v31 = vadd.f32 %v228_v27, %v166_v22  ;;  %v49_v20 = vld [vmem:[%s499_s0 + $0x138] sm:$0xff]  ;;  %v182_v22 = vmul.f32 %v48_v16, %v48_v16 }
  0x30   :  { %v97_v33 = vadd.f32 %v96_v29, %v34_v24  ;;  %v230_v35 = vadd.f32 %v229_v31, %v167_v26  ;;  %v50_v24 = vld [vmem:[%s499_s0 + $0x140] sm:$0xff]  ;;  %v183_v26 = vmul.f32 %v49_v20, %v49_v20 }
  0x32   :  { %v98_v37 = vadd.f32 %v97_v33, %v35_v28  ;;  %v231_v39 = vadd.f32 %v230_v35, %v168_v30  ;;  %v51_v28 = vld [vmem:[%s499_s0 + $0x148] sm:$0xff]  ;;  %v184_v30 = vmul.f32 %v50_v24, %v50_v24 }
  0x34   :  { %v99_v41 = vadd.f32 %v98_v37, %v36_v32  ;;  %v232_v43 = vadd.f32 %v231_v39, %v169_v34  ;;  %v52_v32 = vld [vmem:[%s499_s0 + $0x150] sm:$0xff]  ;;  %v185_v34 = vmul.f32 %v51_v28, %v51_v28 }
  0x36   :  { %v100_v45 = vadd.f32 %v99_v41, %v37_v36  ;;  %v233_v47 = vadd.f32 %v232_v43, %v170_v38  ;;  %v53_v36 = vld [vmem:[%s499_s0 + $0x158] sm:$0xff]  ;;  %v186_v38 = vmul.f32 %v52_v32, %v52_v32 }
  0x38   :  { %v101_v49 = vadd.f32 %v100_v45, %v38_v40  ;;  %v234_v51 = vadd.f32 %v233_v47, %v171_v42  ;;  %v54_v40 = vld [vmem:[%s499_s0 + $0x160] sm:$0xff]  ;;  %v187_v42 = vmul.f32 %v53_v36, %v53_v36 }
  0x3a   :  { %v102_v53 = vadd.f32 %v101_v49, %v39_v44  ;;  %v235_v55 = vadd.f32 %v234_v51, %v172_v46  ;;  %v55_v44 = vld [vmem:[%s499_s0 + $0x168] sm:$0xff]  ;;  %v188_v46 = vmul.f32 %v54_v40, %v54_v40 }
  0x3c   :  { %v103_v57 = vadd.f32 %v102_v53, %v40_v48  ;;  %v236_v59 = vadd.f32 %v235_v55, %v173_v50  ;;  %v56_v48 = vld [vmem:[%s499_s0 + $0x170] sm:$0xff]  ;;  %v189_v50 = vmul.f32 %v55_v44, %v55_v44 }
  0x3e   :  { %v104_v61 = vadd.f32 %v103_v57, %v41_v52  ;;  %v237_v63 = vadd.f32 %v236_v59, %v174_v54  ;;  %v57_v52 = vld [vmem:[%s499_s0 + $0x178] sm:$0xff]  ;;  %v190_v54 = vmul.f32 %v56_v48, %v56_v48 }
  0x40   :  { %v105_v1 = vadd.f32 %v104_v61, %v42_v56  ;;  %v238_v3 = vadd.f32 %v237_v63, %v175_v58  ;;  %v58_v56 = vld [vmem:[%s499_s0 + $0x180] sm:$0xff]  ;;  %v191_v58 = vmul.f32 %v57_v52, %v57_v52 }
  0x42   :  { %v106_v5 = vadd.f32 %v105_v1, %v43_v60  ;;  %v239_v7 = vadd.f32 %v238_v3, %v176_v62  ;;  %v59_v60 = vld [vmem:[%s499_s0 + $0x188] sm:$0xff]  ;;  %v192_v62 = vmul.f32 %v58_v56, %v58_v56 }
  0x44   :  { %v107_v9 = vadd.f32 %v106_v5, %v44_v0  ;;  %v240_v11 = vadd.f32 %v239_v7, %v177_v2  ;;  %v60_v0 = vld [vmem:[%s499_s0 + $0x190] sm:$0xff]  ;;  %v193_v2 = vmul.f32 %v59_v60, %v59_v60 }
  0x46   :  { %v108_v13 = vadd.f32 %v107_v9, %v45_v4  ;;  %v241_v15 = vadd.f32 %v240_v11, %v178_v6  ;;  %v61_v4 = vld [vmem:[%s499_s0 + $0x198] sm:$0xff]  ;;  %v194_v6 = vmul.f32 %v60_v0, %v60_v0 }
  0x48   :  { %v109_v17 = vadd.f32 %v108_v13, %v46_v8  ;;  %v242_v19 = vadd.f32 %v241_v15, %v179_v10  ;;  %v62_v8 = vld [vmem:[%s499_s0 + $0x1a0] sm:$0xff]  ;;  %v195_v10 = vmul.f32 %v61_v4, %v61_v4 }
  0x4a   :  { %v110_v21 = vadd.f32 %v109_v17, %v47_v12  ;;  %v243_v23 = vadd.f32 %v242_v19, %v180_v14  ;;  %v63_v12 = vld [vmem:[%s499_s0 + $0x1a8] sm:$0xff]  ;;  %v196_v14 = vmul.f32 %v62_v8, %v62_v8 }
  0x4c   :  { %v111_v25 = vadd.f32 %v110_v21, %v48_v16  ;;  %v244_v27 = vadd.f32 %v243_v23, %v181_v18  ;;  %v64_v16 = vld [vmem:[%s499_s0 + $0x1b0] sm:$0xff]  ;;  %v197_v18 = vmul.f32 %v63_v12, %v63_v12 }
  0x4e   :  { %v112_v29 = vadd.f32 %v111_v25, %v49_v20  ;;  %v245_v31 = vadd.f32 %v244_v27, %v182_v22  ;;  %v65_v20 = vld [vmem:[%s499_s0 + $0x1b8] sm:$0xff]  ;;  %v198_v22 = vmul.f32 %v64_v16, %v64_v16 }
  0x50   :  { %v113_v33 = vadd.f32 %v112_v29, %v50_v24  ;;  %v246_v35 = vadd.f32 %v245_v31, %v183_v26  ;;  %v66_v24 = vld [vmem:[%s499_s0 + $0x1c0] sm:$0xff]  ;;  %v199_v26 = vmul.f32 %v65_v20, %v65_v20 }
  0x52   :  { %v114_v37 = vadd.f32 %v113_v33, %v51_v28  ;;  %v247_v39 = vadd.f32 %v246_v35, %v184_v30  ;;  %v67_v28 = vld [vmem:[%s499_s0 + $0x1c8] sm:$0xff]  ;;  %v200_v30 = vmul.f32 %v66_v24, %v66_v24 }
  0x54   :  { %v115_v41 = vadd.f32 %v114_v37, %v52_v32  ;;  %v248_v43 = vadd.f32 %v247_v39, %v185_v34  ;;  %v68_v32 = vld [vmem:[%s499_s0 + $0x1d0] sm:$0xff]  ;;  %v201_v34 = vmul.f32 %v67_v28, %v67_v28 }
  0x56   :  { %v116_v45 = vadd.f32 %v115_v41, %v53_v36  ;;  %v249_v47 = vadd.f32 %v248_v43, %v186_v38  ;;  %v69_v36 = vld [vmem:[%s499_s0 + $0x1d8] sm:$0xff]  ;;  %v202_v38 = vmul.f32 %v68_v32, %v68_v32 }
  0x58   :  { %v117_v49 = vadd.f32 %v116_v45, %v54_v40  ;;  %v250_v51 = vadd.f32 %v249_v47, %v187_v42  ;;  %v70_v40 = vld [vmem:[%s499_s0 + $0x1e0] sm:$0xff]  ;;  %v203_v42 = vmul.f32 %v69_v36, %v69_v36 }
  0x5a   :  { %v118_v53 = vadd.f32 %v117_v49, %v55_v44  ;;  %v251_v55 = vadd.f32 %v250_v51, %v188_v46  ;;  %v71_v44 = vld [vmem:[%s499_s0 + $0x1e8] sm:$0xff]  ;;  %v204_v46 = vmul.f32 %v70_v40, %v70_v40 }
  0x5c   :  { %v119_v57 = vadd.f32 %v118_v53, %v56_v48  ;;  %v252_v59 = vadd.f32 %v251_v55, %v189_v50  ;;  %v72_v48 = vld [vmem:[%s499_s0 + $0x1f0] sm:$0xff]  ;;  %v205_v50 = vmul.f32 %v71_v44, %v71_v44 }
  0x5e   :  { %v120_v61 = vadd.f32 %v119_v57, %v57_v52  ;;  %v253_v63 = vadd.f32 %v252_v59, %v190_v54  ;;  %v73_v52 = vld [vmem:[%s499_s0 + $0x1f8] sm:$0xff]  ;;  %v206_v54 = vmul.f32 %v72_v48, %v72_v48 }
  0x5f   :  { %v207_v57 = vmul.f32 %v73_v52, %v73_v52 }
  0x60   :  { %v121_v1 = vadd.f32 %v120_v61, %v58_v56  ;;  %v254_v3 = vadd.f32 %v253_v63, %v191_v58 }
  0x62   :  { %v122_v5 = vadd.f32 %v121_v1, %v59_v60  ;;  %v255_v7 = vadd.f32 %v254_v3, %v192_v62 }
  0x64   :  { %v123_v9 = vadd.f32 %v122_v5, %v60_v0  ;;  %v256_v11 = vadd.f32 %v255_v7, %v193_v2 }
  0x66   :  { %v124_v13 = vadd.f32 %v123_v9, %v61_v4  ;;  %v257_v15 = vadd.f32 %v256_v11, %v194_v6 }
  0x68   :  { %v125_v17 = vadd.f32 %v124_v13, %v62_v8  ;;  %v258_v19 = vadd.f32 %v257_v15, %v195_v10 }
  0x6a   :  { %v126_v21 = vadd.f32 %v125_v17, %v63_v12  ;;  %v259_v23 = vadd.f32 %v258_v19, %v196_v14 }
  0x6c   :  { %v127_v25 = vadd.f32 %v126_v21, %v64_v16  ;;  %v260_v27 = vadd.f32 %v259_v23, %v197_v18 }
  0x6e   :  { %v128_v29 = vadd.f32 %v127_v25, %v65_v20  ;;  %v261_v31 = vadd.f32 %v260_v27, %v198_v22 }
  0x70   :  { %v129_v33 = vadd.f32 %v128_v29, %v66_v24  ;;  %v262_v35 = vadd.f32 %v261_v31, %v199_v26 }
  0x72   :  { %v130_v37 = vadd.f32 %v129_v33, %v67_v28  ;;  %v263_v39 = vadd.f32 %v262_v35, %v200_v30 }
  0x74   :  { %v131_v41 = vadd.f32 %v130_v37, %v68_v32  ;;  %v264_v43 = vadd.f32 %v263_v39, %v201_v34 }
  0x76   :  { %v132_v45 = vadd.f32 %v131_v41, %v69_v36  ;;  %v265_v47 = vadd.f32 %v264_v43, %v202_v38 }
  0x78   :  { %v133_v49 = vadd.f32 %v132_v45, %v70_v40  ;;  %v266_v51 = vadd.f32 %v265_v47, %v203_v42 }
  0x7a   :  { %v134_v53 = vadd.f32 %v133_v49, %v71_v44  ;;  %v267_v55 = vadd.f32 %v266_v51, %v204_v46 }
  0x7c   :  { %v135_v56 = vadd.f32 %v134_v53, %v72_v48  ;;  %v268_v58 = vadd.f32 %v267_v55, %v205_v50 }
  0x7e   :  { %v136_v59 = vadd.f32 %v135_v56, %v73_v52  ;;  %v269_v60 = vadd.f32 %v268_v58, %v206_v54 }
  0x80   :  { %v137_v61 = vrot.slane %v136_v59, 4  ;;  %v270_v62 = vadd.f32 %v269_v60, %v207_v57 }
  0x82   :  { %v138_v63 = vadd.f32 %v137_v61, %v136_v59  ;;  %v271_v0 = vrot.slane %v270_v62, 4 }
  0x84   :  { %v139_v1 = vrot.slane %v138_v63, 2  ;;  %v272_v2 = vadd.f32 %v271_v0, %v270_v62 }
  0x86   :  { %v140_v3 = vadd.f32 %v139_v1, %v138_v63  ;;  %v273_v4 = vrot.slane %v272_v2, 2 }
  0x88   :  { %v141_v5 = vrot.slane %v140_v3, 1  ;;  %v274_v6 = vadd.f32 %v273_v4, %v272_v2 }
  0x8a   :  { %v142_v7 = vadd.f32 %v141_v5, %v140_v3  ;;  %v275_v8 = vrot.slane %v274_v6, 1 }
  0x8c   :  { %143 = vst [vmem:[%s500_s1] sm:$0x1] %v142_v7  ;;  %v276_v9 = vadd.f32 %v275_v8, %v274_v6 }
  0x8e   :  { %277 = vst [vmem:[%s501_s2] sm:$0x1] %v276_v9 }

// kernel: forward.5
= control target key start
LH: loop header
LB: loop body
LE: loop exit
PB: predicated region body
PF: predicated region fallthrough
CT: control target
= control target key end

     0   :  { %s2169_s18 = smov 0   ;;  %s2171_s19 = smov 0   ;;  %s2629_s0 = inlined_call_operand.vmem [shape: bf16[2,8,8,256], index: 0, kind: input, shape index: {}, may-alias: {0,4}]   ;;  %s2630_s1 = inlined_call_operand.vmem [shape: bf16[1152,128], index: 1, kind: input, shape index: {}]   ;;  %s2631_s2 = inlined_call_operand.vmem [shape: f32[1,128], index: 2, kind: input, shape index: {}]   ;;  %s2632_s3 = inlined_call_operand.vmem [shape: f32[1,128], index: 3, kind: input, shape index: {}]   ;;  %s2633_s4 = inlined_call_operand.vmem [shape: bf16[2,8,8,256], index: 4, kind: input, shape index: {}, may-alias: {0,4}]   ;;  %s2634_s5 = inlined_call_operand.vmem [shape: f32[2,8,8,128], index: 5, kind: output, shape index: {}]  }
   0x1   :  { %s2173_s20 = smov 0  }
   0x2 LB: > { %s1665_s21 = sadd.s32 4294967295, %s2136_s20   ;;  %s2186_s22 = sadd.s32 1, %s2136_s20   ;;  %s2136_s20 = sphi %s2173_s20, %s2638_s20   ;;  %s2132_s19 = sphi %s2171_s19, %s2637_s19   ;;  %s2128_s18 = sphi %s2169_s18, %s2636_s18  }
   0x3   : > { %s19_s23 = ssub.s32 %s2136_s20, %s2186_s22  ;;  %s22_s24 = sadd.s32 1, %s2132_s19 }
   0x4   : > { %p20_p0 = scmp.eq.s32.totalorder %s19_s23, 0  ;;  %p29_p1 = scmp.ne.s32.totalorder %s2132_s19, %s2128_s18 }
   0x5   : > { %p30_p2 = scmp.eq.s32.totalorder %s2136_s20, 0  ;;  %p1668_p4 = scmp.ge.s32.totalorder %s2136_s20, 2 }
   0x6   : > { %s2195_s25 = scalar_select %p20_p0, %s2132_s19, %s22_s24  }
   0x7   : > { %p2197_p3 = por %p30_p2, %p29_p1  ;;  %179 = sbr.rel (%p1668_p4) target bundleno = 32 (0x20), region = 28 }
   0xe   : > { %182 = sbr.rel (!%p2197_p3) target bundleno = 23 (0x17), region = 32  ;;  %s184_s27 = sand.u32 (%p2197_p3), 1, %s2132_s19  }
   0xf   : > { %s1764_s28 = sshll.u32 (%p2197_p3), %s2136_s20, 6  ;;  %s1669_s29 = sshll.u32 (%p2197_p3), %s184_s27, 5 }
  0x10   : > { %s189_s7 = scalar_lea.vmem (%p2197_p3), %s2629_s0, %s1764_s28  ;;  %s186_s8 = scalar_lea.vmem (%p2197_p3), [#allocation4], %s1669_s29 }
  0x11   : > { %v205_v0 = vld [vmem:[%s189_s7] sm:$0xf] (%p2197_p3)  ;;  %v207_v1 = vld [vmem:[%s189_s7 + $0x8] sm:$0xf] (%p2197_p3)  ;;  %v209_v2 = vld [vmem:[%s189_s7 + $0x10] sm:$0xf] (%p2197_p3) }
  0x12   : > { %206 = vst [vmem:[%s186_s8] sm:$0xf] (%p2197_p3), %v205_v0  ;;  %208 = vst [vmem:[%s186_s8 + $0x4] sm:$0xf] (%p2197_p3), %v207_v1  ;;  %v211_v3 = vld [vmem:[%s189_s7 + $0x18] sm:$0xf] (%p2197_p3) }
  0x13   : > { %v213_v4 = vld [vmem:[%s189_s7 + $0x20] sm:$0xf] (%p2197_p3)  ;;  %210 = vst [vmem:[%s186_s8 + $0x8] sm:$0xf] (%p2197_p3), %v209_v2  ;;  %212 = vst [vmem:[%s186_s8 + $0xc] sm:$0xf] (%p2197_p3), %v211_v3 }
  0x14   : > { %214 = vst [vmem:[%s186_s8 + $0x10] sm:$0xf] (%p2197_p3), %v213_v4  ;;  %v215_v5 = vld [vmem:[%s189_s7 + $0x28] sm:$0xf] (%p2197_p3)  ;;  %v217_v6 = vld [vmem:[%s189_s7 + $0x30] sm:$0xf] (%p2197_p3) }
  0x15   : > { %v219_v7 = vld [vmem:[%s189_s7 + $0x38] sm:$0xf]  ;;  %216 = vst [vmem:[%s186_s8 + $0x14] sm:$0xf] %v215_v5  ;;  %218 = vst [vmem:[%s186_s8 + $0x18] sm:$0xf] %v217_v6 }
  0x16   : > { %220 = vst [vmem:[%s186_s8 + $0x1c] sm:$0xf] %v219_v7 }
  0x17 PF: > { %259 = sbr.rel (!%p2197_p3) target bundleno = 32 (0x20), region = 73  ;;  %s261_s9 = sand.u32 (%p2197_p3), 1, %s2132_s19  }
  0x18   : > { %s1765_s10 = sshll.u32 (%p2197_p3), %s2136_s20, 6  ;;  %s1672_s11 = sshll.u32 (%p2197_p3), %s261_s9, 5 }
  0x19   : > { %s1613_s14 = scalar_lea.vmem (%p2197_p3), %s2633_s4, %s1765_s10  ;;  %s263_s15 = scalar_lea.vmem (%p2197_p3), [#allocation5], %s1672_s11 }
  0x1a   : > { %v1675_v8 = vld [vmem:[%s1613_s14 + $0x4] sm:$0xf] (%p2197_p3)  ;;  %v1676_v9 = vld [vmem:[%s1613_s14 + $0xc] sm:$0xf] (%p2197_p3)  ;;  %v1677_v10 = vld [vmem:[%s1613_s14 + $0x14] sm:$0xf] (%p2197_p3) }
  0x1b   : > { %284 = vst [vmem:[%s263_s15] sm:$0xf] (%p2197_p3), %v1675_v8  ;;  %286 = vst [vmem:[%s263_s15 + $0x4] sm:$0xf] (%p2197_p3), %v1676_v9  ;;  %v1678_v11 = vld [vmem:[%s1613_s14 + $0x1c] sm:$0xf] (%p2197_p3) }
  0x1c   : > { %v1679_v12 = vld [vmem:[%s1613_s14 + $0x24] sm:$0xf] (%p2197_p3)  ;;  %288 = vst [vmem:[%s263_s15 + $0x8] sm:$0xf] (%p2197_p3), %v1677_v10  ;;  %290 = vst [vmem:[%s263_s15 + $0xc] sm:$0xf] (%p2197_p3), %v1678_v11 }
  0x1d   : > { %292 = vst [vmem:[%s263_s15 + $0x10] sm:$0xf] (%p2197_p3), %v1679_v12  ;;  %v1680_v13 = vld [vmem:[%s1613_s14 + $0x2c] sm:$0xf] (%p2197_p3)  ;;  %v1681_v14 = vld [vmem:[%s1613_s14 + $0x34] sm:$0xf] (%p2197_p3) }
  0x1e   : > { %v1682_v15 = vld [vmem:[%s1613_s14 + $0x3c] sm:$0xf]  ;;  %294 = vst [vmem:[%s263_s15 + $0x14] sm:$0xf] %v1680_v13  ;;  %296 = vst [vmem:[%s263_s15 + $0x18] sm:$0xf] %v1681_v14 }
  0x1f   : > { %298 = vst [vmem:[%s263_s15 + $0x1c] sm:$0xf] %v1682_v15 }
  0x20 PF: > { %p1683_p5 = scmp.ge.s32.totalorder %s2136_s20, 1  ;;  %p336_p6 = scmp.lt.s32.totalorder %s2136_s20, 3 }
  0x22   : > { %p337_p7 = pnand %p1683_p5, %p336_p6 }
  0x23   : > { %v2042_v16 = vld [vmem:[%s2630_s1 + $0x40] sm:$0xff] (!%p337_p7)   ;;  %v2046_v20 = vld [vmem:[%s2630_s1 + $0x48] sm:$0xff] (!%p337_p7)   ;;  %v2138_v21 = vmov (!%p337_p7), 0.0   ;;  %v2050_v25 = vld [vmem:[%s2630_s1 + $0x50] sm:$0xff] (!%p337_p7)   ;;  %s343_s7 = sand.u32 (!%p337_p7), 1, %s2128_s18   ;;  %p381_p8 = scmp.lt.s32.totalorder (!%p337_p7), %s1665_s21, 1 }
  0x24   : > { %340 = sbr.rel (%p337_p7) target bundleno = 354 (0x162), region = 114  ;;  %v2043_v17 = vld [vmem:[%s2630_s1 + $0xc0] sm:$0xff] (!%p337_p7)   ;;  %1805 = vmatprep.subr.bf16.mxu0 (!%p337_p7), %v2042_v16  ;;  %441 = vst [vmem:[#allocation2] sm:$0xff] (!%p337_p7), %v2138_v21  ;;  %442 = vst [vmem:[#allocation2 + $0x8] sm:$0x3] (!%p337_p7), %v2138_v21  ;;  %v2047_v22 = vld [vmem:[%s2630_s1 + $0xc8] sm:$0xff] (!%p337_p7)  }
  0x25   : > { %v2044_v18 = vld [vmem:[%s2630_s1] sm:$0xff] (!%p337_p7)   ;;  %1845 = vmatprep.subr.bf16.mxu1 (!%p337_p7), %v2043_v17  ;;  %443 = vst [vmem:[#allocation2 + $0x10] sm:$0xff] (!%p337_p7), %v2138_v21  ;;  %444 = vst [vmem:[#allocation2 + $0x18] sm:$0x3] (!%p337_p7), %v2138_v21  ;;  %v2048_v23 = vld [vmem:[%s2630_s1 + $0x8] sm:$0xff] (!%p337_p7)   ;;  %s2320_s14 = sshll.u32 (!%p337_p7), %s343_s7, 5 }
  0x26   : > { %v2045_v19 = vld [vmem:[%s2630_s1 + $0x80] sm:$0xff] (!%p337_p7)   ;;  %1806 = vmatpush3.bf16.msra.mxu0 (!%p337_p7), %v2044_v18  ;;  %445 = vst [vmem:[#allocation2 + $0x20] sm:$0xff] (!%p337_p7), %v2138_v21  ;;  %446 = vst [vmem:[#allocation2 + $0x28] sm:$0x3] (!%p337_p7), %v2138_v21  ;;  %v2049_v24 = vld [vmem:[%s2630_s1 + $0x88] sm:$0xff] (!%p337_p7)   ;;  %s2343_s7 = scalar_lea.vmem (!%p337_p7), [#allocation4], %s2320_s14 }
  0x27   : > { %447 = vst [vmem:[#allocation2 + $0x30] sm:$0xff] (!%p337_p7), %v2138_v21  ;;  %448 = vst [vmem:[#allocation2 + $0x38] sm:$0x3] (!%p337_p7), %v2138_v21  ;;  %1846 = vmatpush3.bf16.msra.mxu1 (!%p337_p7), %v2045_v19  ;;  %1807 = vmatprep.subr.bf16.mxu0 (!%p337_p7), %v2046_v20  ;;  %v2051_v26 = vld [vmem:[%s2630_s1 + $0xd0] sm:$0xff] (!%p337_p7)   ;;  %v2054_v29 = vld [vmem:[%s2630_s1 + $0x58] sm:$0xff] (!%p337_p7)   ;;  %s352_s15 = scalar_lea.vmem (!%p337_p7), [#allocation5], %s2320_s14 }
  0x28   : > { %449 = vst [vmem:[#allocation2 + $0x40] sm:$0xff] (!%p337_p7), %v2138_v21  ;;  %450 = vst [vmem:[#allocation2 + $0x48] sm:$0x3] (!%p337_p7), %v2138_v21  ;;  %1847 = vmatprep.subr.bf16.mxu1 (!%p337_p7), %v2047_v22  ;;  %v2052_v27 = vld [vmem:[%s2630_s1 + $0x10] sm:$0xff] (!%p337_p7)   ;;  %v2055_v30 = vld [vmem:[%s2630_s1 + $0xd8] sm:$0xff] (!%p337_p7)  }
  0x29   : > { %451 = vst [vmem:[#allocation2 + $0x50] sm:$0xff] (!%p337_p7), %v2138_v21  ;;  %452 = vst [vmem:[#allocation2 + $0x58] sm:$0x3] (!%p337_p7), %v2138_v21  ;;  %v2053_v28 = vld [vmem:[%s2630_s1 + $0x90] sm:$0xff] (!%p337_p7)   ;;  %v2056_v31 = vld [vmem:[%s2630_s1 + $0x18] sm:$0xff] (!%p337_p7)  }
  0x2a   : > { %453 = vst [vmem:[#allocation2 + $0x60] sm:$0xff] (!%p337_p7), %v2138_v21  ;;  %454 = vst [vmem:[#allocation2 + $0x68] sm:$0x3] (!%p337_p7), %v2138_v21  ;;  %1808 = vmatpush3.bf16.msra.mxu0 (!%p337_p7), %v2048_v23  ;;  %v2057_v32 = vld [vmem:[%s2630_s1 + $0x98] sm:$0xff] (!%p337_p7)   ;;  %v2058_v33 = vld [vmem:[%s2630_s1 + $0x60] sm:$0xff] (!%p337_p7)  }
  0x2b   : > { %455 = vst [vmem:[#allocation2 + $0x70] sm:$0xff] %v2138_v21  ;;  %456 = vst [vmem:[#allocation2 + $0x78] sm:$0x3] %v2138_v21  ;;  %1848 = vmatpush3.bf16.msra.mxu1 %v2049_v24  ;;  %1809 = vmatprep.subr.bf16.mxu0 %v2050_v25  ;;  %v2059_v34 = vld [vmem:[%s2630_s1 + $0xe0] sm:$0xff]   ;;  %v2062_v37 = vld [vmem:[%s2630_s1 + $0x68] sm:$0xff]   ;;  %s2640_s21 = smov (!%p381_p8, %s1665_s21), 1 }
  0x2c   : > { %457 = vst [vmem:[#allocation2 + $0x80] sm:$0xff] %v2138_v21  ;;  %458 = vst [vmem:[#allocation2 + $0x88] sm:$0x3] %v2138_v21  ;;  %1849 = vmatprep.subr.bf16.mxu1 %v2051_v26  ;;  %v2060_v35 = vld [vmem:[%s2630_s1 + $0x20] sm:$0xff]   ;;  %v2063_v38 = vld [vmem:[%s2630_s1 + $0xe8] sm:$0xff]   ;;  %s1766_s16 = sshll.u32 %s2640_s21, 6 }
  0x2d   : > { %459 = vst [vmem:[#allocation2 + $0x90] sm:$0xff] %v2138_v21  ;;  %460 = vst [vmem:[#allocation2 + $0x98] sm:$0x3] %v2138_v21  ;;  %v2061_v36 = vld [vmem:[%s2630_s1 + $0xa0] sm:$0xff]   ;;  %v2064_v39 = vld [vmem:[%s2630_s1 + $0x28] sm:$0xff]   ;;  %s2607_s17 = scalar_lea.vmem %s2634_s5, %s1766_s16 }
  0x2e   : > { %1810 = vmatpush3.bf16.msra.mxu0 %v2052_v27  ;;  %v2065_v40 = vld [vmem:[%s2630_s1 + $0xa8] sm:$0xff]   ;;  %v2066_v41 = vld [vmem:[%s2630_s1 + $0x70] sm:$0xff]   ;;  %v2070_v45 = vld [vmem:[%s2630_s1 + $0x78] sm:$0xff]  }
  0x2f   : > { %1850 = vmatpush3.bf16.msra.mxu1 %v2053_v28  ;;  %1811 = vmatprep.subr.bf16.mxu0 %v2054_v29  ;;  %v2067_v42 = vld [vmem:[%s2630_s1 + $0xf0] sm:$0xff]   ;;  %v2071_v46 = vld [vmem:[%s2630_s1 + $0xf8] sm:$0xff]   ;;  %v2340_v49 = vld [vmem:[%s2631_s2] ss:$0 sm:$0xff] }
  0x30   : > { %1851 = vmatprep.subr.bf16.mxu1 %v2055_v30  ;;  %v2068_v43 = vld [vmem:[%s2630_s1 + $0x30] sm:$0xff]   ;;  %v2072_v47 = vld [vmem:[%s2630_s1 + $0x38] sm:$0xff]   ;;  %v1768_v50 = vld [vmem:[%s2343_s7] sm:$0xff]  }
  0x31   : > { %v2069_v44 = vld [vmem:[%s2630_s1 + $0xb0] sm:$0xff]   ;;  %v2073_v48 = vld [vmem:[%s2630_s1 + $0xb8] sm:$0xff]   ;;  %v2349_v51 = vld [vmem:[%s2632_s3] ss:$0 sm:$0xff]  ;;  %v1769_v52 = vunpack.c.l.bf16 %v1768_v50  ;;  %v1770_v53 = vunpack.c.h.bf16 %v1768_v50 }
  0x32   : > { %1812 = vmatpush3.bf16.msra.mxu0 %v2056_v31  ;;  %v2074_v54 = vld [vmem:[%s2630_s1 + $0x140] sm:$0xff]   ;;  %v1799_v0 = vld [vmem:[%s2343_s7 + $0x8] sm:$0xff]   ;;  %v1800_v23 = vld [vmem:[%s2343_s7 + $0x10] sm:$0xff]  }
  0x33   : > { %1852 = vmatpush3.bf16.msra.mxu1 %v2057_v32  ;;  %1813 = vmatprep.subr.bf16.mxu0 %v2058_v33  ;;  %v411_v55 = vsub.f32 %v1769_v52, %v2340_v49  ;;  %v412_v56 = vsub.f32 %v1770_v53, %v2340_v49  ;;  %v2075_v57 = vld [vmem:[%s2630_s1 + $0x1c0] sm:$0xff]   ;;  %v1773_v1 = vunpack.c.l.bf16 %v1799_v0  ;;  %v1774_v2 = vunpack.c.h.bf16 %v1799_v0  ;;  %v2078_v18 = vld [vmem:[%s2630_s1 + $0x148] sm:$0xff]   ;;  %v2082_v27 = vld [vmem:[%s2630_s1 + $0x150] sm:$0xff]  }
  0x34   : > { %1853 = vmatprep.subr.bf16.mxu1 %v2059_v34  ;;  %v486_v60 = vld [vmem:[#allocation2 + $0x1] sm:$0xff]  ;;  %v1777_v25 = vunpack.c.l.bf16 %v1800_v23  ;;  %v1778_v26 = vunpack.c.h.bf16 %v1800_v23  ;;  %v2083_v28 = vld [vmem:[%s2630_s1 + $0x1d0] sm:$0xff]   ;;  %v1801_v52 = vld [vmem:[%s2343_s7 + $0x18] sm:$0xff]  }
  0x35   : > { %v425_v58 = vmul.f32 %v2349_v51, %v411_v55  ;;  %v426_v59 = vmul.f32 %v2349_v51, %v412_v56  ;;  %v413_v3 = vsub.f32 %v1773_v1, %v2340_v49  ;;  %v414_v4 = vsub.f32 %v1774_v2, %v2340_v49  ;;  %v502_v5 = vld [vmem:[#allocation2 + $0x2] sm:$0xff]  ;;  %v2084_v32 = vld [vmem:[%s2630_s1 + $0x110] sm:$0xff]  }
  0x36   : > { %1814 = vmatpush3.bf16.msra.mxu0 %v2060_v35  ;;  %v2076_v6 = vld [vmem:[%s2630_s1 + $0x100] sm:$0xff]   ;;  %v2079_v19 = vld [vmem:[%s2630_s1 + $0x1c8] sm:$0xff]   ;;  %v415_v29 = vsub.f32 %v1777_v25, %v2340_v49  ;;  %v416_v30 = vsub.f32 %v1778_v26, %v2340_v49  ;;  %v2085_v33 = vld [vmem:[%s2630_s1 + $0x190] sm:$0xff]   ;;  %v1782_v55 = vunpack.c.h.bf16 %v1801_v52 }
  0x37   : > { %1854 = vmatpush3.bf16.msra.mxu1 %v2061_v36  ;;  %1815 = vmatprep.subr.bf16.mxu0 %v2062_v37  ;;  %v2361_v61 = vmax.f32 %v425_v58, 0.0  ;;  %v2363_v62 = vmax.f32 %v426_v59, 0.0  ;;  %v427_v7 = vmul.f32 %v2349_v51, %v413_v3  ;;  %v428_v8 = vmul.f32 %v2349_v51, %v414_v4  ;;  %v2077_v9 = vld [vmem:[%s2630_s1 + $0x180] sm:$0xff]   ;;  %v2080_v22 = vld [vmem:[%s2630_s1 + $0x108] sm:$0xff]  }
  0x38   : > { %1855 = vmatprep.subr.bf16.mxu1 %v2063_v38  ;;  %v2081_v24 = vld [vmem:[%s2630_s1 + $0x188] sm:$0xff]   ;;  %v429_v34 = vmul.f32 %v2349_v51, %v415_v29  ;;  %v430_v35 = vmul.f32 %v2349_v51, %v416_v30  ;;  %v2090_v50 = vld [vmem:[%s2630_s1 + $0x160] sm:$0xff]   ;;  %v418_v59 = vsub.f32 %v1782_v55, %v2340_v49 }
  0x39   : > { %462 = vst [vmem:[#allocation2 + $0x11] sm:$0xff] %v2361_v61  ;;  %v494_v63 = vpack.c.bf16 %v2361_v61, %v486_v60  ;;  %463 = vst [vmem:[#allocation2 + $0x21] sm:$0xff] %v2363_v62  ;;  %v2381_v13 = vmax.f32 %v427_v7, 0.0  ;;  %v2383_v14 = vmax.f32 %v428_v8, 0.0  ;;  %v2091_v53 = vld [vmem:[%s2630_s1 + $0x1e0] sm:$0xff]   ;;  %v2095_v0 = vld [vmem:[%s2630_s1 + $0x1e8] sm:$0xff]  }
  0x3a   : > { %1816 = vmatpush3.bf16.msra.mxu0 %v2064_v39  ;;  %v2092_v56 = vld [vmem:[%s2630_s1 + $0x120] sm:$0xff]   ;;  %v432_v2 = vmul.f32 %v2349_v51, %v418_v59  ;;  %v2097_v8 = vld [vmem:[%s2630_s1 + $0x1a8] sm:$0xff]  }
  0x3b   : > { %1856 = vmatpush3.bf16.msra.mxu1 %v2065_v40  ;;  %1817 = vmatprep.subr.bf16.mxu0 %v2066_v41  ;;  %464 = vst [vmem:[#allocation2 + $0x31] sm:$0xff] %v2381_v13  ;;  %v2396_v20 = vpack.c.bf16 %v2381_v13, %v2363_v62  ;;  %465 = vst [vmem:[#allocation2 + $0x41] sm:$0xff] %v2383_v14 }
  0x3c   : > { %1857 = vmatprep.subr.bf16.mxu1 %v2067_v42  ;;  %1259 = vmatprep.mubr.bf16.mxu0 %v494_v63  ;;  %v2086_v42 = vld [vmem:[%s2630_s1 + $0x158] sm:$0xff]   ;;  %v2094_v63 = vld [vmem:[%s2630_s1 + $0x168] sm:$0xff]  }
  0x3e   : > { %1818 = vmatpush3.bf16.msra.mxu0 %v2068_v43  ;;  %v2087_v43 = vld [vmem:[%s2630_s1 + $0x1d8] sm:$0xff]  }
  0x3f   : > { %1858 = vmatpush3.bf16.msra.mxu1 %v2069_v44  ;;  %1819 = vmatprep.subr.bf16.mxu0 %v2070_v45  ;;  %v2439_v44 = vmax.f32 %v429_v34, 0.0  ;;  %v2088_v45 = vld [vmem:[%s2630_s1 + $0x118] sm:$0xff]   ;;  %v2106_v34 = vld [vmem:[%s2630_s1 + $0x200] sm:$0xff]  }
  0x40   : > { %1859 = vmatprep.subr.bf16.mxu1 %v2071_v46  ;;  %v518_v10 = vld [vmem:[#allocation2 + $0x10] sm:$0xff]  ;;  %v519_v11 = vld [vmem:[#allocation2 + $0x20] sm:$0xff]  ;;  %v2444_v46 = vmax.f32 %v430_v35, 0.0 }
  0x41   : > { %v2379_v12 = vld [vmem:[#allocation2 + $0x12] sm:$0xff]  ;;  %v526_v15 = vpack.c.bf16 %v519_v11, %v518_v10  ;;  %v478_v16 = vpack.c.bf16 %v518_v10, %v2138_v21  ;;  %v2415_v31 = vld [vmem:[#allocation2 + $0x22] sm:$0xff]  ;;  %466 = vst [vmem:[#allocation2 + $0x51] sm:$0xff] %v2439_v44 }
  0x42   : > { %1820 = vmatpush3.bf16.msra.mxu0 %v2072_v47  ;;  %v510_v17 = vpack.c.bf16 %v2379_v12, %v502_v5  ;;  %v520_v36 = vld [vmem:[#allocation2 + $0x30] sm:$0xff]  ;;  %v521_v37 = vld [vmem:[#allocation2 + $0x40] sm:$0xff]  ;;  %v2089_v47 = vld [vmem:[%s2630_s1 + $0x198] sm:$0xff]   ;;  %467 = vst [vmem:[#allocation2 + $0x61] sm:$0xff] %v2444_v46 }
  0x43   : > { %1860 = vmatpush3.bf16.msra.mxu1 %v2073_v48  ;;  %1885 = vmatprep.subr.bf16.mxu0 %v2074_v54  ;;  %v2425_v38 = vld [vmem:[#allocation2 + $0x32] sm:$0xff]  ;;  %v527_v39 = vpack.c.bf16 %v521_v37, %v520_v36  ;;  %v2427_v40 = vpack.c.bf16 %v520_v36, %v519_v11  ;;  %v2453_v48 = vpack.c.bf16 %v2439_v44, %v2383_v14  ;;  %v1781_v54 = vunpack.c.l.bf16 %v1801_v52  ;;  %v2473_v60 = vld [vmem:[#allocation2 + $0x42] sm:$0xff] }
  0x44   : > { %1925 = vmatprep.subr.bf16.mxu1 %v2075_v57  ;;  %1324 = vmatprep.mubr.bf16.mxu1 %v526_v15  ;;  %v2431_v41 = vpack.c.bf16 %v2425_v38, %v2415_v31  ;;  %v2093_v57 = vld [vmem:[%s2630_s1 + $0x1a0] sm:$0xff]   ;;  %v2098_v11 = vld [vmem:[%s2630_s1 + $0x170] sm:$0xff]   ;;  %v559_v35 = vpack.c.bf16 %v2473_v60, %v2425_v38 }
  0x45   : > { %1260 = vmatmul.mubr.bf16.vlgmr.msra.gmra.mrb[0].mxu0 %v478_v16  ;;  %v417_v58 = vsub.f32 %v1781_v54, %v2340_v49  ;;  %v2096_v49 = vld [vmem:[%s2630_s1 + $0x128] sm:$0xff]   ;;  %v2099_v16 = vld [vmem:[%s2630_s1 + $0x1f0] sm:$0xff]  }
  0x46   : > { %1325 = vmatmul.mubr.bf16.vlgmr.msra.gmra.mrb[0].mxu1 %v510_v17  ;;  %1886 = vmatpush3.bf16.msra.mxu0 %v2076_v6  ;;  %v2100_v17 = vld [vmem:[%s2630_s1 + $0x130] sm:$0xff]  }
  0x47   : > { %1926 = vmatpush3.bf16.msra.mxu1 %v2077_v9  ;;  %1887 = vmatprep.subr.bf16.mxu0 %v2078_v18  ;;  %v431_v1 = vmul.f32 %v2349_v51, %v417_v58  ;;  %v2499_v9 = vmax.f32 %v432_v2, 0.0  ;;  %v2101_v18 = vld [vmem:[%s2630_s1 + $0x1b0] sm:$0xff]  }
  0x48   : > { %1927 = vmatprep.subr.bf16.mxu1 %v2079_v19  ;;  %1267 = vmatprep.mubr.bf16.mxu0 %v2396_v20  ;;  %v522_v3 = vld [vmem:[#allocation2 + $0x50] sm:$0xff]  ;;  %v2102_v19 = vld [vmem:[%s2630_s1 + $0x178] sm:$0xff]  }
  0x49   : > { %1332 = vmatprep.mubr.bf16.mxu1 %v527_v39  ;;  %v2483_v4 = vld [vmem:[#allocation2 + $0x52] sm:$0xff]  ;;  %v523_v5 = vld [vmem:[#allocation2 + $0x60] sm:$0xff]  ;;  %v2488_v6 = vpack.c.bf16 %v522_v3, %v521_v37  ;;  %v2497_v51 = vmax.f32 %v431_v1, 0.0  ;;  %469 = vst [vmem:[#allocation2 + $0x81] sm:$0xff] %v2499_v9  ;;  %v2111_v39 = vld [vmem:[%s2630_s1 + $0x228] sm:$0xff]  }
  0x4a   : > { %1888 = vmatpush3.bf16.msra.mxu0 %v2080_v22  ;;  %v2492_v7 = vpack.c.bf16 %v2483_v4, %v2473_v60  ;;  %v528_v10 = vpack.c.bf16 %v523_v5, %v522_v3  ;;  %v2103_v22 = vld [vmem:[%s2630_s1 + $0x1f8] sm:$0xff]   ;;  %v508_v23 = vld [vmem:[#allocation2 + $0x62] sm:$0xff] }
  0x4b   : > { %1928 = vmatpush3.bf16.msra.mxu1 %v2081_v24  ;;  %1889 = vmatprep.subr.bf16.mxu0 %v2082_v27  ;;  %468 = vst [vmem:[#allocation2 + $0x71] sm:$0xff] %v2497_v51  ;;  %v2508_v15 = vpack.c.bf16 %v2497_v51, %v2444_v46  ;;  %v2104_v24 = vld [vmem:[%s2630_s1 + $0x138] sm:$0xff]   ;;  %v560_v36 = vpack.c.bf16 %v508_v23, %v2483_v4 }
  0x4c   : > { %1929 = vmatprep.subr.bf16.mxu1 %v2083_v28  ;;  %v558_v28 = vpack.c.bf16 %v2415_v31, %v2379_v12  ;;  %v542_v12 = vpack.c.bf16 %v2363_v62, %v2361_v61  ;;  %v2107_v31 = vld [vmem:[%s2630_s1 + $0x208] sm:$0xff]   ;;  %v543_v61 = vpack.c.bf16 %v2383_v14, %v2381_v13  ;;  %v2109_v62 = vld [vmem:[%s2630_s1 + $0x218] sm:$0xff]   ;;  %v2110_v13 = vld [vmem:[%s2630_s1 + $0x220] sm:$0xff]   ;;  %v544_v14 = vpack.c.bf16 %v2444_v46, %v2439_v44 }
  0x4d   : > { %1268 = vmatmul.mubr.bf16.gmra.mrb[4].mxu0 %v2427_v40  ;;  %v590_v38 = vld [vmem:[#allocation2 + $0x91] sm:$0xff]  ;;  %v545_v44 = vpack.c.bf16 %v2499_v9, %v2497_v51 }
  0x4e   : > { %1333 = vmatmul.mubr.bf16.gmra.mrb[4].mxu1 %v2431_v41  ;;  %1890 = vmatpush3.bf16.msra.mxu0 %v2084_v32  ;;  %v2113_v46 = vld [vmem:[%s2630_s1 + $0x238] sm:$0xff]  }
  0x4f   : > { %1930 = vmatpush3.bf16.msra.mxu1 %v2085_v33  ;;  %1891 = vmatprep.subr.bf16.mxu0 %v2086_v42  ;;  %v2105_v33 = vld [vmem:[%s2630_s1 + $0x1b8] sm:$0xff]   ;;  %v594_v42 = vpack.c.bf16 %v590_v38, %v2499_v9 }
  0x50   : > { %1931 = vmatprep.subr.bf16.mxu1 %v2087_v43  ;;  %1275 = vmatprep.mubr.bf16.mxu0 %v2453_v48  ;;  %v2531_v26 = vld [vmem:[#allocation2 + $0x80] sm:$0xff]  ;;  %v2112_v43 = vld [vmem:[%s2630_s1 + $0x230] sm:$0xff]  }
  0x51   : > { %1340 = vmatprep.mubr.bf16.mxu1 %v528_v10  ;;  %v557_v37 = vld [vmem:[#allocation2 + $0x82] sm:$0xff] }
  0x52   : > { %1892 = vmatpush3.bf16.msra.mxu0 %v2088_v45  ;;  %v524_v25 = vld [vmem:[#allocation2 + $0x70] sm:$0xff]  ;;  %v578_v45 = vpack.c.bf16 %v2138_v21, %v2531_v26 }
  0x53   : > { %1932 = vmatpush3.bf16.msra.mxu1 %v2089_v47  ;;  %1893 = vmatprep.subr.bf16.mxu0 %v2090_v50  ;;  %v2533_v27 = vld [vmem:[#allocation2 + $0x72] sm:$0xff]  ;;  %v529_v29 = vpack.c.bf16 %v2531_v26, %v524_v25  ;;  %v481_v30 = vpack.c.bf16 %v524_v25, %v523_v5 }
  0x54   : > { %1933 = vmatprep.subr.bf16.mxu1 %v2091_v53  ;;  %v2539_v32 = vpack.c.bf16 %v2533_v27, %v508_v23  ;;  %v606_v47 = vld [vmem:[#allocation2 + $0x92] sm:$0xff] }
  0x55   : > { %1276 = vmatmul.mubr.bf16.gmra.mrb[8].mxu0 %v2488_v6  ;;  %v610_v21 = vpack.c.bf16 %v606_v47, %v557_v37 }
  0x56   : > { %1894 = vmatpush3.bf16.msra.mxu0 %v2092_v56  ;;  %1341 = vmatmul.mubr.bf16.gmra.mrb[8].mxu1 %v2492_v7 }
  0x57   : > { %1934 = vmatpush3.bf16.msra.mxu1 %v2093_v57  ;;  %1895 = vmatprep.subr.bf16.mxu0 %v2094_v63 }
  0x58   : > { %1935 = vmatprep.subr.bf16.mxu1 %v2095_v0  ;;  %1283 = vmatprep.mubr.bf16.mxu0 %v2508_v15 }
  0x59   : > { %1348 = vmatprep.mubr.bf16.mxu1 %v529_v29 }
  0x5a   : > { %1896 = vmatpush3.bf16.msra.mxu0 %v2096_v49 }
  0x5b   : > { %1936 = vmatpush3.bf16.msra.mxu1 %v2097_v8  ;;  %1897 = vmatprep.subr.bf16.mxu0 %v2098_v11 }
  0x5c   : > { %1937 = vmatprep.subr.bf16.mxu1 %v2099_v16 }
  0x5d   : > { %1284 = vmatmul.mubr.bf16.gmra.mrb[12].mxu0 %v481_v30 }
  0x5e   : > { %1898 = vmatpush3.bf16.msra.mxu0 %v2100_v17  ;;  %1349 = vmatmul.mubr.bf16.gmra.mrb[12].mxu1 %v2539_v32 }
  0x5f   : > { %1938 = vmatpush3.bf16.msra.mxu1 %v2101_v18  ;;  %1899 = vmatprep.subr.bf16.mxu0 %v2102_v19 }
  0x60   : > { %1939 = vmatprep.subr.bf16.mxu1 %v2103_v22  ;;  %1389 = vmatprep.mubr.bf16.mxu0 %v558_v28 }
  0x61   : > { %1454 = vmatprep.mubr.bf16.mxu1 %v2396_v20  ;;  %v2108_v20 = vld [vmem:[%s2630_s1 + $0x210] sm:$0xff]  }
  0x62   : > { %1900 = vmatpush3.bf16.msra.mxu0 %v2104_v24 }
  0x63   : > { %1940 = vmatpush3.bf16.msra.mxu1 %v2105_v33  ;;  %1977 = vmatprep.subr.bf16.mxu0 %v2106_v34 }
  0x64   : > { %2001 = vmatprep.subr.bf16.mxu1 %v2106_v34 }
  0x65   : > { %1390 = vmatmul.mubr.bf16.vlgmr.msra.gmra.mrb[16].mxu0 %v542_v12 }
  0x66   : > { %1455 = vmatmul.mubr.bf16.vlgmr.msra.gmra.mrb[16].mxu1 %v2427_v40  ;;  %1978 = vmatpush3.bf16.msra.mxu0 %v2106_v34  ;;  %v561_v40 = vpack.c.bf16 %v557_v37, %v2533_v27 }
  0x67   : > { %2009 = vmatpush3.bf16.msra.mxu1 %v2106_v34  ;;  %1979 = vmatprep.subr.bf16.mxu0 %v2107_v31 }
  0x68   : > { %2002 = vmatprep.subr.bf16.mxu1 %v2107_v31  ;;  %1397 = vmatprep.mubr.bf16.mxu0 %v559_v35 }
  0x69   : > { %1462 = vmatprep.mubr.bf16.mxu1 %v2453_v48 }
  0x6a   : > { %1980 = vmatpush3.bf16.msra.mxu0 %v2107_v31 }
  0x6b   : > { %2010 = vmatpush3.bf16.msra.mxu1 %v2107_v31  ;;  %1981 = vmatprep.subr.bf16.mxu0 %v2108_v20 }
  0x6c   : > { %2003 = vmatprep.subr.bf16.mxu1 %v2108_v20 }
  0x6d   : > { %1398 = vmatmul.mubr.bf16.gmra.mrb[20].mxu0 %v543_v61 }
  0x6e   : > { %1463 = vmatmul.mubr.bf16.gmra.mrb[20].mxu1 %v2488_v6  ;;  %1982 = vmatpush3.bf16.msra.mxu0 %v2108_v20 }
  0x6f   : > { %2011 = vmatpush3.bf16.msra.mxu1 %v2108_v20  ;;  %1983 = vmatprep.subr.bf16.mxu0 %v2109_v62 }
  0x70   : > { %2004 = vmatprep.subr.bf16.mxu1 %v2109_v62  ;;  %1405 = vmatprep.mubr.bf16.mxu0 %v560_v36 }
  0x71   : > { %1470 = vmatprep.mubr.bf16.mxu1 %v2508_v15 }
  0x72   : > { %1984 = vmatpush3.bf16.msra.mxu0 %v2109_v62 }
  0x73   : > { %2012 = vmatpush3.bf16.msra.mxu1 %v2109_v62  ;;  %1985 = vmatprep.subr.bf16.mxu0 %v2110_v13 }
  0x74   : > { %2005 = vmatprep.subr.bf16.mxu1 %v2110_v13 }
  0x75   : > { %1406 = vmatmul.mubr.bf16.gmra.mrb[24].mxu0 %v544_v14 }
  0x76   : > { %1471 = vmatmul.mubr.bf16.gmra.mrb[24].mxu1 %v481_v30  ;;  %1986 = vmatpush3.bf16.msra.mxu0 %v2110_v13 }
  0x77   : > { %2013 = vmatpush3.bf16.msra.mxu1 %v2110_v13  ;;  %1987 = vmatprep.subr.bf16.mxu0 %v2111_v39 }
  0x78   : > { %2006 = vmatprep.subr.bf16.mxu1 %v2111_v39  ;;  %1413 = vmatprep.mubr.bf16.mxu0 %v561_v40 }
  0x79   : > { %1478 = vmatprep.mubr.bf16.mxu1 %v594_v42 }
  0x7a   : > { %1988 = vmatpush3.bf16.msra.mxu0 %v2111_v39 }
  0x7b   : > { %2014 = vmatpush3.bf16.msra.mxu1 %v2111_v39  ;;  %1989 = vmatprep.subr.bf16.mxu0 %v2112_v43 }
  0x7c   : > { %2007 = vmatprep.subr.bf16.mxu1 %v2112_v43 }
  0x7d   : > { %1414 = vmatmul.mubr.bf16.gmra.mrb[28].mxu0 %v545_v44 }
  0x7e   : > { %1479 = vmatmul.mubr.bf16.gmra.mrb[28].mxu1 %v578_v45  ;;  %1990 = vmatpush3.bf16.msra.mxu0 %v2112_v43 }
  0x7f   : > { %2015 = vmatpush3.bf16.msra.mxu1 %v2112_v43  ;;  %1991 = vmatprep.subr.bf16.mxu0 %v2113_v46 }
  0x80   : > { %2008 = vmatprep.subr.bf16.mxu1 %v2113_v46  ;;  %1993 = vmatprep.mubr.bf16.mxu0 %v2431_v41 }
  0x81   : > { %1997 = vmatprep.mubr.bf16.mxu1 %v2539_v32 }
  0x82   : > { %1992 = vmatpush3.bf16.msra.mxu0 %v2113_v46 }
  0x83   : > { %2016 = vmatpush3.bf16.msra.mxu1 %v2113_v46 }
  0x85   : > { %1994 = vmatmul.mubr.bf16.vlgmr.msra.gmra.mrb[32].mxu0 %v2492_v7 }
  0x86   : > { %1998 = vmatmul.mubr.bf16.vlgmr.msra.gmra.mrb[32].mxu1 %v610_v21 }
 0x118   : > { %v1821_v48 = vpop.f32.mrb[0].mxu0 }
 0x119   : > { %v1861_v50 = vpop.f32.mrb[0].mxu1  ;;  %v1822_v52 = vpop.f32.mrb[1].mxu0 }
 0x11a   : > { %v1823_v53 = vadd.f32 %v1822_v52, %v1821_v48  ;;  %v1862_v54 = vpop.f32.mrb[1].mxu1  ;;  %v1824_v55 = vpop.f32.mrb[2].mxu0 }
 0x11b   : > { %v1863_v56 = vadd.f32 %v1862_v54, %v1861_v50  ;;  %v1864_v57 = vpop.f32.mrb[2].mxu1  ;;  %v1825_v58 = vpop.f32.mrb[3].mxu0 }
 0x11c   : > { %v1826_v59 = vadd.f32 %v1825_v58, %v1824_v55  ;;  %v1865_v60 = vpop.f32.mrb[3].mxu1 }
 0x11d   : > { %v1327_v41 = vadd.f32 %v1863_v56, %v1823_v53  ;;  %v1866_v63 = vadd.f32 %v1865_v60, %v1864_v57 }
 0x11f   : > { %v1330_v0 = vadd.f32 %v1866_v63, %v1826_v59 }
 0x120   : > { %v1827_v1 = vpop.f32.mrb[4].mxu0 }
 0x121   : > { %v1867_v2 = vpop.f32.mrb[4].mxu1  ;;  %v1828_v3 = vpop.f32.mrb[5].mxu0 }
 0x122   : > { %v1829_v4 = vadd.f32 %v1828_v3, %v1827_v1  ;;  %v1868_v49 = vpop.f32.mrb[5].mxu1  ;;  %v1830_v5 = vpop.f32.mrb[6].mxu0 }
 0x123   : > { %v1869_v6 = vadd.f32 %v1868_v49, %v1867_v2  ;;  %v1870_v7 = vpop.f32.mrb[6].mxu1  ;;  %v1831_v8 = vpop.f32.mrb[7].mxu0 }
 0x124   : > { %v1832_v51 = vadd.f32 %v1831_v8, %v1830_v5  ;;  %v1871_v9 = vpop.f32.mrb[7].mxu1 }
 0x125   : > { %v1335_v10 = vadd.f32 %v1869_v6, %v1829_v4  ;;  %v1872_v11 = vadd.f32 %v1871_v9, %v1870_v7 }
 0x127   : > { %v1338_v15 = vadd.f32 %v1872_v11, %v1832_v51 }
 0x128   : > { %v1833_v16 = vpop.f32.mrb[8].mxu0 }
 0x129   : > { %v1834_v17 = vpop.f32.mrb[9].mxu0  ;;  %v1873_v18 = vpop.f32.mrb[8].mxu1 }
 0x12a   : > { %v1835_v19 = vadd.f32 %v1834_v17, %v1833_v16  ;;  %v1836_v22 = vpop.f32.mrb[10].mxu0  ;;  %v1874_v23 = vpop.f32.mrb[9].mxu1 }
 0x12b   : > { %v1837_v24 = vpop.f32.mrb[11].mxu0  ;;  %v1875_v25 = vadd.f32 %v1874_v23, %v1873_v18  ;;  %v1876_v26 = vpop.f32.mrb[10].mxu1 }
 0x12c   : > { %v1838_v27 = vadd.f32 %v1837_v24, %v1836_v22  ;;  %v1877_v28 = vpop.f32.mrb[11].mxu1 }
 0x12d   : > { %v1343_v29 = vadd.f32 %v1875_v25, %v1835_v19  ;;  %v1878_v30 = vadd.f32 %v1877_v28, %v1876_v26 }
 0x12f   : > { %v1346_v32 = vadd.f32 %v1878_v30, %v1838_v27 }
 0x130   : > { %v1839_v33 = vpop.f32.mrb[12].mxu0 }
 0x131   : > { %v1879_v34 = vpop.f32.mrb[12].mxu1  ;;  %v1840_v12 = vpop.f32.mrb[13].mxu0 }
 0x132   : > { %v1841_v31 = vadd.f32 %v1840_v12, %v1839_v33  ;;  %v1880_v35 = vpop.f32.mrb[13].mxu1  ;;  %v1842_v20 = vpop.f32.mrb[14].mxu0 }
 0x133   : > { %v1881_v61 = vadd.f32 %v1880_v35, %v1879_v34  ;;  %v1882_v62 = vpop.f32.mrb[14].mxu1  ;;  %v1843_v36 = vpop.f32.mrb[15].mxu0 }
 0x134   : > { %v1844_v13 = vadd.f32 %v1843_v36, %v1842_v20  ;;  %v1883_v14 = vpop.f32.mrb[15].mxu1 }
 0x135   : > { %v1351_v37 = vadd.f32 %v1881_v61, %v1841_v31  ;;  %v1884_v38 = vadd.f32 %v1883_v14, %v1882_v62 }
 0x137   : > { %v2592_v39 = vadd.f32 %v1884_v38, %v1844_v13 }
 0x138   : > { %v1901_v40 = vpop.f32.mrb[16].mxu0 }
 0x139   : > { %v1941_v42 = vpop.f32.mrb[16].mxu1  ;;  %v1902_v43 = vpop.f32.mrb[17].mxu0 }
 0x13a   : > { %v1903_v44 = vadd.f32 %v1902_v43, %v1901_v40  ;;  %v1942_v45 = vpop.f32.mrb[17].mxu1  ;;  %v1904_v46 = vpop.f32.mrb[18].mxu0  ;;  %v1804_v40 = vld [vmem:[%s352_s15 + $0x18] sm:$0xff]  }
 0x13b   : > { %v1943_v47 = vadd.f32 %v1942_v45, %v1941_v42  ;;  %v1944_v21 = vpop.f32.mrb[18].mxu1  ;;  %v1905_v48 = vpop.f32.mrb[19].mxu0  ;;  %v1784_v42 = vld [vmem:[%s352_s15] sm:$0xff]   ;;  %v1803_v45 = vld [vmem:[%s352_s15 + $0x10] sm:$0xff]  }
 0x13c   : > { %v1392_v50 = vadd.f32 %v1903_v44, %v1327_v41  ;;  %v1906_v52 = vadd.f32 %v1905_v48, %v1904_v46  ;;  %v1945_v53 = vpop.f32.mrb[19].mxu1  ;;  %v1785_v48 = vunpack.c.l.bf16 %v1784_v42 }
 0x13d   : > { %v1946_v54 = vadd.f32 %v1945_v53, %v1944_v21  ;;  %v1797_v21 = vunpack.c.l.bf16 %v1804_v40 }
 0x13e   : > { %v1395_v55 = vadd.f32 %v1906_v52, %v1330_v0  ;;  %v2594_v56 = vadd.f32 %v1943_v47, %v1392_v50 }
 0x140   : > { %v1907_v57 = vpop.f32.mrb[20].mxu0  ;;  %v2596_v58 = vadd.f32 %v1946_v54, %v1395_v55  ;;  %v1793_v54 = vunpack.c.l.bf16 %v1803_v45 }
 0x141   : > { %v1947_v59 = vpop.f32.mrb[20].mxu1  ;;  %v1908_v60 = vpop.f32.mrb[21].mxu0 }
 0x142   : > { %v1909_v63 = vadd.f32 %v1908_v60, %v1907_v57  ;;  %v1948_v1 = vpop.f32.mrb[21].mxu1  ;;  %v1910_v2 = vpop.f32.mrb[22].mxu0 }
 0x143   : > { %v1949_v3 = vadd.f32 %v1948_v1, %v1947_v59  ;;  %v1950_v4 = vpop.f32.mrb[22].mxu1  ;;  %v1911_v49 = vpop.f32.mrb[23].mxu0  ;;  %v1786_v1 = vunpack.c.h.bf16 %v1784_v42 }
 0x144   : > { %v1400_v5 = vadd.f32 %v1909_v63, %v1335_v10  ;;  %v1912_v6 = vadd.f32 %v1911_v49, %v1910_v2  ;;  %v1951_v41 = vpop.f32.mrb[23].mxu1  ;;  %v1798_v63 = vunpack.c.h.bf16 %v1804_v40 }
 0x145   : > { %v1952_v7 = vadd.f32 %v1951_v41, %v1950_v4 }
 0x146   : > { %v1403_v8 = vadd.f32 %v1912_v6, %v1338_v15  ;;  %v1465_v51 = vadd.f32 %v1949_v3, %v1400_v5  ;;  %v1794_v6 = vunpack.c.h.bf16 %v1803_v45 }
 0x148   : > { %v1913_v0 = vpop.f32.mrb[24].mxu0  ;;  %v1468_v9 = vadd.f32 %v1952_v7, %v1403_v8 }
 0x149   : > { %v1953_v11 = vpop.f32.mrb[24].mxu1  ;;  %v1914_v16 = vpop.f32.mrb[25].mxu0 }
 0x14a   : > { %v1915_v17 = vadd.f32 %v1914_v16, %v1913_v0  ;;  %v1954_v18 = vpop.f32.mrb[25].mxu1  ;;  %v1916_v19 = vpop.f32.mrb[26].mxu0 }
 0x14b   : > { %v1955_v22 = vadd.f32 %v1954_v18, %v1953_v11  ;;  %v1956_v23 = vpop.f32.mrb[26].mxu1  ;;  %v1917_v24 = vpop.f32.mrb[27].mxu0 }
 0x14c   : > { %v1408_v25 = vadd.f32 %v1915_v17, %v1343_v29  ;;  %v1918_v26 = vadd.f32 %v1917_v24, %v1916_v19  ;;  %v1957_v10 = vpop.f32.mrb[27].mxu1 }
 0x14d   : > { %v1958_v27 = vadd.f32 %v1957_v10, %v1956_v23 }
 0x14e   : > { %v1411_v28 = vadd.f32 %v1918_v26, %v1346_v32  ;;  %v1473_v30 = vadd.f32 %v1955_v22, %v1408_v25  ;;  %v1802_v32 = vld [vmem:[%s352_s15 + $0x8] sm:$0xff]  }
 0x14f   : > { %v1789_v46 = vunpack.c.l.bf16 %v1802_v32  ;;  %v1790_v55 = vunpack.c.h.bf16 %v1802_v32 }
 0x150   : > { %v1919_v15 = vpop.f32.mrb[28].mxu0  ;;  %v1476_v33 = vadd.f32 %v1958_v27, %v1411_v28 }
 0x151   : > { %v1959_v34 = vpop.f32.mrb[28].mxu1  ;;  %v1920_v12 = vpop.f32.mrb[29].mxu0 }
 0x152   : > { %v1921_v31 = vadd.f32 %v1920_v12, %v1919_v15  ;;  %v1960_v35 = vpop.f32.mrb[29].mxu1  ;;  %v1922_v20 = vpop.f32.mrb[30].mxu0 }
 0x153   : > { %v1961_v61 = vadd.f32 %v1960_v35, %v1959_v34  ;;  %v1962_v62 = vpop.f32.mrb[30].mxu1  ;;  %v1923_v36 = vpop.f32.mrb[31].mxu0 }
 0x154   : > { %v1416_v29 = vadd.f32 %v1921_v31, %v1351_v37  ;;  %v1924_v13 = vadd.f32 %v1923_v36, %v1922_v20  ;;  %v1963_v14 = vpop.f32.mrb[31].mxu1 }
 0x155   : > { %v1964_v38 = vadd.f32 %v1963_v14, %v1962_v62 }
 0x156   : > { %v1419_v43 = vadd.f32 %v1924_v13, %v2592_v39  ;;  %v1481_v44 = vadd.f32 %v1961_v61, %v1416_v29 }
 0x158   : > { %v1995_v47 = vpop.f32.mrb[32].mxu0  ;;  %v1484_v50 = vadd.f32 %v1964_v38, %v1419_v43 }
 0x159   : > { %v1530_v52 = vadd.f32 %v1995_v47, %v1465_v51  ;;  %v1999_v53 = vpop.f32.mrb[32].mxu1  ;;  %v1521_v37 = vpop.f32.mrb[33].mxu0 }
 0x15a   : > { %v1546_v57 = vadd.f32 %v1999_v53, %v1481_v44  ;;  %v1522_v39 = vadd.f32 %v1521_v37, %v2594_v56  ;;  %v1537_v59 = vpop.f32.mrb[33].mxu1  ;;  %v1996_v60 = vpop.f32.mrb[34].mxu0 }
 0x15b   : > { %v1570_v2 = vadd.f32 %v1789_v46, %v1530_v52  ;;  %v1538_v3 = vadd.f32 %v1537_v59, %v1473_v30  ;;  %v1533_v4 = vadd.f32 %v1996_v60, %v1468_v9  ;;  %v2000_v49 = vpop.f32.mrb[34].mxu1  ;;  %v1524_v5 = vpop.f32.mrb[35].mxu0 }
 0x15c   : > { %v1574_v41 = vadd.f32 %v1797_v21, %v1546_v57  ;;  %v1568_v7 = vadd.f32 %v1785_v48, %v1522_v39  ;;  %v1549_v56 = vadd.f32 %v2000_v49, %v1484_v50  ;;  %v1525_v8 = vadd.f32 %v1524_v5, %v2596_v58  ;;  %v1540_v51 = vpop.f32.mrb[35].mxu1 }
 0x15d   : > { %1578 = vst [vmem:[%s2607_s17 + $0x10] sm:$0xff] %v1570_v2  ;;  %v1572_v0 = vadd.f32 %v1793_v54, %v1538_v3  ;;  %v1571_v11 = vadd.f32 %v1790_v55, %v1533_v4  ;;  %v1541_v16 = vadd.f32 %v1540_v51, %v1476_v33 }
 0x15e   : > { %1582 = vst [vmem:[%s2607_s17 + $0x30] sm:$0xff] %v1574_v41  ;;  %1576 = vst [vmem:[%s2607_s17] sm:$0xff] %v1568_v7  ;;  %v1575_v9 = vadd.f32 %v1798_v63, %v1549_v56  ;;  %v1569_v17 = vadd.f32 %v1786_v1, %v1525_v8 }
 0x15f   : > { %1580 = vst [vmem:[%s2607_s17 + $0x20] sm:$0xff] %v1572_v0  ;;  %1579 = vst [vmem:[%s2607_s17 + $0x18] sm:$0xff] %v1571_v11  ;;  %v1573_v18 = vadd.f32 %v1794_v6, %v1541_v16 }
 0x160   : > { %1583 = vst [vmem:[%s2607_s17 + $0x38] sm:$0xff] %v1575_v9  ;;  %1577 = vst [vmem:[%s2607_s17 + $0x8] sm:$0xff] %v1569_v17 }
 0x161   : > { %1581 = vst [vmem:[%s2607_s17 + $0x28] sm:$0xff] %v1573_v18 }
 0x162 PF: > { %p12_p9 = scmp.ge.s32.totalorder %s2186_s22, 4   ;;  %s2636_s18 = smov %s2132_s19 }
 0x163   : > { %s2637_s19 = smov %s2195_s25  ;;  %s2638_s20 = smov %s2186_s22 }
 0x164   :  { %14 = sbr.rel (!%p12_p9) target bundleno = 2 (0x2), region = 167 }

// kernel: forward.4
= control target key start
LH: loop header
LB: loop body
LE: loop exit
PB: predicated region body
PF: predicated region fallthrough
CT: control target
= control target key end

     0   :  { %s3524_s21 = smov 0   ;;  %s4307_s0 = inlined_call_operand.vmem [shape: f32[2,16,16,128], index: 0, kind: input, shape index: {}]   ;;  %s4308_s1 = inlined_call_operand.vmem [shape: bf16[1152,256], index: 1, kind: input, shape index: {}]   ;;  %s4309_s2 = inlined_call_operand.vmem [shape: f32[1,128], index: 2, kind: input, shape index: {}]   ;;  %s4310_s3 = inlined_call_operand.vmem [shape: f32[1,128], index: 3, kind: input, shape index: {}]   ;;  %s4311_s4 = inlined_call_operand.vmem [shape: bf16[2,8,8,256], index: 4, kind: output, shape index: {0}]   ;;  %s4312_s5 = inlined_call_operand.vmem [shape: f32[2,1,128], index: 5, kind: output, shape index: {1}]   ;;  %s4313_s6 = inlined_call_operand.vmem [shape: f32[2,1,128], index: 6, kind: output, shape index: {2}]  }
   0x1 LB: > { %s2774_s22 = sadd.s32 4294967295, %s3485_s21   ;;  %p2778_p0 = scmp.ge.s32.totalorder %s3485_s21, 1  ;;  %s3485_s21 = sphi %s3524_s21, %s17_s21  }
   0x2   : > { %p217_p1 = scmp.lt.s32.totalorder %s3485_s21, 3 }
   0x4   : > { %p218_p2 = pnand %p2778_p0, %p217_p1 }
   0x5   : > { %v3335_v0 = vld [vmem:[%s4308_s1 + $0x84] ss:$8 sps:$4 sm:$0xff] (!%p218_p2)   ;;  %v3339_v4 = vld [vmem:[%s4308_s1 + $0x94] ss:$8 sps:$4 sm:$0xff] (!%p218_p2)   ;;  %p3630_p3 = scmp.lt.s32.totalorder (!%p218_p2), %s2774_s22, 1  ;;  %v3487_v32 = vmov (!%p218_p2), 0.0  }
   0x6   : > { %221 = sbr.rel (%p218_p2) target bundleno = 438 (0x1b6), region = 36  ;;  %v3336_v1 = vld [vmem:[%s4308_s1 + $0x184] ss:$8 sps:$4 sm:$0xff] (!%p218_p2)   ;;  %2933 = vmatprep.subr.bf16.mxu0 (!%p218_p2), %v3335_v0  ;;  %v3340_v5 = vld [vmem:[%s4308_s1 + $0x194] ss:$8 sps:$4 sm:$0xff] (!%p218_p2)   ;;  %380 = vst [vmem:[#allocation2] sm:$0xff] (!%p218_p2), %v3487_v32 }
   0x7   : > { %v3337_v2 = vld [vmem:[%s4308_s1 + $0x4] ss:$8 sps:$4 sm:$0xff] (!%p218_p2)   ;;  %2973 = vmatprep.subr.bf16.mxu1 (!%p218_p2), %v3336_v1  ;;  %v3341_v6 = vld [vmem:[%s4308_s1 + $0x14] ss:$8 sps:$4 sm:$0xff] (!%p218_p2)   ;;  %381 = vst [vmem:[#allocation2 + $0x8] sm:$0xff] (!%p218_p2), %v3487_v32  ;;  %386 = vst [vmem:[#allocation2 + $0x30] sm:$0xff] (!%p218_p2), %v3487_v32 }
   0x8   : > { %v3338_v3 = vld [vmem:[%s4308_s1 + $0x104] ss:$8 sps:$4 sm:$0xff] (!%p218_p2)   ;;  %2934 = vmatpush3.bf16.msra.mxu0 (!%p218_p2), %v3337_v2  ;;  %v3342_v7 = vld [vmem:[%s4308_s1 + $0x114] ss:$8 sps:$4 sm:$0xff] (!%p218_p2)   ;;  %387 = vst [vmem:[#allocation2 + $0x38] sm:$0xff] (!%p218_p2), %v3487_v32  ;;  %383 = vst [vmem:[#allocation2 + $0x18] sm:$0xff] (!%p218_p2), %v3487_v32 }
   0x9   : > { %2974 = vmatpush3.bf16.msra.mxu1 (!%p218_p2), %v3338_v3  ;;  %2935 = vmatprep.subr.bf16.mxu0 (!%p218_p2), %v3339_v4  ;;  %v3343_v8 = vld [vmem:[%s4308_s1 + $0xa4] ss:$8 sps:$4 sm:$0xff] (!%p218_p2)   ;;  %v3347_v12 = vld [vmem:[%s4308_s1 + $0xb4] ss:$8 sps:$4 sm:$0xff] (!%p218_p2)   ;;  %388 = vst [vmem:[#allocation2 + $0x40] sm:$0x3] (!%p218_p2), %v3487_v32 }
   0xa   : > { %2975 = vmatprep.subr.bf16.mxu1 (!%p218_p2), %v3340_v5  ;;  %v3344_v9 = vld [vmem:[%s4308_s1 + $0x1a4] ss:$8 sps:$4 sm:$0xff] (!%p218_p2)   ;;  %v3348_v13 = vld [vmem:[%s4308_s1 + $0x1b4] ss:$8 sps:$4 sm:$0xff] (!%p218_p2)   ;;  %382 = vst [vmem:[#allocation2 + $0x10] sm:$0x3] (!%p218_p2), %v3487_v32 }
   0xb   : > { %v3345_v10 = vld [vmem:[%s4308_s1 + $0x24] ss:$8 sps:$4 sm:$0xff] (!%p218_p2)   ;;  %v3349_v14 = vld [vmem:[%s4308_s1 + $0x34] ss:$8 sps:$4 sm:$0xff] (!%p218_p2)   ;;  %384 = vst [vmem:[#allocation2 + $0x20] sm:$0xff] (!%p218_p2), %v3487_v32  ;;  %389 = vst [vmem:[#allocation2 + $0x48] sm:$0xff] (!%p218_p2), %v3487_v32 }
   0xc   : > { %2936 = vmatpush3.bf16.msra.mxu0 (!%p218_p2), %v3341_v6  ;;  %v3346_v11 = vld [vmem:[%s4308_s1 + $0x124] ss:$8 sps:$4 sm:$0xff] (!%p218_p2)   ;;  %v3350_v15 = vld [vmem:[%s4308_s1 + $0x134] ss:$8 sps:$4 sm:$0xff] (!%p218_p2)   ;;  %385 = vst [vmem:[#allocation2 + $0x28] sm:$0x3] (!%p218_p2), %v3487_v32 }
   0xd   : > { %2976 = vmatpush3.bf16.msra.mxu1 %v3342_v7  ;;  %2937 = vmatprep.subr.bf16.mxu0 %v3343_v8  ;;  %v3351_v16 = vld [vmem:[%s4308_s1 + $0xc4] ss:$8 sps:$4 sm:$0xff]   ;;  %v3355_v20 = vld [vmem:[%s4308_s1 + $0xd4] ss:$8 sps:$4 sm:$0xff]   ;;  %390 = vst [vmem:[#allocation2 + $0x50] sm:$0xff] %v3487_v32  ;;  %392 = vst [vmem:[#allocation2 + $0x60] sm:$0xff] %v3487_v32 }
   0xe   : > { %2977 = vmatprep.subr.bf16.mxu1 %v3344_v9  ;;  %v3352_v17 = vld [vmem:[%s4308_s1 + $0x1c4] ss:$8 sps:$4 sm:$0xff]   ;;  %v3356_v21 = vld [vmem:[%s4308_s1 + $0x1d4] ss:$8 sps:$4 sm:$0xff]   ;;  %391 = vst [vmem:[#allocation2 + $0x58] sm:$0x3] %v3487_v32 }
   0xf   : > { %v3353_v18 = vld [vmem:[%s4308_s1 + $0x44] ss:$8 sps:$4 sm:$0xff]   ;;  %v3357_v22 = vld [vmem:[%s4308_s1 + $0x54] ss:$8 sps:$4 sm:$0xff]   ;;  %393 = vst [vmem:[#allocation2 + $0x68] sm:$0xff] %v3487_v32  ;;  %395 = vst [vmem:[#allocation2 + $0x78] sm:$0xff] %v3487_v32 }
  0x10   : > { %2938 = vmatpush3.bf16.msra.mxu0 %v3345_v10  ;;  %v3354_v19 = vld [vmem:[%s4308_s1 + $0x144] ss:$8 sps:$4 sm:$0xff]   ;;  %v3358_v23 = vld [vmem:[%s4308_s1 + $0x154] ss:$8 sps:$4 sm:$0xff]   ;;  %394 = vst [vmem:[#allocation2 + $0x70] sm:$0x3] %v3487_v32 }
  0x11   : > { %2978 = vmatpush3.bf16.msra.mxu1 %v3346_v11  ;;  %2939 = vmatprep.subr.bf16.mxu0 %v3347_v12  ;;  %v3359_v24 = vld [vmem:[%s4308_s1 + $0xe4] ss:$8 sps:$4 sm:$0xff]   ;;  %v3363_v28 = vld [vmem:[%s4308_s1 + $0xf4] ss:$8 sps:$4 sm:$0xff]   ;;  %396 = vst [vmem:[#allocation2 + $0x80] sm:$0xff] %v3487_v32  ;;  %398 = vst [vmem:[#allocation2 + $0x90] sm:$0xff] %v3487_v32 }
  0x12   : > { %2979 = vmatprep.subr.bf16.mxu1 %v3348_v13  ;;  %v3360_v25 = vld [vmem:[%s4308_s1 + $0x1e4] ss:$8 sps:$4 sm:$0xff]   ;;  %v3364_v29 = vld [vmem:[%s4308_s1 + $0x1f4] ss:$8 sps:$4 sm:$0xff]   ;;  %397 = vst [vmem:[#allocation2 + $0x88] sm:$0x3] %v3487_v32 }
  0x13   : > { %v3361_v26 = vld [vmem:[%s4308_s1 + $0x64] ss:$8 sps:$4 sm:$0xff]   ;;  %v3365_v30 = vld [vmem:[%s4308_s1 + $0x74] ss:$8 sps:$4 sm:$0xff]   ;;  %399 = vst [vmem:[#allocation2 + $0x98] sm:$0xff] %v3487_v32  ;;  %401 = vst [vmem:[#allocation2 + $0xa8] sm:$0xff] %v3487_v32 }
  0x14   : > { %2940 = vmatpush3.bf16.msra.mxu0 %v3349_v14  ;;  %v3362_v27 = vld [vmem:[%s4308_s1 + $0x164] ss:$8 sps:$4 sm:$0xff]   ;;  %v3366_v31 = vld [vmem:[%s4308_s1 + $0x174] ss:$8 sps:$4 sm:$0xff]   ;;  %400 = vst [vmem:[#allocation2 + $0xa0] sm:$0x3] %v3487_v32 }
  0x15   : > { %2980 = vmatpush3.bf16.msra.mxu1 %v3350_v15  ;;  %2941 = vmatprep.subr.bf16.mxu0 %v3351_v16  ;;  %402 = vst [vmem:[#allocation2 + $0xb0] sm:$0xff] %v3487_v32  ;;  %403 = vst [vmem:[#allocation2 + $0xb8] sm:$0x3] %v3487_v32  ;;  %s4316_s22 = smov (!%p3630_p3, %s2774_s22), 1  ;;  %v3367_v33 = vld [vmem:[%s4308_s1 + $0x284] ss:$8 sps:$4 sm:$0xff]  }
  0x16   : > { %2981 = vmatprep.subr.bf16.mxu1 %v3352_v17  ;;  %404 = vst [vmem:[#allocation2 + $0xc0] sm:$0xff] %v3487_v32  ;;  %405 = vst [vmem:[#allocation2 + $0xc8] sm:$0xff] %v3487_v32  ;;  %v3646_v34 = vld [vmem:[%s4309_s2] ss:$0 sm:$0xff]  ;;  %s2931_s26 = sshll.u32 %s4316_s22, 8  ;;  %s2932_s14 = sshll.u32 %s4316_s22, 6 }
  0x17   : > { %406 = vst [vmem:[#allocation2 + $0xd0] sm:$0x3] %v3487_v32  ;;  %407 = vst [vmem:[#allocation2 + $0xd8] sm:$0xff] %v3487_v32  ;;  %v3369_v35 = vld [vmem:[%s4308_s1 + $0x384] ss:$8 sps:$4 sm:$0xff]   ;;  %s3655_s7 = scalar_lea.vmem %s4307_s0, %s2931_s26  ;;  %s4272_s17 = scalar_lea.vmem %s4311_s4, %s2932_s14 }
  0x18   : > { %2942 = vmatpush3.bf16.msra.mxu0 %v3353_v18  ;;  %408 = vst [vmem:[#allocation2 + $0xe0] sm:$0xff] %v3487_v32  ;;  %409 = vst [vmem:[#allocation2 + $0xe8] sm:$0x3] %v3487_v32  ;;  %v3660_v36 = vld [vmem:[%s4310_s3] ss:$0 sm:$0xff]  ;;  %v274_v37 = vld [vmem:[%s3655_s7 + $0x10] sm:$0xff]  ;;  %s265_s20 = scalar_lea.vmem %s4312_s5, %s4316_s22  ;;  %s268_s25 = scalar_lea.vmem %s4313_s6, %s4316_s22 }
  0x19   : > { %2982 = vmatpush3.bf16.msra.mxu1 %v3354_v19  ;;  %2943 = vmatprep.subr.bf16.mxu0 %v3355_v20  ;;  %410 = vst [vmem:[#allocation2 + $0xf0] sm:$0xff] %v3487_v32  ;;  %411 = vst [vmem:[#allocation2 + $0xf8] sm:$0xff] %v3487_v32  ;;  %v275_v38 = vld [vmem:[%s3655_s7 + $0x18] sm:$0xff]  ;;  %v272_v39 = vld [vmem:[%s3655_s7] sm:$0xff]  ;;  %v312_v40 = vsub.f32 %v274_v37, %v3646_v34 }
  0x1a   : > { %2983 = vmatprep.subr.bf16.mxu1 %v3356_v21  ;;  %412 = vst [vmem:[#allocation2 + $0x100] sm:$0x3] %v3487_v32  ;;  %413 = vst [vmem:[#allocation2 + $0x108] sm:$0xff] %v3487_v32  ;;  %v313_v41 = vsub.f32 %v275_v38, %v3646_v34  ;;  %v273_v42 = vld [vmem:[%s3655_s7 + $0x8] sm:$0xff]  ;;  %v276_v43 = vld [vmem:[%s3655_s7 + $0x20] sm:$0xff]  ;;  %v310_v45 = vsub.f32 %v272_v39, %v3646_v34 }
  0x1b   : > { %414 = vst [vmem:[#allocation2 + $0x110] sm:$0xff] %v3487_v32  ;;  %415 = vst [vmem:[#allocation2 + $0x118] sm:$0x3] %v3487_v32  ;;  %v277_v44 = vld [vmem:[%s3655_s7 + $0x28] sm:$0xff]  ;;  %v311_v46 = vsub.f32 %v273_v42, %v3646_v34  ;;  %v314_v47 = vsub.f32 %v276_v43, %v3646_v34  ;;  %v350_v49 = vmul.f32 %v3660_v36, %v312_v40  ;;  %v278_v55 = vld [vmem:[%s3655_s7 + $0x30] sm:$0xff] }
  0x1c   : > { %2944 = vmatpush3.bf16.msra.mxu0 %v3357_v22  ;;  %416 = vst [vmem:[#allocation2 + $0x120] sm:$0xff] %v3487_v32  ;;  %417 = vst [vmem:[#allocation2 + $0x128] sm:$0xff] %v3487_v32  ;;  %v315_v48 = vsub.f32 %v277_v44, %v3646_v34  ;;  %v351_v50 = vmul.f32 %v3660_v36, %v313_v41  ;;  %v348_v51 = vmul.f32 %v3660_v36, %v310_v45  ;;  %v279_v56 = vld [vmem:[%s3655_s7 + $0x38] sm:$0xff]  ;;  %v282_v57 = vld [vmem:[%s3655_s7 + $0x50] sm:$0xff] }
  0x1d   : > { %2984 = vmatpush3.bf16.msra.mxu1 %v3358_v23  ;;  %2945 = vmatprep.subr.bf16.mxu0 %v3359_v24  ;;  %418 = vst [vmem:[#allocation2 + $0x130] sm:$0x3] %v3487_v32  ;;  %419 = vst [vmem:[#allocation2 + $0x138] sm:$0xff] %v3487_v32  ;;  %v349_v52 = vmul.f32 %v3660_v36, %v311_v46  ;;  %v352_v53 = vmul.f32 %v3660_v36, %v314_v47  ;;  %v283_v58 = vld [vmem:[%s3655_s7 + $0x58] sm:$0xff]  ;;  %v280_v62 = vld [vmem:[%s3655_s7 + $0x40] sm:$0xff] }
  0x1e   : > { %2985 = vmatprep.subr.bf16.mxu1 %v3360_v25  ;;  %420 = vst [vmem:[#allocation2 + $0x140] sm:$0xff] %v3487_v32  ;;  %421 = vst [vmem:[#allocation2 + $0x148] sm:$0x3] %v3487_v32  ;;  %v353_v54 = vmul.f32 %v3660_v36, %v315_v48  ;;  %v316_v59 = vsub.f32 %v278_v55, %v3646_v34  ;;  %v317_v60 = vsub.f32 %v279_v56, %v3646_v34  ;;  %v281_v63 = vld [vmem:[%s3655_s7 + $0x48] sm:$0xff]  ;;  %v284_v2 = vld [vmem:[%s3655_s7 + $0x60] sm:$0xff] }
  0x1f   : > { %422 = vst [vmem:[#allocation2 + $0x150] sm:$0xff] %v3487_v32  ;;  %423 = vst [vmem:[#allocation2 + $0x158] sm:$0xff] %v3487_v32  ;;  %v320_v61 = vsub.f32 %v282_v57, %v3646_v34  ;;  %v491_v0 = vld [vmem:[#allocation2 + $0x1] ss:$2 sm:$0xff]  ;;  %v321_v1 = vsub.f32 %v283_v58, %v3646_v34  ;;  %v318_v4 = vsub.f32 %v280_v62, %v3646_v34  ;;  %v467_v6 = vld [vmem:[#allocation2] ss:$2 sm:$0xff] }
  0x20   : > { %2946 = vmatpush3.bf16.msra.mxu0 %v3361_v26  ;;  %424 = vst [vmem:[#allocation2 + $0x160] sm:$0x3] %v3487_v32  ;;  %425 = vst [vmem:[#allocation2 + $0x168] sm:$0xff] %v3487_v32  ;;  %v285_v3 = vld [vmem:[%s3655_s7 + $0x68] sm:$0xff]  ;;  %v319_v5 = vsub.f32 %v281_v63, %v3646_v34  ;;  %v354_v7 = vmul.f32 %v3660_v36, %v316_v59  ;;  %v355_v8 = vmul.f32 %v3660_v36, %v317_v60  ;;  %v3379_v48 = vld [vmem:[%s4308_s1 + $0x2b4] ss:$8 sps:$4 sm:$0xff]  }
  0x21   : > { %2986 = vmatpush3.bf16.msra.mxu1 %v3362_v27  ;;  %2947 = vmatprep.subr.bf16.mxu0 %v3363_v28  ;;  %426 = vst [vmem:[#allocation2 + $0x170] sm:$0xff] %v3487_v32  ;;  %427 = vst [vmem:[#allocation2 + $0x178] sm:$0x3] %v3487_v32  ;;  %v358_v9 = vmul.f32 %v3660_v36, %v320_v61  ;;  %v322_v10 = vsub.f32 %v284_v2, %v3646_v34  ;;  %v515_v11 = vld [vmem:[#allocation2 + $0x2] ss:$2 sm:$0xff]  ;;  %v291_v57 = vld [vmem:[%s3655_s7 + $0x98] sm:$0xff] }
  0x22   : > { %2987 = vmatprep.subr.bf16.mxu1 %v3364_v29  ;;  %428 = vst [vmem:[#allocation2 + $0x180] sm:$0xff] %v3487_v32  ;;  %429 = vst [vmem:[#allocation2 + $0x188] sm:$0xff] %v3487_v32  ;;  %v359_v12 = vmul.f32 %v3660_v36, %v321_v1  ;;  %v323_v13 = vsub.f32 %v285_v3, %v3646_v34  ;;  %v356_v14 = vmul.f32 %v3660_v36, %v318_v4  ;;  %v3368_v16 = vld [vmem:[%s4308_s1 + $0x204] ss:$8 sps:$4 sm:$0xff]   ;;  %v3371_v29 = vld [vmem:[%s4308_s1 + $0x294] ss:$8 sps:$4 sm:$0xff]  }
  0x23   : > { %430 = vst [vmem:[#allocation2 + $0x190] sm:$0x3] %v3487_v32  ;;  %437 = vst [vmem:[#allocation2 + $0x31] sm:$0xff] %v350_v49  ;;  %v357_v15 = vmul.f32 %v3660_v36, %v319_v5  ;;  %v360_v17 = vmul.f32 %v3660_v36, %v322_v10  ;;  %v3370_v21 = vld [vmem:[%s4308_s1 + $0x304] ss:$8 sps:$4 sm:$0xff]   ;;  %v286_v49 = vld [vmem:[%s3655_s7 + $0x70] sm:$0xff]  ;;  %v329_v62 = vsub.f32 %v291_v57, %v3646_v34 }
  0x24   : > { %2948 = vmatpush3.bf16.msra.mxu0 %v3365_v30  ;;  %438 = vst [vmem:[#allocation2 + $0x39] sm:$0xff] %v351_v50  ;;  %435 = vst [vmem:[#allocation2 + $0x19] sm:$0xff] %v348_v51  ;;  %v361_v22 = vmul.f32 %v3660_v36, %v323_v13  ;;  %v3372_v30 = vld [vmem:[%s4308_s1 + $0x214] ss:$8 sps:$4 sm:$0xff]   ;;  %v3376_v43 = vld [vmem:[%s4308_s1 + $0x224] ss:$8 sps:$4 sm:$0xff]   ;;  %v324_v55 = vsub.f32 %v286_v49, %v3646_v34 }
  0x25   : > { %2988 = vmatpush3.bf16.msra.mxu1 %v3366_v31  ;;  %3013 = vmatprep.subr.bf16.mxu0 %v3367_v33  ;;  %436 = vst [vmem:[#allocation2 + $0x21] sm:$0xff] %v349_v52  ;;  %439 = vst [vmem:[#allocation2 + $0x49] sm:$0xff] %v352_v53  ;;  %v3373_v31 = vld [vmem:[%s4308_s1 + $0x394] ss:$8 sps:$4 sm:$0xff]   ;;  %v3375_v33 = vld [vmem:[%s4308_s1 + $0x2a4] ss:$8 sps:$4 sm:$0xff]  }
  0x26   : > { %3053 = vmatprep.subr.bf16.mxu1 %v3369_v35  ;;  %440 = vst [vmem:[#allocation2 + $0x51] sm:$0xff] %v353_v54  ;;  %441 = vst [vmem:[#allocation2 + $0x61] sm:$0xff] %v354_v7  ;;  %v3374_v32 = vld [vmem:[%s4308_s1 + $0x314] ss:$8 sps:$4 sm:$0xff]   ;;  %v3377_v35 = vld [vmem:[%s4308_s1 + $0x3a4] ss:$8 sps:$4 sm:$0xff]   ;;  %v362_v63 = vmul.f32 %v3660_v36, %v324_v55  ;;  %v367_v7 = vmul.f32 %v3660_v36, %v329_v62 }
  0x27   : > { %442 = vst [vmem:[#allocation2 + $0x69] sm:$0xff] %v355_v8  ;;  %445 = vst [vmem:[#allocation2 + $0x91] sm:$0xff] %v358_v9  ;;  %v3378_v47 = vld [vmem:[%s4308_s1 + $0x324] ss:$8 sps:$4 sm:$0xff]   ;;  %v3381_v52 = vld [vmem:[%s4308_s1 + $0x3b4] ss:$8 sps:$4 sm:$0xff]  }
  0x28   : > { %446 = vst [vmem:[#allocation2 + $0x99] sm:$0xff] %v359_v12  ;;  %443 = vst [vmem:[#allocation2 + $0x79] sm:$0xff] %v356_v14  ;;  %v287_v53 = vld [vmem:[%s3655_s7 + $0x78] sm:$0xff]  ;;  %v290_v54 = vld [vmem:[%s3655_s7 + $0x90] sm:$0xff] }
  0x29   : > { %444 = vst [vmem:[#allocation2 + $0x81] sm:$0xff] %v357_v15  ;;  %447 = vst [vmem:[#allocation2 + $0xa9] sm:$0xff] %v360_v17  ;;  %v325_v58 = vsub.f32 %v287_v53, %v3646_v34  ;;  %v328_v59 = vsub.f32 %v290_v54, %v3646_v34  ;;  %v288_v60 = vld [vmem:[%s3655_s7 + $0x80] sm:$0xff]  ;;  %v289_v61 = vld [vmem:[%s3655_s7 + $0x88] sm:$0xff] }
  0x2a   : > { %448 = vst [vmem:[#allocation2 + $0xb1] sm:$0xff] %v361_v22  ;;  %v293_v1 = vld [vmem:[%s3655_s7 + $0xa8] sm:$0xff]  ;;  %v326_v2 = vsub.f32 %v288_v60, %v3646_v34  ;;  %v3380_v3 = vld [vmem:[%s4308_s1 + $0x234] ss:$8 sps:$4 sm:$0xff]   ;;  %449 = vst [vmem:[#allocation2 + $0xc1] sm:$0xff] %v362_v63 }
  0x2b   : > { %v493_v18 = vld [vmem:[#allocation2 + $0x31] ss:$2 sm:$0xff]  ;;  %v469_v19 = vld [vmem:[#allocation2 + $0x30] ss:$2 sm:$0xff]  ;;  %v363_v4 = vmul.f32 %v3660_v36, %v325_v58  ;;  %v366_v5 = vmul.f32 %v3660_v36, %v328_v59  ;;  %v331_v9 = vsub.f32 %v293_v1, %v3646_v34  ;;  %v3383_v13 = vld [vmem:[%s4308_s1 + $0x2c4] ss:$8 sps:$4 sm:$0xff]  }
  0x2c   : > { %v517_v20 = vld [vmem:[#allocation2 + $0x32] ss:$2 sm:$0xff]  ;;  %v3710_v23 = vpack.c.bf16 %v493_v18, %v491_v0  ;;  %v3712_v26 = vpack.c.bf16 %v469_v19, %v467_v6  ;;  %v327_v6 = vsub.f32 %v289_v61, %v3646_v34  ;;  %454 = vst [vmem:[#allocation2 + $0xf9] sm:$0xff] %v367_v7  ;;  %v3384_v17 = vld [vmem:[%s4308_s1 + $0x244] ss:$8 sps:$4 sm:$0xff]  }
  0x2d   : > { %v538_v24 = vld [vmem:[#allocation2 + $0x18] ss:$2 sm:$0xff]  ;;  %v540_v25 = vld [vmem:[#allocation2 + $0x48] ss:$2 sm:$0xff]  ;;  %v3714_v27 = vpack.c.bf16 %v517_v20, %v515_v11  ;;  %450 = vst [vmem:[#allocation2 + $0xc9] sm:$0xff] %v363_v4  ;;  %453 = vst [vmem:[#allocation2 + $0xf1] sm:$0xff] %v366_v5  ;;  %v364_v11 = vmul.f32 %v3660_v36, %v326_v2  ;;  %v369_v15 = vmul.f32 %v3660_v36, %v331_v9 }
  0x2e   : > { %v3716_v28 = vpack.c.bf16 %v540_v25, %v538_v24  ;;  %1325 = vmatprep.mubr.bf16.mxu0 %v3710_v23  ;;  %v495_v37 = vld [vmem:[#allocation2 + $0x61] ss:$2 sm:$0xff]  ;;  %v471_v38 = vld [vmem:[#allocation2 + $0x60] ss:$2 sm:$0xff]  ;;  %v3382_v10 = vld [vmem:[%s4308_s1 + $0x334] ss:$8 sps:$4 sm:$0xff]   ;;  %v365_v12 = vmul.f32 %v3660_v36, %v327_v6 }
  0x2f   : > { %1326 = vmatmul.mubr.bf16.vlgmr.msra.gmra.mrb[0].mxu0 %v3712_v26  ;;  %v519_v39 = vld [vmem:[#allocation2 + $0x62] ss:$2 sm:$0xff]  ;;  %v497_v40 = vld [vmem:[#allocation2 + $0x91] ss:$2 sm:$0xff]  ;;  %v521_v46 = vld [vmem:[#allocation2 + $0x92] ss:$2 sm:$0xff] }
  0x30   : > { %1390 = vmatprep.mubr.bf16.mxu1 %v3716_v28  ;;  %3014 = vmatpush3.bf16.msra.mxu0 %v3368_v16  ;;  %v542_v41 = vld [vmem:[#allocation2 + $0x78] ss:$2 sm:$0xff]  ;;  %v3743_v44 = vpack.c.bf16 %v497_v40, %v495_v37  ;;  %v3754_v51 = vpack.c.bf16 %v521_v46, %v519_v39  ;;  %451 = vst [vmem:[#allocation2 + $0xd9] sm:$0xff] %v364_v11  ;;  %452 = vst [vmem:[#allocation2 + $0xe1] sm:$0xff] %v365_v12  ;;  %v294_v22 = vld [vmem:[%s3655_s7 + $0xb0] sm:$0xff] }
  0x31   : > { %1391 = vmatmul.mubr.bf16.vlgmr.msra.gmra.mrb[0].mxu1 %v3714_v27  ;;  %3015 = vmatprep.subr.bf16.mxu0 %v3371_v29  ;;  %v473_v42 = vld [vmem:[#allocation2 + $0x90] ss:$2 sm:$0xff]  ;;  %v292_v0 = vld [vmem:[%s3655_s7 + $0xa0] sm:$0xff]  ;;  %456 = vst [vmem:[#allocation2 + $0x111] sm:$0xff] %v369_v15  ;;  %v301_v58 = vld [vmem:[%s3655_s7 + $0xe8] sm:$0xff] }
  0x32   : > { %3054 = vmatpush3.bf16.msra.mxu1 %v3370_v21  ;;  %v3745_v45 = vpack.c.bf16 %v473_v42, %v471_v38  ;;  %v544_v50 = vld [vmem:[#allocation2 + $0xa8] ss:$2 sm:$0xff]  ;;  %1333 = vmatprep.mubr.bf16.mxu0 %v3743_v44  ;;  %v330_v8 = vsub.f32 %v292_v0, %v3646_v34  ;;  %v295_v24 = vld [vmem:[%s3655_s7 + $0xb8] sm:$0xff]  ;;  %v300_v57 = vld [vmem:[%s3655_s7 + $0xe0] sm:$0xff]  ;;  %v339_v63 = vsub.f32 %v301_v58, %v3646_v34 }
  0x33   : > { %3055 = vmatprep.subr.bf16.mxu1 %v3373_v31  ;;  %v3763_v56 = vpack.c.bf16 %v544_v50, %v542_v41  ;;  %v3385_v16 = vld [vmem:[%s4308_s1 + $0x3c4] ss:$8 sps:$4 sm:$0xff]   ;;  %v3387_v19 = vld [vmem:[%s4308_s1 + $0x2d4] ss:$8 sps:$4 sm:$0xff]   ;;  %v338_v62 = vsub.f32 %v300_v57, %v3646_v34 }
  0x34   : > { %3016 = vmatpush3.bf16.msra.mxu0 %v3372_v30  ;;  %v368_v14 = vmul.f32 %v3660_v36, %v330_v8  ;;  %v3386_v18 = vld [vmem:[%s4308_s1 + $0x344] ss:$8 sps:$4 sm:$0xff]   ;;  %v3388_v20 = vld [vmem:[%s4308_s1 + $0x254] ss:$8 sps:$4 sm:$0xff]   ;;  %v332_v30 = vsub.f32 %v294_v22, %v3646_v34  ;;  %v377_v5 = vmul.f32 %v3660_v36, %v339_v63  ;;  %v3404_v63 = vld [vmem:[%s4308_s1 + $0x10] ss:$8 sps:$4 sm:$0xff]  }
  0x35   : > { %3017 = vmatprep.subr.bf16.mxu0 %v3375_v33  ;;  %1398 = vmatprep.mubr.bf16.mxu1 %v3763_v56  ;;  %v3389_v21 = vld [vmem:[%s4308_s1 + $0x3d4] ss:$8 sps:$4 sm:$0xff]   ;;  %v499_v31 = vld [vmem:[#allocation2 + $0xc1] ss:$2 sm:$0xff]  ;;  %v523_v33 = vld [vmem:[#allocation2 + $0xc2] ss:$2 sm:$0xff]  ;;  %v376_v4 = vmul.f32 %v3660_v36, %v338_v62 }
  0x36   : > { %3056 = vmatpush3.bf16.msra.mxu1 %v3374_v32  ;;  %455 = vst [vmem:[#allocation2 + $0x109] sm:$0xff] %v368_v14  ;;  %v298_v25 = vld [vmem:[%s3655_s7 + $0xd0] sm:$0xff]  ;;  %v299_v29 = vld [vmem:[%s3655_s7 + $0xd8] sm:$0xff]  ;;  %v475_v32 = vld [vmem:[#allocation2 + $0xc0] ss:$2 sm:$0xff]  ;;  %v370_v42 = vmul.f32 %v3660_v36, %v332_v30 }
  0x37   : > { %3057 = vmatprep.subr.bf16.mxu1 %v3377_v35  ;;  %1334 = vmatmul.mubr.bf16.gmra.mrb[4].mxu0 %v3745_v45  ;;  %v333_v35 = vsub.f32 %v295_v24, %v3646_v34  ;;  %v336_v37 = vsub.f32 %v298_v25, %v3646_v34  ;;  %v337_v38 = vsub.f32 %v299_v29, %v3646_v34  ;;  %v501_v39 = vld [vmem:[#allocation2 + $0xf1] ss:$2 sm:$0xff]  ;;  %v477_v40 = vld [vmem:[#allocation2 + $0xf0] ss:$2 sm:$0xff]  ;;  %v296_v50 = vld [vmem:[%s3655_s7 + $0xc0] sm:$0xff] }
  0x38   : > { %3018 = vmatpush3.bf16.msra.mxu0 %v3376_v43  ;;  %v525_v41 = vld [vmem:[#allocation2 + $0xf2] ss:$2 sm:$0xff]  ;;  %v3824_v43 = vpack.c.bf16 %v501_v39, %v499_v31  ;;  %457 = vst [vmem:[#allocation2 + $0x121] sm:$0xff] %v370_v42  ;;  %v334_v59 = vsub.f32 %v296_v50, %v3646_v34  ;;  %v3392_v6 = vld [vmem:[%s4308_s1 + $0x264] ss:$8 sps:$4 sm:$0xff]   ;;  %463 = vst [vmem:[#allocation2 + $0x169] sm:$0xff] %v376_v4 }
  0x39   : > { %1399 = vmatmul.mubr.bf16.gmra.mrb[4].mxu1 %v3754_v51  ;;  %3019 = vmatprep.subr.bf16.mxu0 %v3379_v48  ;;  %v546_v46 = vld [vmem:[#allocation2 + $0xd8] ss:$2 sm:$0xff]  ;;  %v3828_v48 = vpack.c.bf16 %v525_v41, %v523_v33  ;;  %v371_v49 = vmul.f32 %v3660_v36, %v333_v35  ;;  %v374_v54 = vmul.f32 %v3660_v36, %v336_v37  ;;  %v564_v33 = vld [vmem:[#allocation2 + $0x49] ss:$2 sm:$0xff]  ;;  %v566_v58 = vld [vmem:[#allocation2 + $0x79] ss:$2 sm:$0xff] }
  0x3a   : > { %3058 = vmatpush3.bf16.msra.mxu1 %v3378_v47  ;;  %v3826_v47 = vpack.c.bf16 %v477_v40, %v475_v32  ;;  %v375_v55 = vmul.f32 %v3660_v36, %v337_v38  ;;  %1341 = vmatprep.mubr.bf16.mxu0 %v3824_v43  ;;  %v3390_v0 = vld [vmem:[%s4308_s1 + $0x354] ss:$8 sps:$4 sm:$0xff]   ;;  %v372_v1 = vmul.f32 %v3660_v36, %v334_v59  ;;  %v3393_v7 = vld [vmem:[%s4308_s1 + $0x3e4] ss:$8 sps:$4 sm:$0xff]  }
  0x3b   : > { %3059 = vmatprep.subr.bf16.mxu1 %v3381_v52  ;;  %v297_v52 = vld [vmem:[%s3655_s7 + $0xc8] sm:$0xff]  ;;  %458 = vst [vmem:[#allocation2 + $0x129] sm:$0xff] %v371_v49  ;;  %461 = vst [vmem:[#allocation2 + $0x151] sm:$0xff] %v374_v54  ;;  %v3395_v9 = vld [vmem:[%s4308_s1 + $0x2f4] ss:$8 sps:$4 sm:$0xff]  }
  0x3c   : > { %3020 = vmatpush3.bf16.msra.mxu0 %v3380_v3  ;;  %v335_v60 = vsub.f32 %v297_v52, %v3646_v34  ;;  %462 = vst [vmem:[#allocation2 + $0x159] sm:$0xff] %v375_v55  ;;  %v3391_v3 = vld [vmem:[%s4308_s1 + $0x2e4] ss:$8 sps:$4 sm:$0xff]   ;;  %459 = vst [vmem:[#allocation2 + $0x139] sm:$0xff] %v372_v1  ;;  %v3398_v31 = vld [vmem:[%s4308_s1 + $0x374] ss:$8 sps:$4 sm:$0xff]  }
  0x3d   : > { %3021 = vmatprep.subr.bf16.mxu0 %v3383_v13  ;;  %v548_v53 = vld [vmem:[#allocation2 + $0x108] ss:$2 sm:$0xff]  ;;  %464 = vst [vmem:[#allocation2 + $0x171] sm:$0xff] %v377_v5  ;;  %v562_v32 = vld [vmem:[#allocation2 + $0x19] ss:$2 sm:$0xff] }
  0x3e   : > { %3060 = vmatpush3.bf16.msra.mxu1 %v3382_v10  ;;  %v3840_v61 = vpack.c.bf16 %v548_v53, %v546_v46  ;;  %v373_v2 = vmul.f32 %v3660_v36, %v335_v60  ;;  %v3394_v8 = vld [vmem:[%s4308_s1 + $0x364] ss:$8 sps:$4 sm:$0xff]   ;;  %v3396_v10 = vld [vmem:[%s4308_s1 + $0x274] ss:$8 sps:$4 sm:$0xff]   ;;  %v3898_v42 = vpack.c.bf16 %v564_v33, %v562_v32  ;;  %v3400_v46 = vld [vmem:[%s4308_s1 + $0x80] ss:$8 sps:$4 sm:$0xff]  }
  0x3f   : > { %3061 = vmatprep.subr.bf16.mxu1 %v3385_v16  ;;  %1342 = vmatmul.mubr.bf16.gmra.mrb[8].mxu0 %v3826_v47  ;;  %v588_v22 = vld [vmem:[#allocation2 + $0x4a] ss:$2 sm:$0xff]  ;;  %v634_v37 = vld [vmem:[#allocation2 + $0x31] ss:$2 sm:$0xff]  ;;  %v636_v38 = vld [vmem:[#allocation2 + $0x61] ss:$2 sm:$0xff] }
  0x40   : > { %3022 = vmatpush3.bf16.msra.mxu0 %v3384_v17  ;;  %1406 = vmatprep.mubr.bf16.mxu1 %v3840_v61  ;;  %460 = vst [vmem:[#allocation2 + $0x141] sm:$0xff] %v373_v2  ;;  %v3399_v35 = vld [vmem:[%s4308_s1 + $0x404] ss:$8 sps:$4 sm:$0xff]   ;;  %v610_v39 = vld [vmem:[#allocation2 + $0x30] ss:$2 sm:$0xff]  ;;  %v3896_v40 = vpack.c.bf16 %v636_v38, %v634_v37 }
  0x41   : > { %3023 = vmatprep.subr.bf16.mxu0 %v3387_v19  ;;  %1407 = vmatmul.mubr.bf16.gmra.mrb[8].mxu1 %v3828_v48  ;;  %v3397_v19 = vld [vmem:[%s4308_s1 + $0x3f4] ss:$8 sps:$4 sm:$0xff]   ;;  %v612_v41 = vld [vmem:[#allocation2 + $0x60] ss:$2 sm:$0xff]  ;;  %v3403_v55 = vld [vmem:[%s4308_s1 + $0x90] ss:$8 sps:$4 sm:$0xff]  }
  0x42   : > { %3062 = vmatpush3.bf16.msra.mxu1 %v3386_v18  ;;  %v503_v11 = vld [vmem:[#allocation2 + $0x121] ss:$2 sm:$0xff]  ;;  %v479_v12 = vld [vmem:[#allocation2 + $0x120] ss:$2 sm:$0xff]  ;;  %v3402_v49 = vld [vmem:[%s4308_s1 + $0x414] ss:$8 sps:$4 sm:$0xff]   ;;  %v3907_v50 = vpack.c.bf16 %v612_v41, %v610_v39 }
  0x43   : > { %3063 = vmatprep.subr.bf16.mxu1 %v3389_v21  ;;  %v527_v13 = vld [vmem:[#allocation2 + $0x122] ss:$2 sm:$0xff]  ;;  %v505_v14 = vld [vmem:[#allocation2 + $0x151] ss:$2 sm:$0xff]  ;;  %v529_v16 = vld [vmem:[#allocation2 + $0x152] ss:$2 sm:$0xff] }
  0x44   : > { %3024 = vmatpush3.bf16.msra.mxu0 %v3388_v20  ;;  %v481_v15 = vld [vmem:[#allocation2 + $0x150] ss:$2 sm:$0xff]  ;;  %v3872_v17 = vpack.c.bf16 %v505_v14, %v503_v11  ;;  %v3880_v25 = vpack.c.bf16 %v529_v16, %v527_v13  ;;  %v3401_v52 = vld [vmem:[%s4308_s1] ss:$8 sps:$4 sm:$0xff]   ;;  %v3405_v60 = vld [vmem:[%s4308_s1 + $0x424] ss:$8 sps:$4 sm:$0xff]  }
  0x45   : > { %3025 = vmatprep.subr.bf16.mxu0 %v3391_v3  ;;  %v3874_v18 = vpack.c.bf16 %v481_v15, %v479_v12  ;;  %v586_v21 = vld [vmem:[#allocation2 + $0x1a] ss:$2 sm:$0xff]  ;;  %v592_v54 = vld [vmem:[#allocation2 + $0xaa] ss:$2 sm:$0xff]  ;;  %v568_v59 = vld [vmem:[#allocation2 + $0xa9] ss:$2 sm:$0xff] }
  0x46   : > { %3064 = vmatpush3.bf16.msra.mxu1 %v3390_v0  ;;  %1349 = vmatprep.mubr.bf16.mxu0 %v3872_v17  ;;  %v552_v24 = vld [vmem:[#allocation2 + $0x168] ss:$2 sm:$0xff]  ;;  %v3882_v29 = vpack.c.bf16 %v588_v22, %v586_v21  ;;  %v638_v62 = vld [vmem:[#allocation2 + $0x91] ss:$2 sm:$0xff]  ;;  %v640_v0 = vld [vmem:[#allocation2 + $0xc1] ss:$2 sm:$0xff]  ;;  %v3926_v2 = vpack.c.bf16 %v568_v59, %v566_v58 }
  0x47   : > { %3065 = vmatprep.subr.bf16.mxu1 %v3393_v7  ;;  %v550_v20 = vld [vmem:[#allocation2 + $0x138] ss:$2 sm:$0xff]  ;;  %1350 = vmatmul.mubr.bf16.gmra.mrb[12].mxu0 %v3874_v18  ;;  %v3928_v3 = vpack.c.bf16 %v640_v0, %v638_v62  ;;  %v570_v13 = vld [vmem:[#allocation2 + $0xd9] ss:$2 sm:$0xff]  ;;  %v572_v15 = vld [vmem:[#allocation2 + $0x109] ss:$2 sm:$0xff] }
  0x48   : > { %3026 = vmatpush3.bf16.msra.mxu0 %v3392_v6  ;;  %v3884_v30 = vpack.c.bf16 %v552_v24, %v550_v20  ;;  %1455 = vmatprep.mubr.bf16.mxu0 %v3882_v29  ;;  %v590_v53 = vld [vmem:[#allocation2 + $0x7a] ss:$2 sm:$0xff]  ;;  %v644_v20 = vld [vmem:[#allocation2 + $0x121] ss:$2 sm:$0xff]  ;;  %v3956_v21 = vpack.c.bf16 %v572_v15, %v570_v13  ;;  %v600_v41 = vld [vmem:[#allocation2 + $0x16a] ss:$2 sm:$0xff] }
  0x49   : > { %3027 = vmatprep.subr.bf16.mxu0 %v3395_v9  ;;  %v3916_v57 = vpack.c.bf16 %v592_v54, %v590_v53  ;;  %v614_v1 = vld [vmem:[#allocation2 + $0x90] ss:$2 sm:$0xff]  ;;  %v616_v4 = vld [vmem:[#allocation2 + $0xc0] ss:$2 sm:$0xff]  ;;  %v646_v13 = vld [vmem:[#allocation2 + $0x151] ss:$2 sm:$0xff] }
  0x4a   : > { %3066 = vmatpush3.bf16.msra.mxu1 %v3394_v8  ;;  %1414 = vmatprep.mubr.bf16.mxu1 %v3884_v30  ;;  %v3406_v5 = vld [vmem:[%s4308_s1 + $0xa0] ss:$8 sps:$4 sm:$0xff]   ;;  %v3408_v6 = vld [vmem:[%s4308_s1 + $0x434] ss:$8 sps:$4 sm:$0xff]   ;;  %v3937_v7 = vpack.c.bf16 %v616_v4, %v614_v1  ;;  %v3409_v11 = vld [vmem:[%s4308_s1 + $0xb0] ss:$8 sps:$4 sm:$0xff]  }
  0x4b   : > { %3067 = vmatprep.subr.bf16.mxu1 %v3397_v19  ;;  %1415 = vmatmul.mubr.bf16.gmra.mrb[12].mxu1 %v3880_v25  ;;  %v3407_v8 = vld [vmem:[%s4308_s1 + $0x20] ss:$8 sps:$4 sm:$0xff]   ;;  %v3410_v14 = vld [vmem:[%s4308_s1 + $0x30] ss:$8 sps:$4 sm:$0xff]   ;;  %v3411_v16 = vld [vmem:[%s4308_s1 + $0x444] ss:$8 sps:$4 sm:$0xff]  }
  0x4c   : > { %3028 = vmatpush3.bf16.msra.mxu0 %v3396_v10  ;;  %1520 = vmatprep.mubr.bf16.mxu1 %v3896_v40  ;;  %v594_v9 = vld [vmem:[#allocation2 + $0xda] ss:$2 sm:$0xff]  ;;  %v596_v10 = vld [vmem:[#allocation2 + $0x10a] ss:$2 sm:$0xff]  ;;  %v642_v19 = vld [vmem:[#allocation2 + $0xf1] ss:$2 sm:$0xff] }
  0x4d   : > { %3277 = vmatprep.subr.bf16.mxu0 %v3399_v35  ;;  %v3946_v12 = vpack.c.bf16 %v596_v10, %v594_v9  ;;  %v3958_v22 = vpack.c.bf16 %v644_v20, %v642_v19  ;;  %v618_v24 = vld [vmem:[#allocation2 + $0xf0] ss:$2 sm:$0xff]  ;;  %v3412_v32 = vld [vmem:[%s4308_s1 + $0xc0] ss:$8 sps:$4 sm:$0xff]   ;;  %v3417_v53 = vld [vmem:[%s4308_s1 + $0x464] ss:$8 sps:$4 sm:$0xff]  }
  0x4e   : > { %3068 = vmatpush3.bf16.msra.mxu1 %v3398_v31  ;;  %v620_v31 = vld [vmem:[#allocation2 + $0x120] ss:$2 sm:$0xff]  ;;  %v3414_v37 = vld [vmem:[%s4308_s1 + $0x454] ss:$8 sps:$4 sm:$0xff]   ;;  %v3415_v38 = vld [vmem:[%s4308_s1 + $0xd0] ss:$8 sps:$4 sm:$0xff]  }
  0x4f   : > { %3105 = vmatprep.subr.bf16.mxu1 %v3400_v46  ;;  %1456 = vmatmul.mubr.bf16.vlgmr.msra.gmra.mrb[16].mxu0 %v3898_v42  ;;  %v3413_v33 = vld [vmem:[%s4308_s1 + $0x40] ss:$8 sps:$4 sm:$0xff]   ;;  %v3416_v54 = vld [vmem:[%s4308_s1 + $0x50] ss:$8 sps:$4 sm:$0xff]  }
  0x50   : > { %3278 = vmatpush3.bf16.msra.mxu0 %v3399_v35  ;;  %1463 = vmatprep.mubr.bf16.mxu0 %v3916_v57  ;;  %v3967_v35 = vpack.c.bf16 %v620_v31, %v618_v24  ;;  %v598_v39 = vld [vmem:[#allocation2 + $0x13a] ss:$2 sm:$0xff]  ;;  %v302_v58 = vld [vmem:[%s3655_s7 + $0xf0] sm:$0xff] }
  0x51   : > { %3279 = vmatprep.subr.bf16.mxu0 %v3402_v49  ;;  %v3976_v46 = vpack.c.bf16 %v600_v41, %v598_v39  ;;  %v303_v59 = vld [vmem:[%s3655_s7 + $0xf8] sm:$0xff]  ;;  %v3419_v4 = vld [vmem:[%s4308_s1 + $0x60] ss:$8 sps:$4 sm:$0xff]  }
  0x52   : > { %v341_v62 = vsub.f32 %v303_v59, %v3646_v34  ;;  %v3422_v9 = vld [vmem:[%s4308_s1 + $0x70] ss:$8 sps:$4 sm:$0xff]   ;;  %v3424_v19 = vld [vmem:[%s4308_s1 + $0x100] ss:$8 sps:$4 sm:$0xff]  }
  0x53   : > { %1521 = vmatmul.mubr.bf16.vlgmr.msra.gmra.mrb[16].mxu1 %v3907_v50  ;;  %v662_v10 = vld [vmem:[#allocation2 + $0x92] ss:$2 sm:$0xff] }
  0x54   : > { %3106 = vmatpush3.bf16.msra.mxu1 %v3401_v52  ;;  %3280 = vmatpush3.bf16.msra.mxu0 %v3402_v49  ;;  %v574_v49 = vld [vmem:[#allocation2 + $0x139] ss:$2 sm:$0xff]  ;;  %v576_v52 = vld [vmem:[#allocation2 + $0x169] ss:$2 sm:$0xff]  ;;  %v379_v1 = vmul.f32 %v3660_v36, %v341_v62 }
  0x55   : > { %3107 = vmatprep.subr.bf16.mxu1 %v3403_v55  ;;  %3281 = vmatprep.subr.bf16.mxu0 %v3405_v60  ;;  %v3986_v55 = vpack.c.bf16 %v576_v52, %v574_v49  ;;  %v3425_v20 = vld [vmem:[%s4308_s1 + $0x280] ss:$8 sps:$4 sm:$0xff]   ;;  %v3427_v39 = vld [vmem:[%s4308_s1 + $0x190] ss:$8 sps:$4 sm:$0xff]  }
  0x56   : > { %1528 = vmatprep.mubr.bf16.mxu1 %v3928_v3  ;;  %466 = vst [vmem:[#allocation2 + $0x189] sm:$0xff] %v379_v1  ;;  %v3428_v41 = vld [vmem:[%s4308_s1 + $0x110] ss:$8 sps:$4 sm:$0xff]   ;;  %v3432_v62 = vld [vmem:[%s4308_s1 + $0x120] ss:$8 sps:$4 sm:$0xff]  }
  0x57   : > { %1464 = vmatmul.mubr.bf16.gmra.mrb[20].mxu0 %v3926_v2  ;;  %v666_v49 = vld [vmem:[#allocation2 + $0xf2] ss:$2 sm:$0xff]  ;;  %v668_v52 = vld [vmem:[#allocation2 + $0x122] ss:$2 sm:$0xff] }
  0x58   : > { %3108 = vmatpush3.bf16.msra.mxu1 %v3404_v63  ;;  %3282 = vmatpush3.bf16.msra.mxu0 %v3405_v60  ;;  %v340_v60 = vsub.f32 %v302_v58, %v3646_v34  ;;  %v3418_v63 = vld [vmem:[%s4308_s1 + $0xe0] ss:$8 sps:$4 sm:$0xff]   ;;  %v3420_v34 = vld [vmem:[%s4308_s1 + $0x474] ss:$8 sps:$4 sm:$0xff]  }
  0x59   : > { %3109 = vmatprep.subr.bf16.mxu1 %v3406_v5  ;;  %3283 = vmatprep.subr.bf16.mxu0 %v3408_v6  ;;  %v3421_v5 = vld [vmem:[%s4308_s1 + $0xf0] ss:$8 sps:$4 sm:$0xff]  }
  0x5a   : > { %1471 = vmatprep.mubr.bf16.mxu0 %v3946_v12  ;;  %v378_v0 = vmul.f32 %v3660_v36, %v340_v60  ;;  %v658_v36 = vld [vmem:[#allocation2 + $0x32] ss:$2 sm:$0xff] }
  0x5b   : > { %1529 = vmatmul.mubr.bf16.gmra.mrb[20].mxu1 %v3937_v7  ;;  %v3431_v60 = vld [vmem:[%s4308_s1 + $0x1a0] ss:$8 sps:$4 sm:$0xff]  }
  0x5c   : > { %3110 = vmatpush3.bf16.msra.mxu1 %v3407_v8  ;;  %3284 = vmatpush3.bf16.msra.mxu0 %v3408_v6  ;;  %465 = vst [vmem:[#allocation2 + $0x181] sm:$0xff] %v378_v0  ;;  %v660_v6 = vld [vmem:[#allocation2 + $0x62] ss:$2 sm:$0xff] }
  0x5d   : > { %3111 = vmatprep.subr.bf16.mxu1 %v3409_v11  ;;  %3285 = vmatprep.subr.bf16.mxu0 %v3411_v16  ;;  %v4007_v8 = vpack.c.bf16 %v660_v6, %v658_v36  ;;  %v664_v11 = vld [vmem:[#allocation2 + $0xc2] ss:$2 sm:$0xff] }
  0x5e   : > { %1536 = vmatprep.mubr.bf16.mxu1 %v3958_v22  ;;  %v4013_v15 = vpack.c.bf16 %v664_v11, %v662_v10  ;;  %v3429_v0 = vld [vmem:[%s4308_s1 + $0x290] ss:$8 sps:$4 sm:$0xff]   ;;  %v3440_v36 = vld [vmem:[%s4308_s1 + $0x140] ss:$8 sps:$4 sm:$0xff]  }
  0x5f   : > { %1472 = vmatmul.mubr.bf16.gmra.mrb[24].mxu0 %v3956_v21  ;;  %v3437_v10 = vld [vmem:[%s4308_s1 + $0x2b0] ss:$8 sps:$4 sm:$0xff]  }
  0x60   : > { %3112 = vmatpush3.bf16.msra.mxu1 %v3410_v14  ;;  %3286 = vmatpush3.bf16.msra.mxu0 %v3411_v16  ;;  %v622_v14 = vld [vmem:[#allocation2 + $0x150] ss:$2 sm:$0xff]  ;;  %v3423_v16 = vld [vmem:[%s4308_s1 + $0x180] ss:$8 sps:$4 sm:$0xff]  }
  0x61   : > { %3113 = vmatprep.subr.bf16.mxu1 %v3412_v32  ;;  %3287 = vmatprep.subr.bf16.mxu0 %v3414_v37  ;;  %v3488_v32 = vmov 0  }
  0x62   : > { %1479 = vmatprep.mubr.bf16.mxu0 %v3976_v46  ;;  %v1628_v1 = vmax.bf16 %v3488_v32, %v3743_v44  ;;  %v3433_v44 = vld [vmem:[%s4308_s1 + $0x2a0] ss:$8 sps:$4 sm:$0xff]   ;;  %v1627_v6 = vmax.bf16 %v3488_v32, %v3745_v45  ;;  %v1637_v11 = vmax.bf16 %v3488_v32, %v3824_v43  ;;  %v3444_v45 = vld [vmem:[%s4308_s1 + $0x150] ss:$8 sps:$4 sm:$0xff]  }
  0x63   : > { %1537 = vmatmul.mubr.bf16.gmra.mrb[24].mxu1 %v3967_v35  ;;  %v648_v24 = vld [vmem:[#allocation2 + $0x181] ss:$2 sm:$0xff]  ;;  %v624_v31 = vld [vmem:[#allocation2 + $0x180] ss:$2 sm:$0xff] }
  0x64   : > { %3114 = vmatpush3.bf16.msra.mxu1 %v3413_v33  ;;  %3288 = vmatpush3.bf16.msra.mxu0 %v3414_v37  ;;  %v1619_v33 = vmax.bf16 %v3488_v32, %v3710_v23  ;;  %v4027_v37 = vpack.c.bf16 %v648_v24, %v646_v13  ;;  %v4039_v23 = vpack.c.bf16 %v668_v52, %v666_v49  ;;  %v672_v58 = vld [vmem:[#allocation2 + $0x182] ss:$2 sm:$0xff] }
  0x65   : > { %3115 = vmatprep.subr.bf16.mxu1 %v3415_v38  ;;  %3289 = vmatprep.subr.bf16.mxu0 %v3417_v53  ;;  %v4029_v38 = vpack.c.bf16 %v624_v31, %v622_v14  ;;  %v3443_v13 = vld [vmem:[%s4308_s1 + $0x1d0] ss:$8 sps:$4 sm:$0xff]   ;;  %v3441_v43 = vld [vmem:[%s4308_s1 + $0x2c0] ss:$8 sps:$4 sm:$0xff]   ;;  %v1620_v49 = vmax.bf16 %v3488_v32, %v3714_v27 }
  0x66   : > { %1544 = vmatprep.mubr.bf16.mxu1 %v4027_v37  ;;  %v3438_v14 = vld [vmem:[%s4308_s1 + $0x230] ss:$8 sps:$4 sm:$0xff]   ;;  %v3442_v24 = vld [vmem:[%s4308_s1 + $0x240] ss:$8 sps:$4 sm:$0xff]  }
  0x67   : > { %1480 = vmatmul.mubr.bf16.gmra.mrb[28].mxu0 %v3986_v55  ;;  %v3445_v31 = vld [vmem:[%s4308_s1 + $0x2d0] ss:$8 sps:$4 sm:$0xff]   ;;  %v3455_v52 = vld [vmem:[%s4308_s1 + $0x380] ss:$8 sps:$4 sm:$0xff]  }
  0x68   : > { %3116 = vmatpush3.bf16.msra.mxu1 %v3416_v54  ;;  %3290 = vmatpush3.bf16.msra.mxu0 %v3417_v53  ;;  %v1621_v53 = vmax.bf16 %v3488_v32, %v3716_v28  ;;  %v670_v54 = vld [vmem:[#allocation2 + $0x152] ss:$2 sm:$0xff] }
  0x69   : > { %3117 = vmatprep.subr.bf16.mxu1 %v3418_v63  ;;  %3291 = vmatprep.subr.bf16.mxu0 %v3420_v34  ;;  %v4044_v59 = vpack.c.bf16 %v672_v58, %v670_v54  ;;  %v1618_v63 = vmax.bf16 %v3488_v32, %v3712_v26  ;;  %v3426_v28 = vld [vmem:[%s4308_s1 + $0x200] ss:$8 sps:$4 sm:$0xff]   ;;  %v3435_v26 = vld [vmem:[%s4308_s1 + $0x1b0] ss:$8 sps:$4 sm:$0xff]   ;;  %v1630_v54 = vmax.bf16 %v3488_v32, %v3763_v56 }
  0x6a   : > { %3293 = vmatprep.mubr.bf16.mxu0 %v4007_v8  ;;  %v3456_v27 = vld [vmem:[%s4308_s1 + $0x300] ss:$8 sps:$4 sm:$0xff]   ;;  %v1645_v58 = vmax.bf16 %v3488_v32, %v3874_v18  ;;  %v3459_v56 = vld [vmem:[%s4308_s1 + $0x310] ss:$8 sps:$4 sm:$0xff]  }
  0x6b   : > { %1545 = vmatmul.mubr.bf16.gmra.mrb[28].mxu1 %v4029_v38  ;;  %v3460_v18 = vld [vmem:[%s4308_s1 + $0x3a0] ss:$8 sps:$4 sm:$0xff]  }
  0x6c   : > { %3118 = vmatpush3.bf16.msra.mxu1 %v3419_v4  ;;  %3292 = vmatpush3.bf16.msra.mxu0 %v3420_v34  ;;  %v3436_v4 = vld [vmem:[%s4308_s1 + $0x130] ss:$8 sps:$4 sm:$0xff]  }
  0x6d   : > { %3119 = vmatprep.subr.bf16.mxu1 %v3421_v5  ;;  %3145 = vmatprep.subr.bf16.mxu0 %v3423_v16  ;;  %v3430_v34 = vld [vmem:[%s4308_s1 + $0x210] ss:$8 sps:$4 sm:$0xff]   ;;  %v3439_v5 = vld [vmem:[%s4308_s1 + $0x1c0] ss:$8 sps:$4 sm:$0xff]  }
  0x6e   : > { %2262 = vmatprep.mubr.bf16.mxu1 %v1619_v33  ;;  %v3447_v16 = vld [vmem:[%s4308_s1 + $0x1e0] ss:$8 sps:$4 sm:$0xff]   ;;  %v1646_v33 = vmax.bf16 %v3488_v32, %v3872_v17 }
  0x6f   : > { %3294 = vmatmul.mubr.bf16.vlgmr.msra.gmra.mrb[32].mxu0 %v4013_v15  ;;  %v3449_v17 = vld [vmem:[%s4308_s1 + $0x2e0] ss:$8 sps:$4 sm:$0xff]  }
  0x70   : > { %3120 = vmatpush3.bf16.msra.mxu1 %v3422_v9  ;;  %3146 = vmatpush3.bf16.msra.mxu0 %v3424_v19  ;;  %v3434_v9 = vld [vmem:[%s4308_s1 + $0x220] ss:$8 sps:$4 sm:$0xff]  }
  0x71   : > { %3185 = vmatprep.subr.bf16.mxu1 %v3425_v20  ;;  %3147 = vmatprep.subr.bf16.mxu0 %v3427_v39  ;;  %v3448_v19 = vld [vmem:[%s4308_s1 + $0x160] ss:$8 sps:$4 sm:$0xff]   ;;  %v1636_v20 = vmax.bf16 %v3488_v32, %v3826_v47  ;;  %v3451_v39 = vld [vmem:[%s4308_s1 + $0x1f0] ss:$8 sps:$4 sm:$0xff]  }
  0x72   : > { %3297 = vmatprep.mubr.bf16.mxu0 %v4039_v23  ;;  %v3452_v47 = vld [vmem:[%s4308_s1 + $0x170] ss:$8 sps:$4 sm:$0xff]  }
  0x73   : > { %2263 = vmatmul.mubr.bf16.vlgmr.msra.gmra.mrb[32].mxu1 %v1618_v63  ;;  %v1623_v63 = vmax.bf16 %v3488_v32, %v3882_v29  ;;  %v3458_v29 = vld [vmem:[%s4308_s1 + $0x400] ss:$8 sps:$4 sm:$0xff]  }
  0x74   : > { %3148 = vmatpush3.bf16.msra.mxu0 %v3428_v41  ;;  %3186 = vmatpush3.bf16.msra.mxu1 %v3426_v28  ;;  %v3446_v41 = vld [vmem:[%s4308_s1 + $0x250] ss:$8 sps:$4 sm:$0xff]  }
  0x75   : > { %3149 = vmatprep.subr.bf16.mxu0 %v3431_v60  ;;  %2270 = vmatprep.mubr.bf16.mxu1 %v1628_v1  ;;  %v3457_v60 = vld [vmem:[%s4308_s1 + $0x390] ss:$8 sps:$4 sm:$0xff]   ;;  %v3462_v1 = vld [vmem:[%s4308_s1 + $0x320] ss:$8 sps:$4 sm:$0xff]  }
  0x76   : > { %3187 = vmatprep.subr.bf16.mxu1 %v3429_v0  ;;  %v3454_v28 = vld [vmem:[%s4308_s1 + $0x270] ss:$8 sps:$4 sm:$0xff]   ;;  %v1629_v0 = vmax.bf16 %v3488_v32, %v3754_v51 }
  0x77   : > { %3298 = vmatmul.mubr.bf16.gmra.mrb[36].mxu0 %v4044_v59  ;;  %v3461_v51 = vld [vmem:[%s4308_s1 + $0x410] ss:$8 sps:$4 sm:$0xff]  }
  0x78   : > { %3150 = vmatpush3.bf16.msra.mxu0 %v3432_v62  ;;  %2327 = vmatprep.mubr.bf16.mxu0 %v1621_v53  ;;  %v3450_v53 = vld [vmem:[%s4308_s1 + $0x260] ss:$8 sps:$4 sm:$0xff]   ;;  %v3453_v62 = vld [vmem:[%s4308_s1 + $0x2f0] ss:$8 sps:$4 sm:$0xff]  }
  0x79   : > { %3151 = vmatprep.subr.bf16.mxu0 %v3435_v26  ;;  %3188 = vmatpush3.bf16.msra.mxu1 %v3430_v34  ;;  %v3463_v26 = vld [vmem:[%s4308_s1 + $0x3b0] ss:$8 sps:$4 sm:$0xff]   ;;  %v1622_v34 = vmax.bf16 %v3488_v32, %v3898_v42  ;;  %v3464_v42 = vld [vmem:[%s4308_s1 + $0x420] ss:$8 sps:$4 sm:$0xff]  }
  0x7a   : > { %3189 = vmatprep.subr.bf16.mxu1 %v3433_v44  ;;  %v1632_v44 = vmax.bf16 %v3488_v32, %v3916_v57  ;;  %v1638_v57 = vmax.bf16 %v3488_v32, %v3828_v48  ;;  %v3467_v48 = vld [vmem:[%s4308_s1 + $0x430] ss:$8 sps:$4 sm:$0xff]  }
  0x7b   : > { %2271 = vmatmul.mubr.bf16.gmra.mrb[36].mxu1 %v1627_v6  ;;  %v3469_v6 = vld [vmem:[%s4308_s1 + $0x3d0] ss:$8 sps:$4 sm:$0xff]  }
  0x7c   : > { %3152 = vmatpush3.bf16.msra.mxu0 %v3436_v4  ;;  %2278 = vmatprep.mubr.bf16.mxu1 %v1637_v11  ;;  %v1639_v4 = vmax.bf16 %v3488_v32, %v3840_v61  ;;  %v3466_v61 = vld [vmem:[%s4308_s1 + $0x3c0] ss:$8 sps:$4 sm:$0xff]   ;;  %v1641_v11 = vmax.bf16 %v3488_v32, %v3946_v12 }
  0x7d   : > { %3153 = vmatprep.subr.bf16.mxu0 %v3439_v5  ;;  %3190 = vmatpush3.bf16.msra.mxu1 %v3434_v9  ;;  %v3465_v5 = vld [vmem:[%s4308_s1 + $0x330] ss:$8 sps:$4 sm:$0xff]   ;;  %v1648_v9 = vmax.bf16 %v3488_v32, %v3884_v30  ;;  %v3472_v30 = vld [vmem:[%s4308_s1 + $0x3e0] ss:$8 sps:$4 sm:$0xff]  }
  0x7e   : > { %3191 = vmatprep.subr.bf16.mxu1 %v3437_v10  ;;  %v1631_v10 = vmax.bf16 %v3488_v32, %v3926_v2  ;;  %v1647_v2 = vmax.bf16 %v3488_v32, %v3880_v25  ;;  %v3470_v12 = vld [vmem:[%s4308_s1 + $0x440] ss:$8 sps:$4 sm:$0xff]   ;;  %v1640_v25 = vmax.bf16 %v3488_v32, %v3956_v21 }
  0x7f   : > { %v3476_v21 = vld [vmem:[%s4308_s1 + $0x460] ss:$8 sps:$4 sm:$0xff]  }
  0x80   : > { %3154 = vmatpush3.bf16.msra.mxu0 %v3440_v36  ;;  %v3468_v36 = vld [vmem:[%s4308_s1 + $0x340] ss:$8 sps:$4 sm:$0xff]  }
  0x81   : > { %3155 = vmatprep.subr.bf16.mxu0 %v3443_v13  ;;  %3192 = vmatpush3.bf16.msra.mxu1 %v3438_v14  ;;  %v3471_v13 = vld [vmem:[%s4308_s1 + $0x350] ss:$8 sps:$4 sm:$0xff]  }
  0x82   : > { %3193 = vmatprep.subr.bf16.mxu1 %v3441_v43  ;;  %v3475_v14 = vld [vmem:[%s4308_s1 + $0x3f0] ss:$8 sps:$4 sm:$0xff]   ;;  %v1625_v43 = vmax.bf16 %v3488_v32, %v3896_v40  ;;  %v1624_v40 = vmax.bf16 %v3488_v32, %v3907_v50 }
  0x83   : > { %2279 = vmatmul.mubr.bf16.gmra.mrb[40].mxu1 %v1636_v20  ;;  %v3477_v20 = vld [vmem:[%s4308_s1 + $0x370] ss:$8 sps:$4 sm:$0xff]  }
  0x84   : > { %3156 = vmatpush3.bf16.msra.mxu0 %v3444_v45  ;;  %2286 = vmatprep.mubr.bf16.mxu1 %v1646_v33  ;;  %v3474_v45 = vld [vmem:[%s4308_s1 + $0x360] ss:$8 sps:$4 sm:$0xff]   ;;  %v3478_v50 = vld [vmem:[%s4308_s1 + $0x470] ss:$8 sps:$4 sm:$0xff]   ;;  %v1635_v33 = vmax.bf16 %v3488_v32, %v4013_v15  ;;  %v1651_v15 = vmax.bf16 %v3488_v32, %v4029_v38 }
  0x85   : > { %3157 = vmatprep.subr.bf16.mxu0 %v3447_v16  ;;  %3194 = vmatpush3.bf16.msra.mxu1 %v3442_v24  ;;  %v1650_v16 = vmax.bf16 %v3488_v32, %v3976_v46  ;;  %v1634_v46 = vmax.bf16 %v3488_v32, %v3928_v3  ;;  %v1649_v24 = vmax.bf16 %v3488_v32, %v3986_v55 }
  0x86   : > { %3195 = vmatprep.subr.bf16.mxu1 %v3445_v31  ;;  %v1626_v31 = vmax.bf16 %v3488_v32, %v4007_v8  ;;  %v1633_v3 = vmax.bf16 %v3488_v32, %v3937_v7  ;;  %v1643_v55 = vmax.bf16 %v3488_v32, %v3958_v22  ;;  %v1644_v8 = vmax.bf16 %v3488_v32, %v4039_v23 }
  0x87   : > { %v1652_v7 = vmax.bf16 %v3488_v32, %v4027_v37  ;;  %v1653_v22 = vmax.bf16 %v3488_v32, %v4044_v59 }
  0x88   : > { %3158 = vmatpush3.bf16.msra.mxu0 %v3448_v19  ;;  %v3473_v19 = vld [vmem:[%s4308_s1 + $0x450] ss:$8 sps:$4 sm:$0xff]  }
  0x89   : > { %3159 = vmatprep.subr.bf16.mxu0 %v3451_v39  ;;  %3196 = vmatpush3.bf16.msra.mxu1 %v3446_v41  ;;  %v1642_v39 = vmax.bf16 %v3488_v32, %v3967_v35 }
  0x8a   : > { %3197 = vmatprep.subr.bf16.mxu1 %v3449_v17 }
  0x8b   : > { %2287 = vmatmul.mubr.bf16.gmra.mrb[44].mxu1 %v1645_v58 }
  0x8c   : > { %3160 = vmatpush3.bf16.msra.mxu0 %v3452_v47  ;;  %2392 = vmatprep.mubr.bf16.mxu1 %v1623_v63 }
  0x8d   : > { %3225 = vmatprep.subr.bf16.mxu0 %v3455_v52  ;;  %3198 = vmatpush3.bf16.msra.mxu1 %v3450_v53 }
  0x8e   : > { %3199 = vmatprep.subr.bf16.mxu1 %v3453_v62 }
  0x8f   : > { %2328 = vmatmul.mubr.bf16.vlgmr.msra.gmra.mrb[40].mxu0 %v1620_v49 }
  0x90   : > { %3226 = vmatpush3.bf16.msra.mxu0 %v3456_v27  ;;  %2335 = vmatprep.mubr.bf16.mxu0 %v1630_v54 }
  0x91   : > { %3227 = vmatprep.subr.bf16.mxu0 %v3457_v60  ;;  %3200 = vmatpush3.bf16.msra.mxu1 %v3454_v28 }
  0x92   : > { %3301 = vmatprep.subr.bf16.mxu1 %v3458_v29 }
  0x94   : > { %3228 = vmatpush3.bf16.msra.mxu0 %v3459_v56  ;;  %2393 = vmatmul.mubr.bf16.vlgmr.msra.gmra.mrb[48].mxu1 %v1622_v34 }
  0x95   : > { %3229 = vmatprep.subr.bf16.mxu0 %v3460_v18  ;;  %3302 = vmatpush3.bf16.msra.mxu1 %v3458_v29 }
  0x96   : > { %2400 = vmatprep.mubr.bf16.mxu1 %v1632_v44  ;;  %3303 = vmatprep.subr.bf16.mxu1 %v3461_v51 }
  0x97   : > { %2336 = vmatmul.mubr.bf16.gmra.mrb[44].mxu0 %v1629_v0 }
  0x98   : > { %3230 = vmatpush3.bf16.msra.mxu0 %v3462_v1  ;;  %2343 = vmatprep.mubr.bf16.mxu0 %v1639_v4 }
  0x99   : > { %3231 = vmatprep.subr.bf16.mxu0 %v3463_v26  ;;  %3304 = vmatpush3.bf16.msra.mxu1 %v3461_v51 }
  0x9a   : > { %3305 = vmatprep.subr.bf16.mxu1 %v3464_v42 }
  0x9c   : > { %3232 = vmatpush3.bf16.msra.mxu0 %v3465_v5  ;;  %2401 = vmatmul.mubr.bf16.gmra.mrb[52].mxu1 %v1631_v10 }
  0x9d   : > { %3233 = vmatprep.subr.bf16.mxu0 %v3466_v61  ;;  %3306 = vmatpush3.bf16.msra.mxu1 %v3464_v42 }
  0x9e   : > { %2408 = vmatprep.mubr.bf16.mxu1 %v1641_v11  ;;  %3307 = vmatprep.subr.bf16.mxu1 %v3467_v48 }
  0x9f   : > { %2344 = vmatmul.mubr.bf16.gmra.mrb[48].mxu0 %v1638_v57 }
  0xa0   : > { %3234 = vmatpush3.bf16.msra.mxu0 %v3468_v36  ;;  %2351 = vmatprep.mubr.bf16.mxu0 %v1648_v9 }
  0xa1   : > { %3235 = vmatprep.subr.bf16.mxu0 %v3469_v6  ;;  %3308 = vmatpush3.bf16.msra.mxu1 %v3467_v48 }
  0xa2   : > { %3309 = vmatprep.subr.bf16.mxu1 %v3470_v12 }
  0xa4   : > { %3236 = vmatpush3.bf16.msra.mxu0 %v3471_v13  ;;  %2409 = vmatmul.mubr.bf16.gmra.mrb[56].mxu1 %v1640_v25 }
  0xa5   : > { %3237 = vmatprep.subr.bf16.mxu0 %v3472_v30  ;;  %3310 = vmatpush3.bf16.msra.mxu1 %v3470_v12 }
  0xa6   : > { %2416 = vmatprep.mubr.bf16.mxu1 %v1650_v16  ;;  %3311 = vmatprep.subr.bf16.mxu1 %v3473_v19 }
  0xa7   : > { %2352 = vmatmul.mubr.bf16.gmra.mrb[52].mxu0 %v1647_v2 }
  0xa8   : > { %3238 = vmatpush3.bf16.msra.mxu0 %v3474_v45  ;;  %2457 = vmatprep.mubr.bf16.mxu0 %v1625_v43 }
  0xa9   : > { %3239 = vmatprep.subr.bf16.mxu0 %v3475_v14  ;;  %3312 = vmatpush3.bf16.msra.mxu1 %v3473_v19 }
  0xaa   : > { %3313 = vmatprep.subr.bf16.mxu1 %v3476_v21 }
  0xac   : > { %3240 = vmatpush3.bf16.msra.mxu0 %v3477_v20  ;;  %2417 = vmatmul.mubr.bf16.gmra.mrb[60].mxu1 %v1649_v24 }
  0xad   : > { %3314 = vmatpush3.bf16.msra.mxu1 %v3476_v21  ;;  %3317 = vmatprep.mubr.bf16.mxu1 %v1626_v31 }
  0xae   : > { %3315 = vmatprep.subr.bf16.mxu1 %v3478_v50 }
  0xaf   : > { %2458 = vmatmul.mubr.bf16.vlgmr.msra.gmra.mrb[56].mxu0 %v1624_v40 }
  0xb0   : > { %2465 = vmatprep.mubr.bf16.mxu0 %v1634_v46 }
  0xb1   : > { %3316 = vmatpush3.bf16.msra.mxu1 %v3478_v50 }
  0xb4   : > { %3318 = vmatmul.mubr.bf16.vlgmr.msra.gmra.mrb[64].mxu1 %v1635_v33 }
  0xb5   : > { %3321 = vmatprep.mubr.bf16.mxu1 %v1644_v8 }
  0xb7   : > { %2466 = vmatmul.mubr.bf16.gmra.mrb[60].mxu0 %v1633_v3 }
  0xb8   : > { %2473 = vmatprep.mubr.bf16.mxu0 %v1643_v55 }
  0xbc   : > { %3322 = vmatmul.mubr.bf16.gmra.mrb[68].mxu1 %v1653_v22 }
  0xbf   : > { %2474 = vmatmul.mubr.bf16.gmra.mrb[64].mxu0 %v1642_v39 }
  0xc0   : > { %2481 = vmatprep.mubr.bf16.mxu0 %v1652_v7 }
  0xc7   : > { %2482 = vmatmul.mubr.bf16.gmra.mrb[68].mxu0 %v1651_v15 }
 0x102   : > { %v2949_v23 = vpop.f32.mrb[0].mxu0 }
 0x103   : > { %v2950_v41 = vpop.f32.mrb[1].mxu0 }
 0x104   : > { %v2989_v47 = vpop.f32.mrb[0].mxu1  ;;  %v2951_v49 = vadd.f32 %v2950_v41, %v2949_v23  ;;  %v2952_v35 = vpop.f32.mrb[2].mxu0 }
 0x105   : > { %v2990_v17 = vpop.f32.mrb[1].mxu1  ;;  %v2953_v27 = vpop.f32.mrb[3].mxu0 }
 0x106   : > { %v2991_v52 = vadd.f32 %v2990_v17, %v2989_v47  ;;  %v2992_v53 = vpop.f32.mrb[2].mxu1  ;;  %v2954_v37 = vadd.f32 %v2953_v27, %v2952_v35 }
 0x107   : > { %v2993_v54 = vpop.f32.mrb[3].mxu1 }
 0x108   : > { %v1393_v58 = vadd.f32 %v2991_v52, %v2951_v49  ;;  %v2994_v59 = vadd.f32 %v2993_v54, %v2992_v53 }
 0x10a   : > { %v1396_v60 = vadd.f32 %v2994_v59, %v2954_v37  ;;  %v2955_v62 = vpop.f32.mrb[4].mxu0 }
 0x10b   : > { %v2956_v56 = vpop.f32.mrb[5].mxu0 }
 0x10c   : > { %v2995_v63 = vpop.f32.mrb[4].mxu1  ;;  %v2957_v18 = vadd.f32 %v2956_v56, %v2955_v62  ;;  %v2958_v38 = vpop.f32.mrb[6].mxu0 }
 0x10d   : > { %v2996_v32 = vpop.f32.mrb[5].mxu1  ;;  %v2959_v0 = vpop.f32.mrb[7].mxu0 }
 0x10e   : > { %v2997_v28 = vadd.f32 %v2996_v32, %v2995_v63  ;;  %v2998_v29 = vpop.f32.mrb[6].mxu1  ;;  %v2960_v1 = vadd.f32 %v2959_v0, %v2958_v38 }
 0x10f   : > { %v2999_v26 = vpop.f32.mrb[7].mxu1 }
 0x110   : > { %v1401_v4 = vadd.f32 %v2997_v28, %v2957_v18  ;;  %v3000_v34 = vadd.f32 %v2999_v26, %v2998_v29 }
 0x112   : > { %v1404_v51 = vadd.f32 %v3000_v34, %v2960_v1  ;;  %v2961_v44 = vpop.f32.mrb[8].mxu0 }
 0x113   : > { %v2962_v5 = vpop.f32.mrb[9].mxu0 }
 0x114   : > { %v3001_v61 = vpop.f32.mrb[8].mxu1  ;;  %v2963_v42 = vadd.f32 %v2962_v5, %v2961_v44  ;;  %v2964_v57 = vpop.f32.mrb[10].mxu0 }
 0x115   : > { %v3002_v36 = vpop.f32.mrb[9].mxu1  ;;  %v2965_v6 = vpop.f32.mrb[11].mxu0 }
 0x116   : > { %v3003_v9 = vadd.f32 %v3002_v36, %v3001_v61  ;;  %v3004_v10 = vpop.f32.mrb[10].mxu1  ;;  %v2966_v48 = vadd.f32 %v2965_v6, %v2964_v57 }
 0x117   : > { %v3005_v11 = vpop.f32.mrb[11].mxu1 }
 0x118   : > { %v1409_v13 = vadd.f32 %v3003_v9, %v2963_v42  ;;  %v3006_v30 = vadd.f32 %v3005_v11, %v3004_v10 }
 0x11a   : > { %v1412_v2 = vadd.f32 %v3006_v30, %v2966_v48  ;;  %v2967_v12 = vpop.f32.mrb[12].mxu0 }
 0x11b   : > { %v2968_v45 = vpop.f32.mrb[13].mxu0 }
 0x11c   : > { %v2969_v14 = vadd.f32 %v2968_v45, %v2967_v12  ;;  %v2970_v43 = vpop.f32.mrb[14].mxu0 }
 0x11d   : > { %v2971_v16 = vpop.f32.mrb[15].mxu0 }
 0x11e   : > { %v3007_v25 = vpop.f32.mrb[12].mxu1  ;;  %v2972_v20 = vadd.f32 %v2971_v16, %v2970_v43 }
 0x11f   : > { %v3008_v19 = vpop.f32.mrb[13].mxu1 }
 0x120   : > { %v3009_v40 = vadd.f32 %v3008_v19, %v3007_v25  ;;  %v3010_v21 = vpop.f32.mrb[14].mxu1 }
 0x121   : > { %v3011_v46 = vpop.f32.mrb[15].mxu1 }
 0x122   : > { %v1417_v24 = vadd.f32 %v3009_v40, %v2969_v14  ;;  %v3012_v31 = vadd.f32 %v3011_v46, %v3010_v21  ;;  %v3029_v50 = vpop.f32.mrb[16].mxu0 }
 0x123   : > { %v3030_v55 = vpop.f32.mrb[17].mxu0 }
 0x124   : > { %v1420_v3 = vadd.f32 %v3012_v31, %v2972_v20  ;;  %v3031_v33 = vadd.f32 %v3030_v55, %v3029_v50  ;;  %v3032_v8 = vpop.f32.mrb[18].mxu0 }
 0x125   : > { %v3033_v7 = vpop.f32.mrb[19].mxu0 }
 0x126   : > { %v3069_v39 = vpop.f32.mrb[16].mxu1  ;;  %v1458_v22 = vadd.f32 %v3031_v33, %v1393_v58  ;;  %v3034_v15 = vadd.f32 %v3033_v7, %v3032_v8 }
 0x127   : > { %v3070_v23 = vpop.f32.mrb[17].mxu1 }
 0x128   : > { %v3071_v47 = vadd.f32 %v3070_v23, %v3069_v39  ;;  %v3072_v41 = vpop.f32.mrb[18].mxu1  ;;  %v1461_v49 = vadd.f32 %v3034_v15, %v1396_v60 }
 0x129   : > { %v3073_v17 = vpop.f32.mrb[19].mxu1 }
 0x12a   : > { %v3074_v35 = vadd.f32 %v3073_v17, %v3072_v41  ;;  %v1523_v52 = vadd.f32 %v3071_v47, %v1458_v22  ;;  %v3035_v53 = vpop.f32.mrb[20].mxu0 }
 0x12b   : > { %v3036_v27 = vpop.f32.mrb[21].mxu0 }
 0x12c   : > { %v1526_v37 = vadd.f32 %v3074_v35, %v1461_v49  ;;  %v3037_v54 = vadd.f32 %v3036_v27, %v3035_v53  ;;  %v3038_v59 = vpop.f32.mrb[22].mxu0 }
 0x12d   : > { %v3039_v63 = vpop.f32.mrb[23].mxu0 }
 0x12e   : > { %v3075_v62 = vpop.f32.mrb[20].mxu1  ;;  %v1466_v56 = vadd.f32 %v3037_v54, %v1401_v4  ;;  %v3040_v18 = vadd.f32 %v3039_v63, %v3038_v59 }
 0x12f   : > { %v3076_v32 = vpop.f32.mrb[21].mxu1 }
 0x130   : > { %v3077_v38 = vadd.f32 %v3076_v32, %v3075_v62  ;;  %v3078_v58 = vpop.f32.mrb[22].mxu1  ;;  %v1469_v28 = vadd.f32 %v3040_v18, %v1404_v51 }
 0x131   : > { %v3079_v29 = vpop.f32.mrb[23].mxu1 }
 0x132   : > { %v3080_v0 = vadd.f32 %v3079_v29, %v3078_v58  ;;  %v1531_v1 = vadd.f32 %v3077_v38, %v1466_v56  ;;  %v3041_v60 = vpop.f32.mrb[24].mxu0 }
 0x133   : > { %v3042_v26 = vpop.f32.mrb[25].mxu0 }
 0x134   : > { %v1534_v34 = vadd.f32 %v3080_v0, %v1469_v28  ;;  %v3043_v44 = vadd.f32 %v3042_v26, %v3041_v60  ;;  %v3044_v5 = vpop.f32.mrb[26].mxu0 }
 0x135   : > { %v3045_v42 = vpop.f32.mrb[27].mxu0 }
 0x136   : > { %v3081_v61 = vpop.f32.mrb[24].mxu1  ;;  %v1474_v57 = vadd.f32 %v3043_v44, %v1409_v13  ;;  %v3046_v36 = vadd.f32 %v3045_v42, %v3044_v5 }
 0x137   : > { %v3082_v6 = vpop.f32.mrb[25].mxu1 }
 0x138   : > { %v3083_v4 = vadd.f32 %v3082_v6, %v3081_v61  ;;  %v3084_v9 = vpop.f32.mrb[26].mxu1  ;;  %v1477_v10 = vadd.f32 %v3046_v36, %v1412_v2 }
 0x139   : > { %v3085_v48 = vpop.f32.mrb[27].mxu1 }
 0x13a   : > { %v3086_v11 = vadd.f32 %v3085_v48, %v3084_v9  ;;  %v1539_v51 = vadd.f32 %v3083_v4, %v1474_v57  ;;  %v3047_v30 = vpop.f32.mrb[28].mxu0 }
 0x13b   : > { %v3048_v12 = vpop.f32.mrb[29].mxu0 }
 0x13c   : > { %v1542_v45 = vadd.f32 %v3086_v11, %v1477_v10  ;;  %v3049_v14 = vadd.f32 %v3048_v12, %v3047_v30  ;;  %v3050_v43 = vpop.f32.mrb[30].mxu0 }
 0x13d   : > { %v3051_v25 = vpop.f32.mrb[31].mxu0 }
 0x13e   : > { %v1482_v16 = vadd.f32 %v3049_v14, %v1417_v24  ;;  %v3052_v19 = vadd.f32 %v3051_v25, %v3050_v43  ;;  %v3087_v55 = vpop.f32.mrb[28].mxu1 }
 0x13f   : > { %v3088_v8 = vpop.f32.mrb[29].mxu1 }
 0x140   : > { %v1485_v20 = vadd.f32 %v3052_v19, %v1420_v3  ;;  %v3089_v7 = vadd.f32 %v3088_v8, %v3087_v55  ;;  %v3090_v22 = vpop.f32.mrb[30].mxu1 }
 0x141   : > { %v3091_v23 = vpop.f32.mrb[31].mxu1 }
 0x142   : > { %v3295_v13 = vpop.f32.mrb[32].mxu0  ;;  %v3092_v47 = vadd.f32 %v3091_v23, %v3090_v22  ;;  %v1547_v41 = vadd.f32 %v3089_v7, %v1482_v16 }
 0x143   : > { %v1596_v40 = vadd.f32 %v3295_v13, %v1531_v1  ;;  %v1587_v21 = vpop.f32.mrb[33].mxu0 }
 0x144   : > { %v1588_v2 = vadd.f32 %v1587_v21, %v1523_v52  ;;  %v3296_v46 = vpop.f32.mrb[34].mxu0  ;;  %v1550_v53 = vadd.f32 %v3092_v47, %v1485_v20 }
 0x145   : > { %v2609_v31 = vpack.c.bf16 %v1596_v40, %v1596_v40  ;;  %v1599_v50 = vadd.f32 %v3296_v46, %v1534_v34  ;;  %v1590_v24 = vpop.f32.mrb[35].mxu0 }
 0x146   : > { %v2607_v3 = vpack.c.bf16 %v1588_v2, %v1588_v2  ;;  %v1591_v33 = vadd.f32 %v1590_v24, %v1526_v37  ;;  %v3121_v56 = vpop.f32.mrb[32].mxu1 }
 0x147   : > { %2617 = vst [vmem:[%s4272_s17 + $0x14] sm:$0xf] %v2609_v31  ;;  %v2610_v39 = vpack.c.bf16 %v1599_v50, %v1599_v50  ;;  %v3122_v18 = vpop.f32.mrb[33].mxu1 }
 0x148   : > { %2615 = vst [vmem:[%s4272_s17 + $0x4] sm:$0xf] %v2607_v3  ;;  %v2608_v15 = vpack.c.bf16 %v1591_v33, %v1591_v33  ;;  %v3123_v58 = vadd.f32 %v3122_v18, %v3121_v56  ;;  %v3124_v28 = vpop.f32.mrb[34].mxu1 }
 0x149   : > { %2618 = vst [vmem:[%s4272_s17 + $0x1c] sm:$0xf] %v2610_v39  ;;  %v3125_v29 = vpop.f32.mrb[35].mxu1 }
 0x14a   : > { %2616 = vst [vmem:[%s4272_s17 + $0xc] sm:$0xf] %v2608_v15  ;;  %v3299_v49 = vpop.f32.mrb[36].mxu0  ;;  %v3126_v0 = vadd.f32 %v3125_v29, %v3124_v28 }
 0x14b   : > { %v1603_v17 = vpop.f32.mrb[37].mxu0  ;;  %v1612_v35 = vadd.f32 %v3299_v49, %v1547_v41 }
 0x14c   : > { %v1604_v52 = vadd.f32 %v1603_v17, %v1539_v51  ;;  %v3300_v27 = vpop.f32.mrb[38].mxu0 }
 0x14d   : > { %v1606_v37 = vpop.f32.mrb[39].mxu0  ;;  %v2613_v54 = vpack.c.bf16 %v1612_v35, %v1612_v35  ;;  %v1615_v62 = vadd.f32 %v3300_v27, %v1550_v53 }
 0x14e   : > { %v2611_v59 = vpack.c.bf16 %v1604_v52, %v1604_v52  ;;  %v1607_v63 = vadd.f32 %v1606_v37, %v1542_v45  ;;  %v3127_v1 = vpop.f32.mrb[36].mxu1 }
 0x14f   : > { %2621 = vst [vmem:[%s4272_s17 + $0x34] sm:$0xf] %v2613_v54  ;;  %v2614_v32 = vpack.c.bf16 %v1615_v62, %v1615_v62  ;;  %v3128_v60 = vpop.f32.mrb[37].mxu1 }
 0x150   : > { %2619 = vst [vmem:[%s4272_s17 + $0x24] sm:$0xf] %v2611_v59  ;;  %v2612_v38 = vpack.c.bf16 %v1607_v63, %v1607_v63  ;;  %v3129_v26 = vadd.f32 %v3128_v60, %v3127_v1  ;;  %v3130_v34 = vpop.f32.mrb[38].mxu1 }
 0x151   : > { %2622 = vst [vmem:[%s4272_s17 + $0x3c] sm:$0xf] %v2614_v32  ;;  %v3131_v44 = vpop.f32.mrb[39].mxu1 }
 0x152   : > { %2620 = vst [vmem:[%s4272_s17 + $0x2c] sm:$0xf] %v2612_v38  ;;  %v3132_v5 = vadd.f32 %v3131_v44, %v3130_v34 }
 0x156   : > { %v3133_v61 = vpop.f32.mrb[40].mxu1 }
 0x157   : > { %v3134_v42 = vpop.f32.mrb[41].mxu1 }
 0x158   : > { %v3135_v57 = vadd.f32 %v3134_v42, %v3133_v61  ;;  %v3136_v36 = vpop.f32.mrb[42].mxu1 }
 0x159   : > { %v3137_v6 = vpop.f32.mrb[43].mxu1 }
 0x15a   : > { %v3138_v4 = vadd.f32 %v3137_v6, %v3136_v36 }
 0x15e   : > { %v3139_v51 = vpop.f32.mrb[44].mxu1 }
 0x15f   : > { %v3140_v12 = vpop.f32.mrb[45].mxu1 }
 0x160   : > { %v3141_v43 = vadd.f32 %v3140_v12, %v3139_v51  ;;  %v3142_v25 = vpop.f32.mrb[46].mxu1 }
 0x161   : > { %v3143_v16 = vpop.f32.mrb[47].mxu1 }
 0x162   : > { %v3161_v9 = vpop.f32.mrb[40].mxu0  ;;  %v3144_v20 = vadd.f32 %v3143_v16, %v3142_v25 }
 0x163   : > { %v3162_v10 = vpop.f32.mrb[41].mxu0 }
 0x164   : > { %v3163_v48 = vadd.f32 %v3162_v10, %v3161_v9  ;;  %v3164_v11 = vpop.f32.mrb[42].mxu0 }
 0x165   : > { %v3165_v30 = vpop.f32.mrb[43].mxu0 }
 0x166   : > { %v2330_v45 = vadd.f32 %v3163_v48, %v3123_v58  ;;  %v3166_v14 = vadd.f32 %v3165_v30, %v3164_v11 }
 0x167   : > { %v3201_v46 = vpop.f32.mrb[48].mxu1 }
 0x168   : > { %v2333_v19 = vadd.f32 %v3166_v14, %v3126_v0  ;;  %v3202_v50 = vpop.f32.mrb[49].mxu1 }
 0x169   : > { %v3203_v3 = vadd.f32 %v3202_v50, %v3201_v46  ;;  %v3204_v33 = vpop.f32.mrb[50].mxu1 }
 0x16a   : > { %v3167_v13 = vpop.f32.mrb[44].mxu0  ;;  %v3205_v8 = vpop.f32.mrb[51].mxu1 }
 0x16b   : > { %v3168_v40 = vpop.f32.mrb[45].mxu0  ;;  %v2395_v7 = vadd.f32 %v3203_v3, %v2330_v45  ;;  %v3206_v22 = vadd.f32 %v3205_v8, %v3204_v33 }
 0x16c   : > { %v3169_v21 = vadd.f32 %v3168_v40, %v3167_v13  ;;  %v3170_v2 = vpop.f32.mrb[46].mxu0 }
 0x16d   : > { %v3171_v31 = vpop.f32.mrb[47].mxu0  ;;  %v2398_v23 = vadd.f32 %v3206_v22, %v2333_v19 }
 0x16e   : > { %v2338_v24 = vadd.f32 %v3169_v21, %v3129_v26  ;;  %v3172_v55 = vadd.f32 %v3171_v31, %v3170_v2 }
 0x16f   : > { %v3207_v17 = vpop.f32.mrb[52].mxu1 }
 0x170   : > { %v2341_v39 = vadd.f32 %v3172_v55, %v3132_v5  ;;  %v3208_v52 = vpop.f32.mrb[53].mxu1 }
 0x171   : > { %v3209_v37 = vadd.f32 %v3208_v52, %v3207_v17  ;;  %v3210_v54 = vpop.f32.mrb[54].mxu1 }
 0x172   : > { %v3173_v15 = vpop.f32.mrb[48].mxu0  ;;  %v3211_v59 = vpop.f32.mrb[55].mxu1 }
 0x173   : > { %v3174_v47 = vpop.f32.mrb[49].mxu0  ;;  %v2403_v63 = vadd.f32 %v3209_v37, %v2338_v24  ;;  %v3212_v56 = vadd.f32 %v3211_v59, %v3210_v54 }
 0x174   : > { %v3175_v41 = vadd.f32 %v3174_v47, %v3173_v15  ;;  %v3176_v49 = vpop.f32.mrb[50].mxu0 }
 0x175   : > { %v3177_v35 = vpop.f32.mrb[51].mxu0  ;;  %v2406_v32 = vadd.f32 %v3212_v56, %v2341_v39 }
 0x176   : > { %v2346_v53 = vadd.f32 %v3175_v41, %v3135_v57  ;;  %v3178_v27 = vadd.f32 %v3177_v35, %v3176_v49 }
 0x177   : > { %v3213_v29 = vpop.f32.mrb[56].mxu1 }
 0x178   : > { %v2349_v62 = vadd.f32 %v3178_v27, %v3138_v4  ;;  %v3214_v1 = vpop.f32.mrb[57].mxu1 }
 0x179   : > { %v3215_v34 = vadd.f32 %v3214_v1, %v3213_v29  ;;  %v3216_v44 = vpop.f32.mrb[58].mxu1 }
 0x17a   : > { %v3179_v18 = vpop.f32.mrb[52].mxu0  ;;  %v3217_v5 = vpop.f32.mrb[59].mxu1 }
 0x17b   : > { %v3180_v38 = vpop.f32.mrb[53].mxu0  ;;  %v2411_v42 = vadd.f32 %v3215_v34, %v2346_v53  ;;  %v3218_v57 = vadd.f32 %v3217_v5, %v3216_v44 }
 0x17c   : > { %v3181_v58 = vadd.f32 %v3180_v38, %v3179_v18  ;;  %v3182_v28 = vpop.f32.mrb[54].mxu0 }
 0x17d   : > { %v3183_v0 = vpop.f32.mrb[55].mxu0  ;;  %v2414_v6 = vadd.f32 %v3218_v57, %v2349_v62 }
 0x17e   : > { %v2354_v60 = vadd.f32 %v3181_v58, %v3141_v43  ;;  %v3184_v26 = vadd.f32 %v3183_v0, %v3182_v28 }
 0x17f   : > { %v3219_v48 = vpop.f32.mrb[60].mxu1 }
 0x180   : > { %v2357_v61 = vadd.f32 %v3184_v26, %v3144_v20  ;;  %v3220_v51 = vpop.f32.mrb[61].mxu1 }
 0x181   : > { %v3221_v45 = vadd.f32 %v3220_v51, %v3219_v48  ;;  %v3222_v14 = vpop.f32.mrb[62].mxu1 }
 0x182   : > { %v3241_v36 = vpop.f32.mrb[56].mxu0  ;;  %v3223_v43 = vpop.f32.mrb[63].mxu1 }
 0x183   : > { %v3242_v4 = vpop.f32.mrb[57].mxu0  ;;  %v4282_v16 = vadd.f32 %v3221_v45, %v2354_v60  ;;  %v3224_v19 = vadd.f32 %v3223_v43, %v3222_v14 }
 0x184   : > { %v3243_v9 = vadd.f32 %v3242_v4, %v3241_v36  ;;  %v3244_v10 = vpop.f32.mrb[58].mxu0 }
 0x185   : > { %v3245_v11 = vpop.f32.mrb[59].mxu0  ;;  %v4284_v13 = vadd.f32 %v3224_v19, %v2357_v61 }
 0x186   : > { %v3246_v30 = vadd.f32 %v3245_v11, %v3244_v10  ;;  %v2460_v12 = vadd.f32 %v3243_v9, %v2395_v7 }
 0x187   : > { %v3319_v46 = vpop.f32.mrb[64].mxu1 }
 0x188   : > { %v2463_v25 = vadd.f32 %v3246_v30, %v2398_v23  ;;  %v2524_v50 = vpop.f32.mrb[65].mxu1 }
 0x189   : > { %v2525_v3 = vadd.f32 %v2524_v50, %v2460_v12  ;;  %v3320_v33 = vpop.f32.mrb[66].mxu1 }
 0x18a   : > { %v3247_v20 = vpop.f32.mrb[60].mxu0  ;;  %v2527_v8 = vpop.f32.mrb[67].mxu1 }
 0x18b   : > { %v3248_v40 = vpop.f32.mrb[61].mxu0  ;;  %v2591_v22 = vpack.c.bf16 %v2525_v3, %v2525_v3  ;;  %v2528_v15 = vadd.f32 %v2527_v8, %v2463_v25  ;;  %v2569_v23 = vmul.f32 %v2525_v3, %v2525_v3 }
 0x18c   : > { %v3249_v21 = vadd.f32 %v3248_v40, %v3247_v20  ;;  %v3250_v2 = vpop.f32.mrb[62].mxu0 }
 0x18d   : > { %v3251_v31 = vpop.f32.mrb[63].mxu0  ;;  %2599 = vst [vmem:[%s4272_s17] sm:$0xf] %v2591_v22  ;;  %v2555_v17 = vadd.f32 %v2528_v15, %v2525_v3  ;;  %v2570_v35 = vmul.f32 %v2528_v15, %v2528_v15  ;;  %v2592_v52 = vpack.c.bf16 %v2528_v15, %v2528_v15 }
 0x18e   : > { %v2468_v24 = vadd.f32 %v3249_v21, %v2403_v63  ;;  %v3252_v55 = vadd.f32 %v3251_v31, %v3250_v2 }
 0x18f   : > { %v2577_v62 = vadd.f32 %v2570_v35, %v2569_v23  ;;  %2600 = vst [vmem:[%s4272_s17 + $0x8] sm:$0xf] %v2592_v52  ;;  %v3323_v18 = vpop.f32.mrb[68].mxu1 }
 0x190   : > { %v2533_v39 = vadd.f32 %v3319_v46, %v2468_v24  ;;  %v2471_v7 = vadd.f32 %v3252_v55, %v2406_v32  ;;  %v2540_v28 = vpop.f32.mrb[69].mxu1 }
 0x191   : > { %v3324_v1 = vpop.f32.mrb[70].mxu1 }
 0x192   : > { %v2593_v47 = vpack.c.bf16 %v2533_v39, %v2533_v39  ;;  %v2536_v41 = vadd.f32 %v3320_v33, %v2471_v7  ;;  %v3253_v49 = vpop.f32.mrb[64].mxu0  ;;  %v2571_v53 = vmul.f32 %v2533_v39, %v2533_v39  ;;  %v2556_v32 = vadd.f32 %v2555_v17, %v2533_v39  ;;  %v2543_v34 = vpop.f32.mrb[71].mxu1 }
 0x193   : > { %v3254_v27 = vpop.f32.mrb[65].mxu0 }
 0x194   : > { %2601 = vst [vmem:[%s4272_s17 + $0x10] sm:$0xf] %v2593_v47  ;;  %v2594_v37 = vpack.c.bf16 %v2536_v41, %v2536_v41  ;;  %v3255_v54 = vadd.f32 %v3254_v27, %v3253_v49  ;;  %v3256_v59 = vpop.f32.mrb[66].mxu0  ;;  %v2572_v63 = vmul.f32 %v2536_v41, %v2536_v41  ;;  %v2557_v29 = vadd.f32 %v2556_v32, %v2536_v41 }
 0x195   : > { %v3257_v56 = vpop.f32.mrb[67].mxu0  ;;  %v2578_v0 = vadd.f32 %v2577_v62, %v2571_v53 }
 0x196   : > { %2602 = vst [vmem:[%s4272_s17 + $0x18] sm:$0xf] %v2594_v37  ;;  %v3258_v38 = vadd.f32 %v3257_v56, %v3256_v59  ;;  %v2476_v58 = vadd.f32 %v3255_v54, %v2411_v42 }
 0x197   : > { %v2579_v44 = vadd.f32 %v2578_v0, %v2572_v63 }
 0x198   : > { %v2541_v60 = vadd.f32 %v2540_v28, %v2476_v58  ;;  %v2479_v26 = vadd.f32 %v3258_v38, %v2414_v6 }
 0x19a   : > { %v2558_v5 = vadd.f32 %v2557_v29, %v2541_v60  ;;  %v2573_v61 = vmul.f32 %v2541_v60, %v2541_v60  ;;  %v2595_v57 = vpack.c.bf16 %v2541_v60, %v2541_v60  ;;  %v2544_v36 = vadd.f32 %v2543_v34, %v2479_v26  ;;  %v3259_v4 = vpop.f32.mrb[68].mxu0 }
 0x19b   : > { %v3260_v9 = vpop.f32.mrb[69].mxu0 }
 0x19c   : > { %v2580_v10 = vadd.f32 %v2579_v44, %v2573_v61  ;;  %2603 = vst [vmem:[%s4272_s17 + $0x20] sm:$0xf] %v2595_v57  ;;  %v2559_v48 = vadd.f32 %v2558_v5, %v2544_v36  ;;  %v2574_v42 = vmul.f32 %v2544_v36, %v2544_v36  ;;  %v2596_v11 = vpack.c.bf16 %v2544_v36, %v2544_v36  ;;  %v3262_v51 = vpop.f32.mrb[70].mxu0 }
 0x19d   : > { %v3261_v30 = vadd.f32 %v3260_v9, %v3259_v4  ;;  %v3263_v12 = vpop.f32.mrb[71].mxu0 }
 0x19e   : > { %v2581_v6 = vadd.f32 %v2580_v10, %v2574_v42  ;;  %2604 = vst [vmem:[%s4272_s17 + $0x28] sm:$0xf] %v2596_v11  ;;  %v3264_v45 = vadd.f32 %v3263_v12, %v3262_v51 }
 0x19f   : > { %v2484_v14 = vadd.f32 %v3261_v30, %v4282_v16 }
 0x1a0   : > { %v2487_v43 = vadd.f32 %v3264_v45, %v4284_v13 }
 0x1a1   : > { %v2549_v25 = vadd.f32 %v3323_v18, %v2484_v14 }
 0x1a2   : > { %v2552_v19 = vadd.f32 %v3324_v1, %v2487_v43 }
 0x1a3   : > { %v2560_v20 = vadd.f32 %v2559_v48, %v2549_v25  ;;  %v2575_v40 = vmul.f32 %v2549_v25, %v2549_v25  ;;  %v2597_v21 = vpack.c.bf16 %v2549_v25, %v2549_v25 }
 0x1a4   : > { %v2576_v2 = vmul.f32 %v2552_v19, %v2552_v19  ;;  %v2598_v46 = vpack.c.bf16 %v2552_v19, %v2552_v19 }
 0x1a5   : > { %v2582_v31 = vadd.f32 %v2581_v6, %v2575_v40  ;;  %2605 = vst [vmem:[%s4272_s17 + $0x30] sm:$0xf] %v2597_v21  ;;  %v2561_v50 = vadd.f32 %v2560_v20, %v2552_v19 }
 0x1a6   : > { %2606 = vst [vmem:[%s4272_s17 + $0x38] sm:$0xf] %v2598_v46 }
 0x1a7   : > { %v2562_v24 = vrot.slane %v2561_v50, 4  ;;  %v2583_v55 = vadd.f32 %v2582_v31, %v2576_v2 }
 0x1a9   : > { %v2563_v3 = vadd.f32 %v2562_v24, %v2561_v50  ;;  %v2584_v33 = vrot.slane %v2583_v55, 4 }
 0x1ab   : > { %v2564_v16 = vrot.slane %v2563_v3, 2  ;;  %v2585_v8 = vadd.f32 %v2584_v33, %v2583_v55 }
 0x1ad   : > { %v2565_v13 = vadd.f32 %v2564_v16, %v2563_v3  ;;  %v2586_v39 = vrot.slane %v2585_v8, 2 }
 0x1af   : > { %v2566_v7 = vrot.slane %v2565_v13, 1  ;;  %v2587_v22 = vadd.f32 %v2586_v39, %v2585_v8 }
 0x1b1   : > { %v2567_v15 = vadd.f32 %v2566_v7, %v2565_v13  ;;  %v2588_v23 = vrot.slane %v2587_v22, 1 }
 0x1b3   : > { %2568 = vst [vmem:[%s265_s20] sm:$0x1] %v2567_v15  ;;  %v2589_v47 = vadd.f32 %v2588_v23, %v2587_v22 }
 0x1b5   : > { %2590 = vst [vmem:[%s268_s25] sm:$0x1] %v2589_v47 }
 0x1b6 PF: > { %s17_s21 = sadd.s32 1, %s3485_s21  }
 0x1b7   : > { %p14_p4 = scmp.ge.s32.totalorder %s17_s21, 4  }
 0x1b9   :  { %16 = sbr.rel (!%p14_p4) target bundleno = 1 (0x1), region = 161 }

</bundles_post_ra>
